<compile_context>
chip_gen: v7x
topology: tpu7x:2x2x1
jax: 0.10.0
libtpu: 0.0.40
codegen_flags: <defaults>
</compile_context>

<pallas_src>
import functools

import jax
import jax.numpy as jnp
from jax import lax
from jax.experimental import pallas as pl
from jax.experimental.pallas import tpu as pltpu


def _round_up(x, m):
    return ((x + m - 1) // m) * m


# ----------------------------------------------------------------------------
# Kernel 1: fused encoder (1x1, VPU FMA) + 2x(3x3 conv + ReLU) + 4x MLP hidden.
# One image per grid step; all weights resident in VMEM; grid=(B,) "parallel".
# ----------------------------------------------------------------------------
def _features_kernel(xs_ref, xm_ref, ew_ref, eb_ref,
                     c1w_ref, c1b_ref, c2w_ref, c2b_ref,
                     m1w_ref, m1b_ref, m2w_ref, m2b_ref,
                     m3w_ref, m3b_ref, m4w_ref, m4b_ref,
                     o_ref, pad1_ref, pad2_ref, *, H, W, C, Cenc, Cdec):
    f32 = jnp.float32

    # --- Encoder: concat(x*mask, mask) @ enc_w + b as VPU FMAs (K = 2C) ------
    sig = xs_ref[0].reshape(H * W, C)              # (H*W, C) = x * mask
    msk = xm_ref[0].reshape(H * W, C)              # (H*W, C)
    ew = ew_ref[...]                               # (2C, Cenc), loaded once
    enc = jnp.zeros((H * W, Cenc), f32)
    for c in range(C):                             # unrolled, weight rows hoisted
        enc = enc + sig[:, c:c + 1] * ew[c:c + 1, :] \
                  + msk[:, c:c + 1] * ew[C + c:C + c + 1, :]
    enc = jnp.maximum(enc + eb_ref[...], 0.0)      # (H*W, Cenc)

    # --- im2col-x fill: S[y, w, kx*Cin + c] = zero-padded act[y-1+ .., w-1+kx, c]
    # Only the two halo rows are zeroed (no full-buffer vst pass); the x-halo is
    # folded into the masked rolls.  Single f32->bf16 cast at store time.
    def fill_im2col(pad_ref, x_flat, cin):
        x = x_flat.reshape(H, W, cin)                              # layout-free
        col = lax.broadcasted_iota(jnp.int32, (H, W, cin), 1)
        left = jnp.where(col == 0, 0.0, pltpu.roll(x, shift=1, axis=1))
        right = jnp.where(col == W - 1, 0.0, pltpu.roll(x, shift=W - 1, axis=1))
        patch = jnp.concatenate([left, x, right], axis=-1)         # (H, W, 3*cin)
        zrow = jnp.zeros((1, W, 3 * cin), pad_ref.dtype)
        pad_ref[pl.ds(0, 1), :, :] = zrow                          # top halo row
        pad_ref[pl.ds(H + 1, 1), :, :] = zrow                      # bottom halo row
        pad_ref[pl.ds(1, H), :, :] = patch.astype(pad_ref.dtype)   # interior, bf16

    # --- 3x3 "same" conv: kx folded into K -> 3 matmuls with K = 3*Cin -------
    def conv3x3(pad_ref, w3_ref, b_ref, cin, cout):
        acc = jnp.zeros((H * W, cout), f32)
        for ky in range(3):
            patch = pad_ref[pl.ds(ky, H), :, :].reshape(H * W, 3 * cin)  # bf16, aligned
            acc = acc + jnp.dot(patch, w3_ref[ky], preferred_element_type=f32)
        return jnp.maximum(acc + b_ref[...], 0.0)

    fill_im2col(pad1_ref, enc, Cenc)
    h = conv3x3(pad1_ref, c1w_ref, c1b_ref, Cenc, Cdec)            # (H*W, Cdec)
    fill_im2col(pad2_ref, h, Cdec)
    h = conv3x3(pad2_ref, c2w_ref, c2b_ref, Cdec, Cdec)            # (H*W, Cdec)

    # --- MLP hidden layers (pointwise), bf16 matmuls, f32 accumulation -------
    for w_ref, b_ref in ((m1w_ref, m1b_ref), (m2w_ref, m2b_ref),
                         (m3w_ref, m3b_ref), (m4w_ref, m4b_ref)):
        h = jnp.maximum(jnp.dot(h.astype(w_ref.dtype), w_ref[...],
                                preferred_element_type=f32) + b_ref[...], 0.0)

    o_ref[0] = h.astype(o_ref.dtype)                               # (H*W, 64) bf16


def pallas_features(params, x_signal, x_mask):
    B, H, W, C = x_signal.shape
    bf16 = jnp.bfloat16
    enc_w = params["enc_w"]
    Cenc = enc_w.shape[1]
    Cdec = params["c1_w"].shape[-1]
    hidden = params["mlp_hidden"]
    Cmlp = hidden[-1][0].shape[1]

    # f32 master weights in params; cast / repack to bf16 at the call boundary.
    # Conv weights: (ky, kx, Cin, Cout) -> (ky, kx*Cin + c, Cout) so kx lives in
    # the contraction dim (K = 3*Cin per ky matmul).
    c1w = params["c1_w"].reshape(3, 3 * Cenc, Cdec).astype(bf16)
    c2w = params["c2_w"].reshape(3, 3 * Cdec, Cdec).astype(bf16)
    weights = [enc_w, params["enc_b"], c1w, params["c1_b"], c2w, params["c2_b"]]
    for w, b in hidden:
        weights += [w.astype(bf16), b]

    def wspec(arr):
        zeros = (0,) * arr.ndim
        # TODO(synk): pipeline_mode=pl.Buffered(1) on these constant-index
        # weight operands would free one VMEM copy each; omitted to stay
        # conservative on lowering support.
        return pl.BlockSpec(arr.shape, lambda b: zeros)

    in_specs = [pl.BlockSpec((1, H, W, C), lambda b: (b, 0, 0, 0)),
                pl.BlockSpec((1, H, W, C), lambda b: (b, 0, 0, 0))]
    in_specs += [wspec(w) for w in weights]

    return pl.pallas_call(
        functools.partial(_features_kernel, H=H, W=W, C=C,
                          Cenc=Cenc, Cdec=Cdec),
        out_shape=jax.ShapeDtypeStruct((B, H * W, Cmlp), bf16),
        grid=(B,),
        in_specs=in_specs,
        out_specs=pl.BlockSpec((1, H * W, Cmlp), lambda b: (b, 0, 0)),
        scratch_shapes=[pltpu.VMEM((H + 2, W, 3 * Cenc), bf16),
                        pltpu.VMEM((H + 2, W, 3 * Cdec), bf16)],
        compiler_params=pltpu.CompilerParams(
            dimension_semantics=("parallel",),
            vmem_limit_bytes=64 * 1024 * 1024),
    )(x_signal, x_mask, *weights)


# ----------------------------------------------------------------------------
# Kernel 2: Gaussian final layer, T-tiled, lane-dense (B, 2, T) output.
# RBF readout on the 64-ch grid features; the last MLP layer (64 -> 2) is
# applied after the normalized readout (exact: the RBF weights sum to 1).
# ----------------------------------------------------------------------------
def _final_kernel(d_ref, f_ref, wlt_ref, blt_ref, o_ref, *, inv_two_ls2):
    f32 = jnp.float32
    d = d_ref[0].astype(f32)                         # (tt, G) distances
    d2 = d * d
    # Shift by the per-row min(d^2) before exp: identical after normalization,
    # removes the all-underflow 0/0 path.
    m = jnp.min(d2, axis=-1, keepdims=True)
    w = jnp.exp((m - d2) * inv_two_ls2)              # row max == 1 -> sum >= 1
    s = jnp.sum(w, axis=-1, keepdims=True)
    acc = jnp.dot(w.astype(f_ref.dtype), f_ref[0],
                  preferred_element_type=f32)        # (tt, 64), bf16 MXU operands
    acc = acc * pl.reciprocal(s, approx=True)        # normalize AFTER matmul (EUP)
    acc_t = jnp.transpose(acc)                       # (64, tt): targets on lanes
    out = jnp.dot(wlt_ref[...], acc_t,
                  preferred_element_type=f32) + blt_ref[...]     # (2, tt)
    sp = jnp.maximum(out, 0.0) + jnp.log(1.0 + jnp.exp(-jnp.abs(out)))
    row = lax.broadcasted_iota(jnp.int32, out.shape, 0)
    # row 0 = mu, row 1 = softplus(pre-sigma); lane-dense store.
    o_ref[0] = jnp.where(row == 0, out, sp).astype(o_ref.dtype)


def pallas_gaussian_final(dists, grid_feats, w_last, b_last, ls, *, tile_t=128):
    B, T, G = dists.shape
    Cmlp = grid_feats.shape[-1]
    tt = min(tile_t, _round_up(T, 8))
    T_pad = _round_up(T, tt)
    if T_pad != T:                                   # zero-pad -> finite rows
        dists = jnp.pad(dists, ((0, 0), (0, T_pad - T), (0, 0)))
    wlt = jnp.transpose(w_last)                      # (2, 64), applied post-readout
    blt = jnp.reshape(b_last, (2, 1))
    out = pl.pallas_call(
        functools.partial(_final_kernel,
                          inv_two_ls2=float(1.0 / (2.0 * ls * ls))),
        out_shape=jax.ShapeDtypeStruct((B, 2, T_pad), jnp.float32),
        grid=(B, T_pad // tt),
        in_specs=[
            pl.BlockSpec((1, tt, G), lambda b, t: (b, t, 0)),
            pl.BlockSpec((1, G, Cmlp), lambda b, t: (b, 0, 0)),
            pl.BlockSpec((2, Cmlp), lambda b, t: (0, 0)),
            pl.BlockSpec((2, 1), lambda b, t: (0, 0)),
        ],
        out_specs=pl.BlockSpec((1, 2, tt), lambda b, t: (b, 0, t)),
        compiler_params=pltpu.CompilerParams(
            dimension_semantics=("parallel", "parallel"),
            vmem_limit_bytes=64 * 1024 * 1024),
    )(dists, grid_feats, wlt, blt)
    # Kernel writes lane-dense (B, 2, T_pad); plumb back to (B, T, 2) here.
    return jnp.transpose(out, (0, 2, 1))[:, :T]


# ----------------------------------------------------------------------------
# Parameter init (deterministic, synthetic, f32 masters) and full forward pass.
# ----------------------------------------------------------------------------
def init_params(key, in_channels=1, enc_channels=16, dec_channels=32,
                mlp_hidden=64, mlp_layers=4, ls=0.1):
    keys = jax.random.split(key, 3 + mlp_layers + 1)

    def dense(k, cin, cout):
        kw, kb = jax.random.split(k)
        w = jax.random.normal(kw, (cin, cout), jnp.float32) / jnp.sqrt(1.0 * cin)
        b = 0.1 * jax.random.normal(kb, (1, cout), jnp.float32)
        return w, b

    def conv(k, cin, cout):
        kw, kb = jax.random.split(k)
        w = (jax.random.normal(kw, (3, 3, cin, cout), jnp.float32)
             / jnp.sqrt(9.0 * cin))
        b = 0.1 * jax.random.normal(kb, (1, cout), jnp.float32)
        return w, b                       # f32 masters; bf16 cast at call boundary

    p = {}
    p["enc_w"], p["enc_b"] = dense(keys[0], 2 * in_channels, enc_channels)
    p["c1_w"], p["c1_b"] = conv(keys[1], enc_channels, dec_channels)
    p["c2_w"], p["c2_b"] = conv(keys[2], dec_channels, dec_channels)
    hidden = []
    cin = dec_channels
    for i in range(mlp_layers):
        hidden.append(dense(keys[3 + i], cin, mlp_hidden))
        cin = mlp_hidden
    p["mlp_hidden"] = hidden
    p["last_w"], p["last_b"] = dense(keys[3 + mlp_layers], cin, 2)
    p["ls"] = ls
    return p


def tmax_bias_convcnp_forward(params, x, mask, dists):
    """x, mask: (B, C, H, W) NCHW like the PyTorch module; dists: (B, T, H*W)."""
    xh = jnp.transpose(x, (0, 2, 3, 1)).astype(jnp.float32)     # NCHW -> NHWC
    mh = jnp.transpose(mask, (0, 2, 3, 1)).astype(jnp.float32)
    grid_feats = pallas_features(params, xh * mh, mh)           # (B, H*W, 64) bf16
    return pallas_gaussian_final(dists.astype(jnp.float32), grid_feats,
                                 params["last_w"], params["last_b"],
                                 params["ls"])


if __name__ == "__main__":
    key = jax.random.PRNGKey(0)
    kp, kx, km, kt = jax.random.split(key, 4)

    B, C, H, W, T = 2, 1, 16, 16, 8
    params = init_params(kp, in_channels=C)

    x = jax.random.normal(kx, (B, C, H, W), jnp.float32)
    mask = (jax.random.uniform(km, (B, C, H, W)) > 0.5).astype(jnp.float32)

    # Distances from T target points to the H*W grid points (per batch).
    ys, xs = jnp.meshgrid(jnp.linspace(0.0, 1.0, H), jnp.linspace(0.0, 1.0, W),
                          indexing="ij")
    grid_pts = jnp.stack([ys.ravel(), xs.ravel()], axis=-1)      # (H*W, 2)
    tgt = jax.random.uniform(kt, (B, T, 2))
    dists = jnp.sqrt(jnp.sum((tgt[:, :, None, :] - grid_pts[None, None]) ** 2,
                             axis=-1))

    fwd = jax.jit(lambda xx, mm, dd: tmax_bias_convcnp_forward(params, xx, mm, dd))
    out = jax.block_until_ready(fwd(x, mask, dists))

    assert out.shape == (B, T, 2), out.shape
    assert bool(jnp.all(jnp.isfinite(out)))
    print("KERNEL_OK")
</pallas_src>

<mosaic_0001>
module attributes {stable_mosaic.version = 11 : i64} {
  func.func @_features_kernel(%arg0: i32, %arg1: memref<1x16x16x1xf32, #tpu.memory_space<vmem>>, %arg2: memref<1x16x16x1xf32, #tpu.memory_space<vmem>>, %arg3: memref<2x16xf32, #tpu.memory_space<vmem>>, %arg4: memref<1x16xf32, #tpu.memory_space<vmem>>, %arg5: memref<3x48x32xbf16, #tpu.memory_space<vmem>>, %arg6: memref<1x32xf32, #tpu.memory_space<vmem>>, %arg7: memref<3x96x32xbf16, #tpu.memory_space<vmem>>, %arg8: memref<1x32xf32, #tpu.memory_space<vmem>>, %arg9: memref<32x64xbf16, #tpu.memory_space<vmem>>, %arg10: memref<1x64xf32, #tpu.memory_space<vmem>>, %arg11: memref<64x64xbf16, #tpu.memory_space<vmem>>, %arg12: memref<1x64xf32, #tpu.memory_space<vmem>>, %arg13: memref<64x64xbf16, #tpu.memory_space<vmem>>, %arg14: memref<1x64xf32, #tpu.memory_space<vmem>>, %arg15: memref<64x64xbf16, #tpu.memory_space<vmem>>, %arg16: memref<1x64xf32, #tpu.memory_space<vmem>>, %arg17: memref<1x256x64xbf16, #tpu.memory_space<vmem>>, %arg18: memref<18x16x48xbf16, #tpu.memory_space<vmem>>, %arg19: memref<18x16x96xbf16, #tpu.memory_space<vmem>>) attributes {dimension_semantics = [#tpu.dimension_semantics<parallel>], iteration_bounds = array<i64: 2>, scalar_prefetch = 0 : i64, scratch_operands = 2 : i64, tpu.core_type = #tpu.core_type<tc>, window_params = [{transform_indices = @transform_0, window_bounds = array<i64: 1, 16, 16, 1>}, {transform_indices = @transform_1, window_bounds = array<i64: 1, 16, 16, 1>}, {pipeline_mode = #tpu.pipeline_mode<synchronous>, transform_indices = @transform_2, window_bounds = array<i64: 2, 16>}, {pipeline_mode = #tpu.pipeline_mode<synchronous>, transform_indices = @transform_3, window_bounds = array<i64: 1, 16>}, {pipeline_mode = #tpu.pipeline_mode<synchronous>, transform_indices = @transform_4, window_bounds = array<i64: 3, 48, 32>}, {pipeline_mode = #tpu.pipeline_mode<synchronous>, transform_indices = @transform_5, window_bounds = array<i64: 1, 32>}, {pipeline_mode = #tpu.pipeline_mode<synchronous>, transform_indices = @transform_6, window_bounds = array<i64: 3, 96, 32>}, {pipeline_mode = #tpu.pipeline_mode<synchronous>, transform_indices = @transform_7, window_bounds = array<i64: 1, 32>}, {pipeline_mode = #tpu.pipeline_mode<synchronous>, transform_indices = @transform_8, window_bounds = array<i64: 32, 64>}, {pipeline_mode = #tpu.pipeline_mode<synchronous>, transform_indices = @transform_9, window_bounds = array<i64: 1, 64>}, {pipeline_mode = #tpu.pipeline_mode<synchronous>, transform_indices = @transform_10, window_bounds = array<i64: 64, 64>}, {pipeline_mode = #tpu.pipeline_mode<synchronous>, transform_indices = @transform_11, window_bounds = array<i64: 1, 64>}, {pipeline_mode = #tpu.pipeline_mode<synchronous>, transform_indices = @transform_12, window_bounds = array<i64: 64, 64>}, {pipeline_mode = #tpu.pipeline_mode<synchronous>, transform_indices = @transform_13, window_bounds = array<i64: 1, 64>}, {pipeline_mode = #tpu.pipeline_mode<synchronous>, transform_indices = @transform_14, window_bounds = array<i64: 64, 64>}, {pipeline_mode = #tpu.pipeline_mode<synchronous>, transform_indices = @transform_15, window_bounds = array<i64: 1, 64>}, {transform_indices = @transform_16, window_bounds = array<i64: 1, 256, 64>}]} {
    %c0 = arith.constant 0 : index
    %c0_0 = arith.constant 0 : index
    %c0_1 = arith.constant 0 : index
    %c0_2 = arith.constant 0 : index
    %0 = vector.load %arg1[%c0, %c0_0, %c0_1, %c0_2] : memref<1x16x16x1xf32, #tpu.memory_space<vmem>>, vector<1x16x16x1xf32>
    %1 = vector.shape_cast %0 : vector<1x16x16x1xf32> to vector<16x16x1xf32>
    %2 = vector.shape_cast %1 : vector<16x16x1xf32> to vector<256x1xf32>
    %c0_3 = arith.constant 0 : index
    %c0_4 = arith.constant 0 : index
    %c0_5 = arith.constant 0 : index
    %c0_6 = arith.constant 0 : index
    %3 = vector.load %arg2[%c0_3, %c0_4, %c0_5, %c0_6] : memref<1x16x16x1xf32, #tpu.memory_space<vmem>>, vector<1x16x16x1xf32>
    %4 = vector.shape_cast %3 : vector<1x16x16x1xf32> to vector<16x16x1xf32>
    %5 = vector.shape_cast %4 : vector<16x16x1xf32> to vector<256x1xf32>
    %c0_7 = arith.constant 0 : index
    %c0_8 = arith.constant 0 : index
    %6 = vector.load %arg3[%c0_7, %c0_8] : memref<2x16xf32, #tpu.memory_space<vmem>>, vector<2x16xf32>
    %cst = arith.constant 0.000000e+00 : f32
    %7 = vector.broadcast %cst : f32 to vector<256x16xf32>
    %8 = vector.extract_strided_slice %6 {offsets = [0, 0], sizes = [1, 16], strides = [1, 1]} : vector<2x16xf32> to vector<1x16xf32>
    %9 = vector.broadcast %2 : vector<256x1xf32> to vector<256x16xf32>
    %10 = vector.broadcast %8 : vector<1x16xf32> to vector<256x16xf32>
    %11 = arith.mulf %9, %10 : vector<256x16xf32>
    %12 = arith.addf %7, %11 : vector<256x16xf32>
    %13 = vector.extract_strided_slice %6 {offsets = [1, 0], sizes = [1, 16], strides = [1, 1]} : vector<2x16xf32> to vector<1x16xf32>
    %14 = vector.broadcast %5 : vector<256x1xf32> to vector<256x16xf32>
    %15 = vector.broadcast %13 : vector<1x16xf32> to vector<256x16xf32>
    %16 = arith.mulf %14, %15 : vector<256x16xf32>
    %17 = arith.addf %12, %16 : vector<256x16xf32>
    %c0_9 = arith.constant 0 : index
    %c0_10 = arith.constant 0 : index
    %18 = vector.load %arg4[%c0_9, %c0_10] : memref<1x16xf32, #tpu.memory_space<vmem>>, vector<1x16xf32>
    %19 = vector.broadcast %18 : vector<1x16xf32> to vector<256x16xf32>
    %20 = arith.addf %17, %19 : vector<256x16xf32>
    %cst_11 = arith.constant 0.000000e+00 : f32
    %21 = vector.broadcast %cst_11 : f32 to vector<256x16xf32>
    %22 = arith.maximumf %20, %21 : vector<256x16xf32>
    %23 = vector.shape_cast %22 : vector<256x16xf32> to vector<16x16x16xf32>
    %24 = tpu.iota {dimensions = array<i32: 1>} : vector<16x16x16xi32>
    %c0_i32 = arith.constant 0 : i32
    %25 = vector.broadcast %c0_i32 : i32 to vector<16x16x16xi32>
    %26 = arith.cmpi eq, %24, %25 : vector<16x16x16xi32>
    %c1_i32 = arith.constant 1 : i32
    %27 = tpu.dynamic_rotate %23 by %c1_i32 dim 1 : vector<16x16x16xf32>, i32 -> vector<16x16x16xf32>
    %cst_12 = arith.constant 0.000000e+00 : f32
    %28 = vector.broadcast %cst_12 : f32 to vector<16x16x16xf32>
    %29 = arith.select %26, %28, %27 : vector<16x16x16xi1>, vector<16x16x16xf32>
    %c15_i32 = arith.constant 15 : i32
    %30 = vector.broadcast %c15_i32 : i32 to vector<16x16x16xi32>
    %31 = arith.cmpi eq, %24, %30 : vector<16x16x16xi32>
    %c15_i32_13 = arith.constant 15 : i32
    %32 = tpu.dynamic_rotate %23 by %c15_i32_13 dim 1 : vector<16x16x16xf32>, i32 -> vector<16x16x16xf32>
    %cst_14 = arith.constant 0.000000e+00 : f32
    %33 = vector.broadcast %cst_14 : f32 to vector<16x16x16xf32>
    %34 = arith.select %31, %33, %32 : vector<16x16x16xi1>, vector<16x16x16xf32>
    %35 = tpu.concatenate %29, %23, %34 in 2 : vector<16x16x16xf32>, vector<16x16x16xf32>, vector<16x16x16xf32> -> vector<16x16x48xf32>
    %cst_15 = arith.constant 0.000000e+00 : bf16
    %36 = vector.broadcast %cst_15 : bf16 to vector<1x16x48xbf16>
    %c0_16 = arith.constant 0 : index
    %c0_17 = arith.constant 0 : index
    %c0_18 = arith.constant 0 : index
    %37 = vector.load %arg18[%c0_16, %c0_17, %c0_18] : memref<18x16x48xbf16, #tpu.memory_space<vmem>>, vector<1x16x48xbf16>
    tpu.vector_store %arg18[%c0_16, %c0_17, %c0_18], %36 {strides = array<i32>} : memref<18x16x48xbf16, #tpu.memory_space<vmem>>, vector<1x16x48xbf16>,
    %c17 = arith.constant 17 : index
    %c0_19 = arith.constant 0 : index
    %c0_20 = arith.constant 0 : index
    %38 = vector.load %arg18[%c17, %c0_19, %c0_20] : memref<18x16x48xbf16, #tpu.memory_space<vmem>>, vector<1x16x48xbf16>
    tpu.vector_store %arg18[%c17, %c0_19, %c0_20], %36 {strides = array<i32>} : memref<18x16x48xbf16, #tpu.memory_space<vmem>>, vector<1x16x48xbf16>,
    %39 = arith.truncf %35 : vector<16x16x48xf32> to vector<16x16x48xbf16>
    %c1 = arith.constant 1 : index
    %c0_21 = arith.constant 0 : index
    %c0_22 = arith.constant 0 : index
    %40 = vector.load %arg18[%c1, %c0_21, %c0_22] : memref<18x16x48xbf16, #tpu.memory_space<vmem>>, vector<16x16x48xbf16>
    tpu.vector_store %arg18[%c1, %c0_21, %c0_22], %39 {strides = array<i32>} : memref<18x16x48xbf16, #tpu.memory_space<vmem>>, vector<16x16x48xbf16>,
    %cst_23 = arith.constant 0.000000e+00 : f32
    %41 = vector.broadcast %cst_23 : f32 to vector<256x32xf32>
    %c0_24 = arith.constant 0 : index
    %c0_25 = arith.constant 0 : index
    %c0_26 = arith.constant 0 : index
    %42 = vector.load %arg18[%c0_24, %c0_25, %c0_26] : memref<18x16x48xbf16, #tpu.memory_space<vmem>>, vector<16x16x48xbf16>
    %43 = vector.shape_cast %42 : vector<16x16x48xbf16> to vector<256x48xbf16>
    %c0_27 = arith.constant 0 : index
    %c0_28 = arith.constant 0 : index
    %c0_29 = arith.constant 0 : index
    %44 = vector.load %arg5[%c0_27, %c0_28, %c0_29] : memref<3x48x32xbf16, #tpu.memory_space<vmem>>, vector<1x48x32xbf16>
    %45 = vector.shape_cast %44 : vector<1x48x32xbf16> to vector<48x32xbf16>
    %cst_30 = arith.constant dense<0.000000e+00> : vector<256x32xf32>
    %46 = tpu.matmul %43, %45, %cst_30 {dimension_numbers = #tpu.dot_dimension_numbers<[1], [0], [0], [1], [0, 0, 1, 1], [], []>} : vector<256x48xbf16>, vector<48x32xbf16>, vector<256x32xf32> -> vector<256x32xf32>
    %47 = arith.addf %41, %46 : vector<256x32xf32>
    %c1_31 = arith.constant 1 : index
    %c0_32 = arith.constant 0 : index
    %c0_33 = arith.constant 0 : index
    %48 = vector.load %arg18[%c1_31, %c0_32, %c0_33] : memref<18x16x48xbf16, #tpu.memory_space<vmem>>, vector<16x16x48xbf16>
    %49 = vector.shape_cast %48 : vector<16x16x48xbf16> to vector<256x48xbf16>
    %c1_34 = arith.constant 1 : index
    %c0_35 = arith.constant 0 : index
    %c0_36 = arith.constant 0 : index
    %50 = vector.load %arg5[%c1_34, %c0_35, %c0_36] : memref<3x48x32xbf16, #tpu.memory_space<vmem>>, vector<1x48x32xbf16>
    %51 = vector.shape_cast %50 : vector<1x48x32xbf16> to vector<48x32xbf16>
    %cst_37 = arith.constant dense<0.000000e+00> : vector<256x32xf32>
    %52 = tpu.matmul %49, %51, %cst_37 {dimension_numbers = #tpu.dot_dimension_numbers<[1], [0], [0], [1], [0, 0, 1, 1], [], []>} : vector<256x48xbf16>, vector<48x32xbf16>, vector<256x32xf32> -> vector<256x32xf32>
    %53 = arith.addf %47, %52 : vector<256x32xf32>
    %c2 = arith.constant 2 : index
    %c0_38 = arith.constant 0 : index
    %c0_39 = arith.constant 0 : index
    %54 = vector.load %arg18[%c2, %c0_38, %c0_39] : memref<18x16x48xbf16, #tpu.memory_space<vmem>>, vector<16x16x48xbf16>
    %55 = vector.shape_cast %54 : vector<16x16x48xbf16> to vector<256x48xbf16>
    %c2_40 = arith.constant 2 : index
    %c0_41 = arith.constant 0 : index
    %c0_42 = arith.constant 0 : index
    %56 = vector.load %arg5[%c2_40, %c0_41, %c0_42] : memref<3x48x32xbf16, #tpu.memory_space<vmem>>, vector<1x48x32xbf16>
    %57 = vector.shape_cast %56 : vector<1x48x32xbf16> to vector<48x32xbf16>
    %cst_43 = arith.constant dense<0.000000e+00> : vector<256x32xf32>
    %58 = tpu.matmul %55, %57, %cst_43 {dimension_numbers = #tpu.dot_dimension_numbers<[1], [0], [0], [1], [0, 0, 1, 1], [], []>} : vector<256x48xbf16>, vector<48x32xbf16>, vector<256x32xf32> -> vector<256x32xf32>
    %59 = arith.addf %53, %58 : vector<256x32xf32>
    %c0_44 = arith.constant 0 : index
    %c0_45 = arith.constant 0 : index
    %60 = vector.load %arg6[%c0_44, %c0_45] : memref<1x32xf32, #tpu.memory_space<vmem>>, vector<1x32xf32>
    %61 = vector.broadcast %60 : vector<1x32xf32> to vector<256x32xf32>
    %62 = arith.addf %59, %61 : vector<256x32xf32>
    %cst_46 = arith.constant 0.000000e+00 : f32
    %63 = vector.broadcast %cst_46 : f32 to vector<256x32xf32>
    %64 = arith.maximumf %62, %63 : vector<256x32xf32>
    %65 = vector.shape_cast %64 : vector<256x32xf32> to vector<16x16x32xf32>
    %66 = tpu.iota {dimensions = array<i32: 1>} : vector<16x16x32xi32>
    %c0_i32_47 = arith.constant 0 : i32
    %67 = vector.broadcast %c0_i32_47 : i32 to vector<16x16x32xi32>
    %68 = arith.cmpi eq, %66, %67 : vector<16x16x32xi32>
    %c1_i32_48 = arith.constant 1 : i32
    %69 = tpu.dynamic_rotate %65 by %c1_i32_48 dim 1 : vector<16x16x32xf32>, i32 -> vector<16x16x32xf32>
    %cst_49 = arith.constant 0.000000e+00 : f32
    %70 = vector.broadcast %cst_49 : f32 to vector<16x16x32xf32>
    %71 = arith.select %68, %70, %69 : vector<16x16x32xi1>, vector<16x16x32xf32>
    %c15_i32_50 = arith.constant 15 : i32
    %72 = vector.broadcast %c15_i32_50 : i32 to vector<16x16x32xi32>
    %73 = arith.cmpi eq, %66, %72 : vector<16x16x32xi32>
    %c15_i32_51 = arith.constant 15 : i32
    %74 = tpu.dynamic_rotate %65 by %c15_i32_51 dim 1 : vector<16x16x32xf32>, i32 -> vector<16x16x32xf32>
    %cst_52 = arith.constant 0.000000e+00 : f32
    %75 = vector.broadcast %cst_52 : f32 to vector<16x16x32xf32>
    %76 = arith.select %73, %75, %74 : vector<16x16x32xi1>, vector<16x16x32xf32>
    %77 = tpu.concatenate %71, %65, %76 in 2 : vector<16x16x32xf32>, vector<16x16x32xf32>, vector<16x16x32xf32> -> vector<16x16x96xf32>
    %cst_53 = arith.constant 0.000000e+00 : bf16
    %78 = vector.broadcast %cst_53 : bf16 to vector<1x16x96xbf16>
    %c0_54 = arith.constant 0 : index
    %c0_55 = arith.constant 0 : index
    %c0_56 = arith.constant 0 : index
    %79 = vector.load %arg19[%c0_54, %c0_55, %c0_56] : memref<18x16x96xbf16, #tpu.memory_space<vmem>>, vector<1x16x96xbf16>
    tpu.vector_store %arg19[%c0_54, %c0_55, %c0_56], %78 {strides = array<i32>} : memref<18x16x96xbf16, #tpu.memory_space<vmem>>, vector<1x16x96xbf16>,
    %c17_57 = arith.constant 17 : index
    %c0_58 = arith.constant 0 : index
    %c0_59 = arith.constant 0 : index
    %80 = vector.load %arg19[%c17_57, %c0_58, %c0_59] : memref<18x16x96xbf16, #tpu.memory_space<vmem>>, vector<1x16x96xbf16>
    tpu.vector_store %arg19[%c17_57, %c0_58, %c0_59], %78 {strides = array<i32>} : memref<18x16x96xbf16, #tpu.memory_space<vmem>>, vector<1x16x96xbf16>,
    %81 = arith.truncf %77 : vector<16x16x96xf32> to vector<16x16x96xbf16>
    %c1_60 = arith.constant 1 : index
    %c0_61 = arith.constant 0 : index
    %c0_62 = arith.constant 0 : index
    %82 = vector.load %arg19[%c1_60, %c0_61, %c0_62] : memref<18x16x96xbf16, #tpu.memory_space<vmem>>, vector<16x16x96xbf16>
    tpu.vector_store %arg19[%c1_60, %c0_61, %c0_62], %81 {strides = array<i32>} : memref<18x16x96xbf16, #tpu.memory_space<vmem>>, vector<16x16x96xbf16>,
    %cst_63 = arith.constant 0.000000e+00 : f32
    %83 = vector.broadcast %cst_63 : f32 to vector<256x32xf32>
    %c0_64 = arith.constant 0 : index
    %c0_65 = arith.constant 0 : index
    %c0_66 = arith.constant 0 : index
    %84 = vector.load %arg19[%c0_64, %c0_65, %c0_66] : memref<18x16x96xbf16, #tpu.memory_space<vmem>>, vector<16x16x96xbf16>
    %85 = vector.shape_cast %84 : vector<16x16x96xbf16> to vector<256x96xbf16>
    %c0_67 = arith.constant 0 : index
    %c0_68 = arith.constant 0 : index
    %c0_69 = arith.constant 0 : index
    %86 = vector.load %arg7[%c0_67, %c0_68, %c0_69] : memref<3x96x32xbf16, #tpu.memory_space<vmem>>, vector<1x96x32xbf16>
    %87 = vector.shape_cast %86 : vector<1x96x32xbf16> to vector<96x32xbf16>
    %cst_70 = arith.constant dense<0.000000e+00> : vector<256x32xf32>
    %88 = tpu.matmul %85, %87, %cst_70 {dimension_numbers = #tpu.dot_dimension_numbers<[1], [0], [0], [1], [0, 0, 1, 1], [], []>} : vector<256x96xbf16>, vector<96x32xbf16>, vector<256x32xf32> -> vector<256x32xf32>
    %89 = arith.addf %83, %88 : vector<256x32xf32>
    %c1_71 = arith.constant 1 : index
    %c0_72 = arith.constant 0 : index
    %c0_73 = arith.constant 0 : index
    %90 = vector.load %arg19[%c1_71, %c0_72, %c0_73] : memref<18x16x96xbf16, #tpu.memory_space<vmem>>, vector<16x16x96xbf16>
    %91 = vector.shape_cast %90 : vector<16x16x96xbf16> to vector<256x96xbf16>
    %c1_74 = arith.constant 1 : index
    %c0_75 = arith.constant 0 : index
    %c0_76 = arith.constant 0 : index
    %92 = vector.load %arg7[%c1_74, %c0_75, %c0_76] : memref<3x96x32xbf16, #tpu.memory_space<vmem>>, vector<1x96x32xbf16>
    %93 = vector.shape_cast %92 : vector<1x96x32xbf16> to vector<96x32xbf16>
    %cst_77 = arith.constant dense<0.000000e+00> : vector<256x32xf32>
    %94 = tpu.matmul %91, %93, %cst_77 {dimension_numbers = #tpu.dot_dimension_numbers<[1], [0], [0], [1], [0, 0, 1, 1], [], []>} : vector<256x96xbf16>, vector<96x32xbf16>, vector<256x32xf32> -> vector<256x32xf32>
    %95 = arith.addf %89, %94 : vector<256x32xf32>
    %c2_78 = arith.constant 2 : index
    %c0_79 = arith.constant 0 : index
    %c0_80 = arith.constant 0 : index
    %96 = vector.load %arg19[%c2_78, %c0_79, %c0_80] : memref<18x16x96xbf16, #tpu.memory_space<vmem>>, vector<16x16x96xbf16>
    %97 = vector.shape_cast %96 : vector<16x16x96xbf16> to vector<256x96xbf16>
    %c2_81 = arith.constant 2 : index
    %c0_82 = arith.constant 0 : index
    %c0_83 = arith.constant 0 : index
    %98 = vector.load %arg7[%c2_81, %c0_82, %c0_83] : memref<3x96x32xbf16, #tpu.memory_space<vmem>>, vector<1x96x32xbf16>
    %99 = vector.shape_cast %98 : vector<1x96x32xbf16> to vector<96x32xbf16>
    %cst_84 = arith.constant dense<0.000000e+00> : vector<256x32xf32>
    %100 = tpu.matmul %97, %99, %cst_84 {dimension_numbers = #tpu.dot_dimension_numbers<[1], [0], [0], [1], [0, 0, 1, 1], [], []>} : vector<256x96xbf16>, vector<96x32xbf16>, vector<256x32xf32> -> vector<256x32xf32>
    %101 = arith.addf %95, %100 : vector<256x32xf32>
    %c0_85 = arith.constant 0 : index
    %c0_86 = arith.constant 0 : index
    %102 = vector.load %arg8[%c0_85, %c0_86] : memref<1x32xf32, #tpu.memory_space<vmem>>, vector<1x32xf32>
    %103 = vector.broadcast %102 : vector<1x32xf32> to vector<256x32xf32>
    %104 = arith.addf %101, %103 : vector<256x32xf32>
    %cst_87 = arith.constant 0.000000e+00 : f32
    %105 = vector.broadcast %cst_87 : f32 to vector<256x32xf32>
    %106 = arith.maximumf %104, %105 : vector<256x32xf32>
    %107 = arith.truncf %106 : vector<256x32xf32> to vector<256x32xbf16>
    %c0_88 = arith.constant 0 : index
    %c0_89 = arith.constant 0 : index
    %108 = vector.load %arg9[%c0_88, %c0_89] : memref<32x64xbf16, #tpu.memory_space<vmem>>, vector<32x64xbf16>
    %cst_90 = arith.constant dense<0.000000e+00> : vector<256x64xf32>
    %109 = tpu.matmul %107, %108, %cst_90 {dimension_numbers = #tpu.dot_dimension_numbers<[1], [0], [0], [1], [0, 0, 1, 1], [], []>} : vector<256x32xbf16>, vector<32x64xbf16>, vector<256x64xf32> -> vector<256x64xf32>
    %c0_91 = arith.constant 0 : index
    %c0_92 = arith.constant 0 : index
    %110 = vector.load %arg10[%c0_91, %c0_92] : memref<1x64xf32, #tpu.memory_space<vmem>>, vector<1x64xf32>
    %111 = vector.broadcast %110 : vector<1x64xf32> to vector<256x64xf32>
    %112 = arith.addf %109, %111 : vector<256x64xf32>
    %cst_93 = arith.constant 0.000000e+00 : f32
    %113 = vector.broadcast %cst_93 : f32 to vector<256x64xf32>
    %114 = arith.maximumf %112, %113 : vector<256x64xf32>
    %115 = arith.truncf %114 : vector<256x64xf32> to vector<256x64xbf16>
    %c0_94 = arith.constant 0 : index
    %c0_95 = arith.constant 0 : index
    %116 = vector.load %arg11[%c0_94, %c0_95] : memref<64x64xbf16, #tpu.memory_space<vmem>>, vector<64x64xbf16>
    %cst_96 = arith.constant dense<0.000000e+00> : vector<256x64xf32>
    %117 = tpu.matmul %115, %116, %cst_96 {dimension_numbers = #tpu.dot_dimension_numbers<[1], [0], [0], [1], [0, 0, 1, 1], [], []>} : vector<256x64xbf16>, vector<64x64xbf16>, vector<256x64xf32> -> vector<256x64xf32>
    %c0_97 = arith.constant 0 : index
    %c0_98 = arith.constant 0 : index
    %118 = vector.load %arg12[%c0_97, %c0_98] : memref<1x64xf32, #tpu.memory_space<vmem>>, vector<1x64xf32>
    %119 = vector.broadcast %118 : vector<1x64xf32> to vector<256x64xf32>
    %120 = arith.addf %117, %119 : vector<256x64xf32>
    %cst_99 = arith.constant 0.000000e+00 : f32
    %121 = vector.broadcast %cst_99 : f32 to vector<256x64xf32>
    %122 = arith.maximumf %120, %121 : vector<256x64xf32>
    %123 = arith.truncf %122 : vector<256x64xf32> to vector<256x64xbf16>
    %c0_100 = arith.constant 0 : index
    %c0_101 = arith.constant 0 : index
    %124 = vector.load %arg13[%c0_100, %c0_101] : memref<64x64xbf16, #tpu.memory_space<vmem>>, vector<64x64xbf16>
    %cst_102 = arith.constant dense<0.000000e+00> : vector<256x64xf32>
    %125 = tpu.matmul %123, %124, %cst_102 {dimension_numbers = #tpu.dot_dimension_numbers<[1], [0], [0], [1], [0, 0, 1, 1], [], []>} : vector<256x64xbf16>, vector<64x64xbf16>, vector<256x64xf32> -> vector<256x64xf32>
    %c0_103 = arith.constant 0 : index
    %c0_104 = arith.constant 0 : index
    %126 = vector.load %arg14[%c0_103, %c0_104] : memref<1x64xf32, #tpu.memory_space<vmem>>, vector<1x64xf32>
    %127 = vector.broadcast %126 : vector<1x64xf32> to vector<256x64xf32>
    %128 = arith.addf %125, %127 : vector<256x64xf32>
    %cst_105 = arith.constant 0.000000e+00 : f32
    %129 = vector.broadcast %cst_105 : f32 to vector<256x64xf32>
    %130 = arith.maximumf %128, %129 : vector<256x64xf32>
    %131 = arith.truncf %130 : vector<256x64xf32> to vector<256x64xbf16>
    %c0_106 = arith.constant 0 : index
    %c0_107 = arith.constant 0 : index
    %132 = vector.load %arg15[%c0_106, %c0_107] : memref<64x64xbf16, #tpu.memory_space<vmem>>, vector<64x64xbf16>
    %cst_108 = arith.constant dense<0.000000e+00> : vector<256x64xf32>
    %133 = tpu.matmul %131, %132, %cst_108 {dimension_numbers = #tpu.dot_dimension_numbers<[1], [0], [0], [1], [0, 0, 1, 1], [], []>} : vector<256x64xbf16>, vector<64x64xbf16>, vector<256x64xf32> -> vector<256x64xf32>
    %c0_109 = arith.constant 0 : index
    %c0_110 = arith.constant 0 : index
    %134 = vector.load %arg16[%c0_109, %c0_110] : memref<1x64xf32, #tpu.memory_space<vmem>>, vector<1x64xf32>
    %135 = vector.broadcast %134 : vector<1x64xf32> to vector<256x64xf32>
    %136 = arith.addf %133, %135 : vector<256x64xf32>
    %cst_111 = arith.constant 0.000000e+00 : f32
    %137 = vector.broadcast %cst_111 : f32 to vector<256x64xf32>
    %138 = arith.maximumf %136, %137 : vector<256x64xf32>
    %139 = arith.truncf %138 : vector<256x64xf32> to vector<256x64xbf16>
    %c0_112 = arith.constant 0 : index
    %c0_113 = arith.constant 0 : index
    %c0_114 = arith.constant 0 : index
    %140 = vector.load %arg17[%c0_112, %c0_113, %c0_114] : memref<1x256x64xbf16, #tpu.memory_space<vmem>>, vector<1x256x64xbf16>
    %141 = vector.shape_cast %140 : vector<1x256x64xbf16> to vector<256x64xbf16>
    %142 = vector.shape_cast %139 : vector<256x64xbf16> to vector<1x256x64xbf16>
    tpu.vector_store %arg17[%c0_112, %c0_113, %c0_114], %142 {strides = array<i32>} : memref<1x256x64xbf16, #tpu.memory_space<vmem>>, vector<1x256x64xbf16>,
    return
  }
  func.func @transform_0(%arg0: i32) -> (i32, i32, i32, i32) {
    %c0_i32 = arith.constant 0 : i32
    %c0_i32_0 = arith.constant 0 : i32
    %c0_i32_1 = arith.constant 0 : i32
    %c0_i32_2 = arith.constant 0 : i32
    return %arg0, %c0_i32, %c0_i32_0, %c0_i32_1 : i32, i32, i32, i32
  }
  func.func @transform_1(%arg0: i32) -> (i32, i32, i32, i32) {
    %c0_i32 = arith.constant 0 : i32
    %c0_i32_0 = arith.constant 0 : i32
    %c0_i32_1 = arith.constant 0 : i32
    %c0_i32_2 = arith.constant 0 : i32
    return %arg0, %c0_i32, %c0_i32_0, %c0_i32_1 : i32, i32, i32, i32
  }
  func.func @transform_2(%arg0: i32) -> (i32, i32) {
    %c0_i32 = arith.constant 0 : i32
    %c0_i32_0 = arith.constant 0 : i32
    %c0_i32_1 = arith.constant 0 : i32
    return %c0_i32, %c0_i32_0 : i32, i32
  }
  func.func @transform_3(%arg0: i32) -> (i32, i32) {
    %c0_i32 = arith.constant 0 : i32
    %c0_i32_0 = arith.constant 0 : i32
    %c0_i32_1 = arith.constant 0 : i32
    return %c0_i32, %c0_i32_0 : i32, i32
  }
  func.func @transform_4(%arg0: i32) -> (i32, i32, i32) {
    %c0_i32 = arith.constant 0 : i32
    %c0_i32_0 = arith.constant 0 : i32
    %c0_i32_1 = arith.constant 0 : i32
    %c0_i32_2 = arith.constant 0 : i32
    return %c0_i32, %c0_i32_0, %c0_i32_1 : i32, i32, i32
  }
  func.func @transform_5(%arg0: i32) -> (i32, i32) {
    %c0_i32 = arith.constant 0 : i32
    %c0_i32_0 = arith.constant 0 : i32
    %c0_i32_1 = arith.constant 0 : i32
    return %c0_i32, %c0_i32_0 : i32, i32
  }
  func.func @transform_6(%arg0: i32) -> (i32, i32, i32) {
    %c0_i32 = arith.constant 0 : i32
    %c0_i32_0 = arith.constant 0 : i32
    %c0_i32_1 = arith.constant 0 : i32
    %c0_i32_2 = arith.constant 0 : i32
    return %c0_i32, %c0_i32_0, %c0_i32_1 : i32, i32, i32
  }
  func.func @transform_7(%arg0: i32) -> (i32, i32) {
    %c0_i32 = arith.constant 0 : i32
    %c0_i32_0 = arith.constant 0 : i32
    %c0_i32_1 = arith.constant 0 : i32
    return %c0_i32, %c0_i32_0 : i32, i32
  }
  func.func @transform_8(%arg0: i32) -> (i32, i32) {
    %c0_i32 = arith.constant 0 : i32
    %c0_i32_0 = arith.constant 0 : i32
    %c0_i32_1 = arith.constant 0 : i32
    return %c0_i32, %c0_i32_0 : i32, i32
  }
  func.func @transform_9(%arg0: i32) -> (i32, i32) {
    %c0_i32 = arith.constant 0 : i32
    %c0_i32_0 = arith.constant 0 : i32
    %c0_i32_1 = arith.constant 0 : i32
    return %c0_i32, %c0_i32_0 : i32, i32
  }
  func.func @transform_10(%arg0: i32) -> (i32, i32) {
    %c0_i32 = arith.constant 0 : i32
    %c0_i32_0 = arith.constant 0 : i32
    %c0_i32_1 = arith.constant 0 : i32
    return %c0_i32, %c0_i32_0 : i32, i32
  }
  func.func @transform_11(%arg0: i32) -> (i32, i32) {
    %c0_i32 = arith.constant 0 : i32
    %c0_i32_0 = arith.constant 0 : i32
    %c0_i32_1 = arith.constant 0 : i32
    return %c0_i32, %c0_i32_0 : i32, i32
  }
  func.func @transform_12(%arg0: i32) -> (i32, i32) {
    %c0_i32 = arith.constant 0 : i32
    %c0_i32_0 = arith.constant 0 : i32
    %c0_i32_1 = arith.constant 0 : i32
    return %c0_i32, %c0_i32_0 : i32, i32
  }
  func.func @transform_13(%arg0: i32) -> (i32, i32) {
    %c0_i32 = arith.constant 0 : i32
    %c0_i32_0 = arith.constant 0 : i32
    %c0_i32_1 = arith.constant 0 : i32
    return %c0_i32, %c0_i32_0 : i32, i32
  }
  func.func @transform_14(%arg0: i32) -> (i32, i32) {
    %c0_i32 = arith.constant 0 : i32
    %c0_i32_0 = arith.constant 0 : i32
    %c0_i32_1 = arith.constant 0 : i32
    return %c0_i32, %c0_i32_0 : i32, i32
  }
  func.func @transform_15(%arg0: i32) -> (i32, i32) {
    %c0_i32 = arith.constant 0 : i32
    %c0_i32_0 = arith.constant 0 : i32
    %c0_i32_1 = arith.constant 0 : i32
    return %c0_i32, %c0_i32_0 : i32, i32
  }
  func.func @transform_16(%arg0: i32) -> (i32, i32, i32) {
    %c0_i32 = arith.constant 0 : i32
    %c0_i32_0 = arith.constant 0 : i32
    %c0_i32_1 = arith.constant 0 : i32
    return %arg0, %c0_i32, %c0_i32_0 : i32, i32, i32
  }
}

module attributes {stable_mosaic.version = 11 : i64} {
  func.func @_final_kernel(%arg0: i32, %arg1: i32, %arg2: memref<1x8x256xf32, #tpu.memory_space<vmem>>, %arg3: memref<1x256x64xbf16, #tpu.memory_space<vmem>>, %arg4: memref<2x64xf32, #tpu.memory_space<vmem>>, %arg5: memref<2x1xf32, #tpu.memory_space<vmem>>, %arg6: memref<1x2x8xf32, #tpu.memory_space<vmem>>) attributes {dimension_semantics = [#tpu.dimension_semantics<parallel>, #tpu.dimension_semantics<parallel>], iteration_bounds = array<i64: 2, 1>, scalar_prefetch = 0 : i64, scratch_operands = 0 : i64, tpu.core_type = #tpu.core_type<tc>, window_params = [{transform_indices = @transform_0, window_bounds = array<i64: 1, 8, 256>}, {transform_indices = @transform_1, window_bounds = array<i64: 1, 256, 64>}, {pipeline_mode = #tpu.pipeline_mode<synchronous>, transform_indices = @transform_2, window_bounds = array<i64: 2, 64>}, {pipeline_mode = #tpu.pipeline_mode<synchronous>, transform_indices = @transform_3, window_bounds = array<i64: 2, 1>}, {transform_indices = @transform_4, window_bounds = array<i64: 1, 2, 8>}]} {
    %c0 = arith.constant 0 : index
    %c0_0 = arith.constant 0 : index
    %c0_1 = arith.constant 0 : index
    %0 = vector.load %arg2[%c0, %c0_0, %c0_1] : memref<1x8x256xf32, #tpu.memory_space<vmem>>, vector<1x8x256xf32>
    %1 = vector.shape_cast %0 : vector<1x8x256xf32> to vector<8x256xf32>
    %2 = arith.mulf %1, %1 : vector<8x256xf32>
    %cst = arith.constant dense<0x7F800000> : vector<8xf32>
    %3 = vector.multi_reduction <minimumf>, %2, %cst [1] : vector<8x256xf32> to vector<8xf32>
    %4 = vector.shape_cast %3 : vector<8xf32> to vector<8x1xf32>
    %5 = vector.broadcast %4 : vector<8x1xf32> to vector<8x256xf32>
    %6 = arith.subf %5, %2 : vector<8x256xf32>
    %cst_2 = arith.constant 5.000000e+01 : f32
    %7 = vector.broadcast %cst_2 : f32 to vector<8x256xf32>
    %8 = arith.mulf %6, %7 : vector<8x256xf32>
    %9 = math.exp %8 : vector<8x256xf32>
    %cst_3 = arith.constant dense<0.000000e+00> : vector<8xf32>
    %10 = vector.multi_reduction <add>, %9, %cst_3 [1] : vector<8x256xf32> to vector<8xf32>
    %11 = vector.shape_cast %10 : vector<8xf32> to vector<8x1xf32>
    %12 = arith.truncf %9 : vector<8x256xf32> to vector<8x256xbf16>
    %c0_4 = arith.constant 0 : index
    %c0_5 = arith.constant 0 : index
    %c0_6 = arith.constant 0 : index
    %13 = vector.load %arg3[%c0_4, %c0_5, %c0_6] : memref<1x256x64xbf16, #tpu.memory_space<vmem>>, vector<1x256x64xbf16>
    %14 = vector.shape_cast %13 : vector<1x256x64xbf16> to vector<256x64xbf16>
    %cst_7 = arith.constant dense<0.000000e+00> : vector<8x64xf32>
    %15 = tpu.matmul %12, %14, %cst_7 {dimension_numbers = #tpu.dot_dimension_numbers<[1], [0], [0], [1], [0, 0, 1, 1], [], []>} : vector<8x256xbf16>, vector<256x64xbf16>, vector<8x64xf32> -> vector<8x64xf32>
    %16 = tpu.reciprocal %11 {approx = true} : vector<8x1xf32> -> vector<8x1xf32>
    %17 = vector.broadcast %16 : vector<8x1xf32> to vector<8x64xf32>
    %18 = arith.mulf %15, %17 : vector<8x64xf32>
    %19 = tpu.transpose %18, [1, 0] : vector<8x64xf32> -> vector<64x8xf32>
    %c0_8 = arith.constant 0 : index
    %c0_9 = arith.constant 0 : index
    %20 = vector.load %arg4[%c0_8, %c0_9] : memref<2x64xf32, #tpu.memory_space<vmem>>, vector<2x64xf32>
    %cst_10 = arith.constant dense<0.000000e+00> : vector<2x8xf32>
    %21 = tpu.matmul %20, %19, %cst_10 {dimension_numbers = #tpu.dot_dimension_numbers<[1], [0], [0], [1], [0, 0, 1, 1], [], []>} : vector<2x64xf32>, vector<64x8xf32>, vector<2x8xf32> -> vector<2x8xf32>
    %c0_11 = arith.constant 0 : index
    %c0_12 = arith.constant 0 : index
    %22 = vector.load %arg5[%c0_11, %c0_12] : memref<2x1xf32, #tpu.memory_space<vmem>>, vector<2x1xf32>
    %23 = vector.broadcast %22 : vector<2x1xf32> to vector<2x8xf32>
    %24 = arith.addf %21, %23 : vector<2x8xf32>
    %cst_13 = arith.constant 0.000000e+00 : f32
    %25 = vector.broadcast %cst_13 : f32 to vector<2x8xf32>
    %26 = arith.maximumf %24, %25 : vector<2x8xf32>
    %27 = math.absf %24 : vector<2x8xf32>
    %cst_14 = arith.constant 0.000000e+00 : f32
    %28 = vector.broadcast %cst_14 : f32 to vector<2x8xf32>
    %29 = arith.subf %28, %27 : vector<2x8xf32>
    %30 = math.exp %29 : vector<2x8xf32>
    %cst_15 = arith.constant 1.000000e+00 : f32
    %31 = vector.broadcast %cst_15 : f32 to vector<2x8xf32>
    %32 = arith.addf %31, %30 : vector<2x8xf32>
    %33 = math.log %32 : vector<2x8xf32>
    %34 = arith.addf %26, %33 : vector<2x8xf32>
    %35 = tpu.iota {dimensions = array<i32: 0>} : vector<2x8xi32>
    %c0_i32 = arith.constant 0 : i32
    %36 = vector.broadcast %c0_i32 : i32 to vector<2x8xi32>
    %37 = arith.cmpi eq, %35, %36 : vector<2x8xi32>
    %38 = arith.select %37, %24, %34 : vector<2x8xi1>, vector<2x8xf32>
    %c0_16 = arith.constant 0 : index
    %c0_17 = arith.constant 0 : index
    %c0_18 = arith.constant 0 : index
    %39 = vector.load %arg6[%c0_16, %c0_17, %c0_18] : memref<1x2x8xf32, #tpu.memory_space<vmem>>, vector<1x2x8xf32>
    %40 = vector.shape_cast %39 : vector<1x2x8xf32> to vector<2x8xf32>
    %41 = vector.shape_cast %38 : vector<2x8xf32> to vector<1x2x8xf32>
    tpu.vector_store %arg6[%c0_16, %c0_17, %c0_18], %41 {strides = array<i32>} : memref<1x2x8xf32, #tpu.memory_space<vmem>>, vector<1x2x8xf32>,
    return
  }
  func.func @transform_0(%arg0: i32, %arg1: i32) -> (i32, i32, i32) {
    %c0_i32 = arith.constant 0 : i32
    %c0_i32_0 = arith.constant 0 : i32
    return %arg0, %arg1, %c0_i32 : i32, i32, i32
  }
  func.func @transform_1(%arg0: i32, %arg1: i32) -> (i32, i32, i32) {
    %c0_i32 = arith.constant 0 : i32
    %c0_i32_0 = arith.constant 0 : i32
    %c0_i32_1 = arith.constant 0 : i32
    return %arg0, %c0_i32, %c0_i32_0 : i32, i32, i32
  }
  func.func @transform_2(%arg0: i32, %arg1: i32) -> (i32, i32) {
    %c0_i32 = arith.constant 0 : i32
    %c0_i32_0 = arith.constant 0 : i32
    %c0_i32_1 = arith.constant 0 : i32
    return %c0_i32, %c0_i32_0 : i32, i32
  }
  func.func @transform_3(%arg0: i32, %arg1: i32) -> (i32, i32) {
    %c0_i32 = arith.constant 0 : i32
    %c0_i32_0 = arith.constant 0 : i32
    %c0_i32_1 = arith.constant 0 : i32
    return %c0_i32, %c0_i32_0 : i32, i32
  }
  func.func @transform_4(%arg0: i32, %arg1: i32) -> (i32, i32, i32) {
    %c0_i32 = arith.constant 0 : i32
    %c0_i32_0 = arith.constant 0 : i32
    return %arg0, %c0_i32, %arg1 : i32, i32, i32
  }
}

</mosaic_0001>

<bundles_post_ra>
// kernel: _lambda_.3
= control target key start
LH: loop header
LB: loop body
LE: loop exit
PB: predicated region body
PF: predicated region fallthrough
CT: control target
= control target key end

     0   :  { %s1475_s0 = inlined_call_operand.hbm [shape: f32[2,8,256], index: 0, kind: input, shape index: {}]   ;;  %s1476_s1 = inlined_call_operand.hbm [shape: bf16[2,256,64], index: 1, kind: input, shape index: {}]   ;;  %s1477_s2 = inlined_call_operand.hbm [shape: f32[2,64], index: 2, kind: input, shape index: {}]   ;;  %s1478_s3 = inlined_call_operand.hbm [shape: f32[2,1], index: 3, kind: input, shape index: {}]   ;;  %s1479_s4 = inlined_call_operand.hbm [shape: f32[2,2,8], index: 4, kind: output, shape index: {}]  }
   0x1   :  { %1483 = sst [smem:[#allocation16_spill]] %s1475_s0 }
   0x2   :  { %1484 = sst [smem:[#allocation17_spill]] %s1477_s2 }
   0x3   :  { %9 = vsyncpa [#allocation3], 0 }
   0x4   :  { %11 = vsyncpa [#allocation3 + $0x1], 0 }
   0x5   :  { %12 = vsyncpa [#allocation6], 0 }
   0x6   :  { %14 = vsyncpa [#allocation6 + $0x1], 0 }
   0x7   :  { %15 = vsyncpa [#allocation9], 0 }
   0x8   :  { %16 = vsyncpa [#allocation4], 0 }
   0x9   :  { %18 = vsyncpa [#allocation4 + $0x1], 0  ;;  %s1165_s15 = smov 0   ;;  %s1167_s16 = smov 0  }
   0xa   :  { %s1169_s17 = smov 0   ;;  %s1171_s18 = smov 0  }
   0xb   :  { %s1173_s19 = smov 0   ;;  %s1175_s20 = smov 0  }
   0xc LB: > { %s1196_s21 = sadd.s32 4294967295, %s1128_s20   ;;  %s727_s22 = sadd.s32 4294967294, %s1128_s20   ;;  %s1128_s20 = sphi %s1175_s20, %s24_s20   ;;  %s1124_s19 = sphi %s1173_s19, %s1506_s19   ;;  %s1120_s18 = sphi %s1171_s18, %s1505_s18   ;;  %s1116_s17 = sphi %s1169_s17, %s1504_s17   ;;  %s1112_s16 = sphi %s1167_s16, %s1503_s16   ;;  %s1108_s15 = sphi %s1165_s15, %s1502_s15  }
   0xd   : > { %p58_p0 = scmp.ne.s32.totalorder %s1112_s16, %s1108_s15  ;;  %p1480_p1 = scmp.eq.s32.totalorder %s1196_s21, 0 }
   0xe   : > { %p158_p3 = scmp.eq.s32.totalorder %s727_s22, 1  ;;  %p728_p5 = scmp.ge.s32.totalorder %s1128_s20, 1 }
   0xf   : > { %p1205_p4 = por %p1480_p1, %p58_p0  ;;  %p165_p7 = scmp.lt.s32.totalorder %s1128_s20, 3 }
  0x10   : > { %p1210_p6 = por %p158_p3, %p58_p0  ;;  %s1130_s26 = smov [#allocation7]  }
  0x11   : > { %s1485_s23 = scalar_select %p1205_p4, 1, 0 }
  0x12   : > { %s1486_s24 = scalar_select %p1210_p6, 1, 0 }
  0x13   : > { %p1215_p8 = pnand %p728_p5, %p165_p7  ;;  %s178_s27 = sshll.u32 %s1130_s26, 4  ;;  %s179_s27 = int_to_ptr.vmem [resolvable:$true] %s178_s27 }
  0x14   : > { %s1131_s28 = smov [#allocation8]   ;;  %s1489_s2 = sld [smem:[#allocation17_spill]] }
  0x15   : > { %s1487_s25 = scalar_select %p1215_p8, 1, 0 }
  0x16   : > { %p811_p10 = pneg %p1215_p8  ;;  %s189_s29 = sshll.u32 %s1131_s28, 4  ;;  %s1228_s29 = int_to_ptr.vmem [resolvable:$true] %s189_s29 }
  0x18   : > { %p1224_p11 = pnand %p811_p10, %p1480_p1 }
  0x1a   : > { %s918_s7 = scalar_lea.hbm %s1489_s2, 32  ;;  %p920_p13 = pneg %p1224_p11 }
  0x1b   : > { %p919_p12 = scmp.ne.s32.totalorder %s1489_s2, %s918_s7  ;;  %p925_p5 = scmp.lt.u32.totalorder %s918_s7, %s1489_s2 }
  0x1d   : > { %p921_p0 = pnand %p920_p13, %p919_p12 }
  0x1f   : > { %p922_p3 = pneg %p921_p0 }
  0x21   : > { %p927_p7 = pnand %p925_p5, %p922_p3 }
  0x23   : > { %930 = shalt.err (!%p927_p7)
}
  0x24   : > { %s931_s12 = scalar_lea.vmem %s179_s27, 32  ;;  %p939_p2 = scmp.lt.s32.totalorder %s179_s27, %s179_s27 }
  0x25   : > { %p932_p10 = scmp.ne.s32.totalorder %s179_s27, %s931_s12  ;;  %p940_p6 = scmp.lt.s32.totalorder %s931_s12, %s931_s12 }
  0x27   : > { %p934_p9 = pnand %p932_p10, %p920_p13  ;;  %p941_p4 = por %p940_p6, %p939_p2 }
  0x29   : > { %p935_p1 = pneg %p934_p9 }
  0x2b   : > { %p942_p8 = pnand %p941_p4, %p935_p1 }
  0x2d   : > { %945 = shalt.err (!%p942_p8)
}
  0x2e   : > { %814 = dma.hbm_to_vmem [thread:$0]  (!%p1224_p11), %s1489_s2, 32, %s179_s27, [#allocation6]  }
  0x2f   : > { %s946_s28 = scalar_lea.hbm %s1478_s3, 32 }
  0x30   : > { %p947_p9 = scmp.ne.s32.totalorder %s1478_s3, %s946_s28  ;;  %p953_p4 = scmp.lt.u32.totalorder %s946_s28, %s1478_s3 }
  0x32   : > { %p949_p2 = pnand %p947_p9, %p920_p13 }
  0x34   : > { %p950_p1 = pneg %p949_p2 }
  0x36   : > { %p955_p6 = pnand %p953_p4, %p950_p1 }
  0x38   : > { %958 = shalt.err (!%p955_p6)
}
  0x39   : > { %s959_s27 = scalar_lea.vmem %s1228_s29, 32  ;;  %p967_p3 = scmp.lt.s32.totalorder %s1228_s29, %s1228_s29 }
  0x3a   : > { %p960_p8 = scmp.ne.s32.totalorder %s1228_s29, %s959_s27  ;;  %p968_p5 = scmp.lt.s32.totalorder %s959_s27, %s959_s27 }
  0x3c   : > { %p962_p12 = pnand %p960_p8, %p920_p13  ;;  %p969_p7 = por %p968_p5, %p967_p3 }
  0x3e   : > { %p963_p0 = pneg %p962_p12 }
  0x40   : > { %p970_p10 = pnand %p969_p7, %p963_p0 }
  0x42   : > { %973 = shalt.err (!%p970_p10)
}
  0x43   : > { %817 = dma.hbm_to_vmem [thread:$0]  (!%p1224_p11), %s1478_s3, 32, %s1228_s29, [#allocation9]  }
  0x44   : > { %s36_s11 = sadd.s32 1, %s1124_s19  ;;  %s45_s12 = sadd.s32 1, %s1116_s17 }
  0x45   : > { %p38_p13 = scmp.ge.s32.totalorder %s36_s11, 2  ;;  %p52_p9 = scmp.ne.s32.totalorder %s1116_s17, %s1112_s16 }
  0x46   : > { %p53_p2 = scmp.eq.s32.totalorder %s1128_s20, 0  ;;  %p831_p1 = scmp.lt.s32.totalorder %s1128_s20, 2 }
  0x47   : > { %s1508_s11 = smov (%p38_p13, %s36_s11), 0  ;;  %p1490_p6 = scmp.eq.s32.totalorder %s1196_s21, 1 }
  0x48   : > { %p54_p4 = por %p53_p2, %p52_p9  ;;  %s40_s13 = ssub.s32 %s1124_s19, %s1508_s11 }
  0x49   : > { %p1287_p8 = por %p1490_p6, %p52_p9  ;;  %s1294_s14 = sand.u32 1, %s1116_s17  }
  0x4a   : > { %p43_p11 = scmp.eq.s32.totalorder %s40_s13, 0  ;;  %s732_s29 = sshll.u32 %s1294_s14, 4 }
  0x4b   : > { %s766_s22 = sshll.u32 %s1124_s19, 8  ;;  %s1492_s0 = sld [smem:[#allocation16_spill]] }
  0x4c   : > { %s1299_s26 = scalar_select %p43_p11, %s1116_s17, %s45_s12  }
  0x4d   : > { %s204_s7 = scalar_lea.vmem [#allocation2], %s732_s29  ;;  %p1308_p12 = pnand %p831_p1, %p54_p4 }
  0x4e   : > { %s214_s8 = sshll.u32 %s204_s7, 4  ;;  %s735_s9 = sshll.u32 %s1294_s14, 7  ;;  %s1312_s8 = int_to_ptr.vmem [resolvable:$true] %s214_s8 }
  0x4f   : > { %s201_s10 = scalar_lea.sflag [#allocation3], %s1294_s14  ;;  %p976_p3 = pneg %p1308_p12 }
  0x51   : > { %s1304_s6 = scalar_lea.hbm %s1492_s0, %s766_s22  ;;  %s979_s22 = scalar_lea.hbm %s1492_s0, 512 }
  0x52   : > { %s974_s12 = scalar_lea.hbm %s1304_s6, 256  ;;  %p980_p10 = scmp.lt.u32.totalorder %s1304_s6, %s1492_s0 }
  0x53   : > { %p975_p0 = scmp.ne.s32.totalorder %s1304_s6, %s974_s12  ;;  %p981_p13 = scmp.lt.u32.totalorder %s979_s22, %s974_s12 }
  0x54   : > { %p983_p2 = scmp.lt.u32.totalorder %s974_s12, %s1304_s6 }
  0x55   : > { %p977_p5 = pnand %p976_p3, %p975_p0  ;;  %p982_p9 = por %p981_p13, %p980_p10 }
  0x57   : > { %p978_p7 = pneg %p977_p5  ;;  %p984_p1 = por %p983_p2, %p982_p9 }
  0x59   : > { %p985_p4 = pnand %p984_p1, %p978_p7 }
  0x5b   : > { %988 = shalt.err (!%p985_p4)
}
  0x5c   : > { %s989_s7 = scalar_lea.vmem %s1312_s8, 256  ;;  %s1132_s13 = smov [#allocation2]  }
  0x5d   : > { %p990_p6 = scmp.ne.s32.totalorder %s1312_s8, %s989_s7  ;;  %s994_s29 = sshll.u32 %s1132_s13, 4  ;;  %s995_s29 = int_to_ptr.vmem [resolvable:$false] %s994_s29 }
  0x5e   : > { %s996_s28 = scalar_lea.vmem %s995_s29, 512  ;;  %p997_p5 = scmp.lt.s32.totalorder %s1312_s8, %s995_s29 }
  0x5f   : > { %p992_p11 = pnand %p990_p6, %p976_p3  ;;  %p998_p10 = scmp.lt.s32.totalorder %s996_s28, %s989_s7 }
  0x61   : > { %p993_p0 = pneg %p992_p11  ;;  %p999_p13 = por %p998_p10, %p997_p5 }
  0x63   : > { %p1000_p9 = pnand %p999_p13, %p993_p0 }
  0x65   : > { %1003 = shalt.err (!%p1000_p9)
}
  0x66   : > { %821 = dma.hbm_to_vmem [thread:$0]  (!%p1308_p12), %s1304_s6, 256, %s1312_s8, %s201_s10  }
  0x67   : > { %s767_s12 = sshll.u32 %s1124_s19, 11  ;;  %s225_s22 = scalar_lea.vmem [#allocation5], %s735_s9 }
  0x68   : > { %s232_s5 = sshll.u32 %s225_s22, 4  ;;  %s221_s13 = sand.u32 1, %s1128_s20   ;;  %s1344_s5 = int_to_ptr.vmem [resolvable:$true] %s232_s5 }
  0x69   : > { %s1350_s28 = scalar_lea.hbm %s1476_s1, %s767_s12  ;;  %s1352_s0 = scalar_lea.sflag [#allocation6], %s221_s13 }
  0x6a   : > { %s1004_s2 = scalar_lea.hbm %s1350_s28, 2048  ;;  %s1009_s8 = scalar_lea.hbm %s1476_s1, 4096 }
  0x6b   : > { %p1005_p7 = scmp.ne.s32.totalorder %s1350_s28, %s1004_s2  ;;  %p1010_p4 = scmp.lt.u32.totalorder %s1350_s28, %s1476_s1 }
  0x6c   : > { %p1011_p6 = scmp.lt.u32.totalorder %s1009_s8, %s1004_s2  ;;  %p1013_p0 = scmp.lt.u32.totalorder %s1004_s2, %s1350_s28 }
  0x6d   : > { %p1007_p2 = pnand %p1005_p7, %p976_p3 }
  0x6e   : > { %p1012_p11 = por %p1011_p6, %p1010_p4 }
  0x6f   : > { %p1008_p1 = pneg %p1007_p2 }
  0x70   : > { %p1014_p5 = por %p1013_p0, %p1012_p11 }
  0x72   : > { %p1015_p10 = pnand %p1014_p5, %p1008_p1 }
  0x74   : > { %1018 = shalt.err (!%p1015_p10)
}
  0x75   : > { %s1019_s12 = scalar_lea.vmem %s1344_s5, 2048  ;;  %s1133_s22 = smov [#allocation5]  }
  0x76   : > { %p1020_p13 = scmp.ne.s32.totalorder %s1344_s5, %s1019_s12  ;;  %s1024_s13 = sshll.u32 %s1133_s22, 4  ;;  %s1025_s13 = int_to_ptr.vmem [resolvable:$false] %s1024_s13 }
  0x77   : > { %s1026_s7 = scalar_lea.vmem %s1025_s13, 4096  ;;  %p1027_p2 = scmp.lt.s32.totalorder %s1344_s5, %s1025_s13 }
  0x78   : > { %p1022_p9 = pnand %p1020_p13, %p976_p3  ;;  %p1028_p4 = scmp.lt.s32.totalorder %s1026_s7, %s1019_s12 }
  0x7a   : > { %p1023_p7 = pneg %p1022_p9  ;;  %p1029_p6 = por %p1028_p4, %p1027_p2 }
  0x7c   : > { %p1030_p11 = pnand %p1029_p6, %p1023_p7 }
  0x7e   : > { %1033 = shalt.err (!%p1030_p11)
}
  0x7f   : > { %s1134_s2 = smov 64   ;;  %s1135_s29 = smov 4  }
  0x80   : > { %824 = dma.hbm_to_vmem [thread:$0]  (!%p1308_p12), %s1350_s28, 2048, %s1344_s5, %s1352_s0, %s1134_s2, %s1134_s2, %s1135_s29  }
  0x81   : > { %p1494_p3 = scmp.ne.s32.totalorder %s1487_s25, 0 }
  0x82   : > { %s1381_s14 = sand.u32 (!%p1494_p3), 1, %s1112_s16   ;;  %p1495_p1 = scmp.ne.s32.totalorder (!%p1494_p3), %s1485_s23, 0 }
  0x83   : > { %244 = sbr.rel (%p1494_p3) target bundleno = 800 (0x320), region = 36  ;;  %s739_s6 = sshll.u32 (!%p1494_p3), %s1381_s14, 4 }
  0x84   : > { %s247_s8 = scalar_lea.sflag (!%p1494_p3), [#allocation3], %s1381_s14  ;;  %s250_s9 = scalar_lea.vmem (!%p1494_p3), [#allocation2], %s739_s6 }
  0x8a   : > { %1087 = dma.done.wait (%p1495_p1), %s247_s8, 256  }
  0x8b   : > { %1089 = vsyncadd (%p1495_p1), %s247_s8, 4294967040  ;;  %s255_s0 = sand.u32 1, %s1196_s21   ;;  %s740_s25 = sshll.u32 %s1381_s14, 7 }
  0x8c   : > { %s256_s27 = scalar_lea.sflag [#allocation6], %s255_s0  ;;  %s1391_s5 = scalar_lea.vmem [#allocation5], %s740_s25 }
  0x8d   : > { %1091 = dma.done.wait (%p1495_p1), %s256_s27, 2048  }
  0x8e   : > { %1093 = vsyncadd (%p1495_p1), %s256_s27, 4294965248  ;;  %p1496_p12 = scmp.eq.s32.totalorder %s1196_s21, 0 }
  0x90   : > { %1095 = dma.done.wait (%p1496_p12), [#allocation6], 32   ;;  %p1497_p0 = pmov %p1496_p12 }
  0x92   : > { %1097 = vsyncadd (%p1497_p0), [#allocation6], 4294967264  ;;  %p1498_p5 = pmov %p1497_p0 }
  0x93   : > { %p1499_p10 = pmov %p1497_p0 }
  0x94   : > { %1099 = dma.done.wait (%p1498_p5), [#allocation9], 32  }
  0x95   : > { %1101 = vsyncadd (%p1499_p10), [#allocation9], 4294967264  ;;  %v298_v0 = vld [vmem:[%s250_s9] sm:$0xff]  ;;  %v299_v1 = vld [vmem:[%s250_s9 + $0x8] sm:$0xff]  ;;  %v1136_v33 = vmov 0.0   ;;  %vm1137_vm0 = vmmov 0   ;;  %v581_v54 = vlaneseq }
  0x96   : > { %v300_v2 = vmul.f32 %v298_v0, %v298_v0  ;;  %v301_v3 = vmul.f32 %v299_v1, %v299_v1  ;;  %v892_v4 = vld [vmem:[%s1391_s5 + $0x40] sm:$0xff]   ;;  %v894_v7 = vld [vmem:[%s1391_s5 + $0x48] sm:$0xff]   ;;  %v896_v9 = vld [vmem:[%s1391_s5 + $0x50] sm:$0xff]   ;;  %792 = vmatprep.subr.mxu1 %v1136_v33  ;;  %794 = vmatprep.mubr.msk.f32.mxu1 %vm1137_vm0, %v1136_v33  ;;  %v1138_v35 = vmov 0   ;;  %vm495_vm1 = vcmask 523264   ;;  %s743_s21 = sshll.u32 %s1381_s14, 1 }
  0x97   : > { %v893_v5 = vld [vmem:[%s1391_s5] sm:$0xff]   ;;  %768 = vmatprep.subr.bf16.mxu0 %v892_v4  ;;  %v895_v8 = vld [vmem:[%s1391_s5 + $0x8] sm:$0xff]   ;;  %v897_v10 = vld [vmem:[%s1391_s5 + $0x10] sm:$0xff]   ;;  %890 = vset.pattern.permute.xlu1 %v1138_v35  ;;  %v582_v55 = vshrl.u32 %v581_v54, 7  ;;  %s763_s23 = sshll.u32 %s1120_s18, 5  ;;  %s296_s28 = scalar_lea.vmem [#allocation10], %s743_s21 }
  0x98   : > { %v302_v6 = vmin.f32 %v300_v2, %v301_v3  ;;  %769 = vmatpush3.bf16.msra.mxu0 %v893_v5  ;;  %v898_v11 = vld [vmem:[%s1391_s5 + $0x58] sm:$0xff]   ;;  %v900_v13 = vld [vmem:[%s1391_s5 + $0x60] sm:$0xff]   ;;  %v902_v15 = vld [vmem:[%s1391_s5 + $0x68] sm:$0xff]   ;;  %891 = vset.pattern.permute.xlu0 %v1138_v35  ;;  %s602_s10 = sshll.u32 %s296_s28, 4  ;;  %vm585_vm3 = vcmask 58368   ;;  %s1426_s13 = scalar_lea.hbm %s1479_s4, %s763_s23  ;;  %s1428_s10 = int_to_ptr.vmem [resolvable:$true] %s602_s10 }
  0x99   : > { %770 = vmatprep.subr.bf16.mxu0 %v894_v7  ;;  %v899_v12 = vld [vmem:[%s1391_s5 + $0x18] sm:$0xff]   ;;  %v901_v14 = vld [vmem:[%s1391_s5 + $0x20] sm:$0xff]   ;;  %v903_v16 = vld [vmem:[%s1391_s5 + $0x28] sm:$0xff]   ;;  %vm583_vm2 = vcmp.eq.s32.totalorder %v582_v55, 0  ;;  %s588_s7 = scalar_lea.sflag [#allocation4], %s1381_s14  ;;  %s1034_s2 = scalar_lea.vmem %s1428_s10, 32 }
  0x9a   : > { %303 = vmin.xlane.f32.xlu0 %v302_v6  ;;  %v904_v17 = vld [vmem:[%s1391_s5 + $0x70] sm:$0xff]   ;;  %v906_v19 = vld [vmem:[%s1391_s5 + $0x78] sm:$0xff]   ;;  %v489_v34 = vld [vmem:[#allocation8] sm:$0x3]  ;;  %p1035_p13 = scmp.ne.s32.totalorder %s1428_s10, %s1034_s2  ;;  %s1139_s18 = smov [#allocation10]  }
  0x9b   : > { %v905_v18 = vld [vmem:[%s1391_s5 + $0x30] sm:$0xff]   ;;  %v907_v20 = vld [vmem:[%s1391_s5 + $0x38] sm:$0xff]   ;;  %492 = vperm.xlu1 %890, %v489_v34   ;;  %v488_v44 = vld [vmem:[#allocation7] sm:$0x3]  ;;  %s1038_s29 = sshll.u32 %s1139_s18, 4  ;;  %s1039_s29 = int_to_ptr.vmem [resolvable:$false] %s1038_s29 }
  0x9c   : > { %771 = vmatpush3.bf16.msra.mxu0 %v895_v8  ;;  %p1036_p9 = pnand %p1035_p13, %p1287_p8  ;;  %s1040_s6 = scalar_lea.vmem %s1039_s29, 64 }
  0x9d   : > { %772 = vmatprep.subr.bf16.mxu0 %v896_v9  ;;  %p1041_p2 = scmp.lt.s32.totalorder %s1428_s10, %s1039_s29  ;;  %p1042_p4 = scmp.lt.s32.totalorder %s1040_s6, %s1034_s2 }
  0x9e   : > { %p1037_p7 = pneg %p1036_p9 }
  0x9f   : > { %p1043_p6 = por %p1042_p4, %p1041_p2 }
  0xa0   : > { %773 = vmatpush3.bf16.msra.mxu0 %v897_v10 }
  0xa1   : > { %774 = vmatprep.subr.bf16.mxu0 %v898_v11  ;;  %p1044_p11 = pnand %p1043_p6, %p1037_p7 }
  0xa4   : > { %775 = vmatpush3.bf16.msra.mxu0 %v899_v12 }
  0xa5   : > { %776 = vmatprep.subr.bf16.mxu0 %v900_v13 }
  0xa8   : > { %777 = vmatpush3.bf16.msra.mxu0 %v901_v14 }
  0xa9   : > { %778 = vmatprep.subr.bf16.mxu0 %v902_v15 }
  0xac   : > { %779 = vmatpush3.bf16.msra.mxu0 %v903_v16 }
  0xad   : > { %780 = vmatprep.subr.bf16.mxu0 %v904_v17 }
  0xb0   : > { %781 = vmatpush3.bf16.msra.mxu0 %v905_v18 }
  0xb1   : > { %782 = vmatprep.subr.bf16.mxu0 %v906_v19 }
  0xb4   : > { %783 = vmatpush3.bf16.msra.mxu0 %v907_v20 }
 0x11a   : > { %v493_v45 = vpop.permute.xlu1 %492 }
 0x127   : > { %v304_v21 = vpop.xlane.xlu0 %303 }
 0x128   : > { %v305_v22 = vsub.f32 %v304_v21, %v300_v2  ;;  %v306_v23 = vsub.f32 %v304_v21, %v301_v3 }
 0x12a   : > { %v307_v24 = vmul.f32 50.0, %v305_v22  ;;  %v308_v25 = vmul.f32 50.0, %v306_v23 }
 0x12c   : > { %v309_v26 = vmul.f32 1.442695, %v307_v24  ;;  %v311_v27 = vmul.f32 1.442695, %v308_v25 }
 0x12e   : > { %908 = vpow2.f32 %v309_v26 }
 0x12f   : > { %910 = vpow2.f32 %v311_v27 }
 0x138   : > { %v909_v28 = vpop.eup %908 }
 0x139   : > { %v911_v29 = vpop.eup %910  ;;  %v316_v30 = vpack.c.bf16 %v909_v28, %v909_v28 }
 0x13a   : > { %v317_v31 = vpack.c.bf16 %v911_v29, %v911_v29  ;;  %v313_v32 = vadd.f32 %v911_v29, %v909_v28 }
 0x13c   : > { %478 = vmatprep.mubr.bf16.mxu0 %v317_v31  ;;  %314 = vadd.xlane.f32.xlu0 %v313_v32 }
 0x13d   : > { %479 = vmatmul.mubr.bf16.vlgmr.msra.gmra.mrb[0].mxu0 %v316_v30 }
 0x1c9   : > { %v315_v36 = vpop.xlane.xlu0 %314 }
 0x1ca   : > { %912 = vrcp.f32 %v315_v36 }
 0x1d4   : > { %v913_v41 = vpop.eup %912 }
 0x210   : > { %v784_v37 = vpop.f32.mrb[0].mxu0 }
 0x211   : > { %v785_v38 = vpop.f32.mrb[1].mxu0 }
 0x212   : > { %v786_v39 = vadd.f32 %v785_v38, %v784_v37  ;;  %v787_v40 = vpop.f32.mrb[2].mxu0 }
 0x213   : > { %v788_v42 = vpop.f32.mrb[3].mxu0 }
 0x214   : > { %v487_v43 = vmul.f32 %v913_v41, %v786_v39 }
 0x216   : > { %793 = vmatpush3.xpose.msk.msra.mxu1 %vm495_vm1, %v487_v43 }
 0x219   : > { %795 = vmatmul.mubr.msk.f32.vlgmr.msra.gmra.mrb[0].mxu1 %vm495_vm1, %v488_v44 }
 0x2ec   : > { %v568_v46 = vpop.f32.mrb[0].mxu1 }
 0x2ed   : > { %v569_v47 = vadd.f32 %v568_v46, %v493_v45  ;;  %v796_v48 = vpop.f32.mrb[1].mxu1 }
 0x2ef   : > { %v573_v49 = vand.u32 2147483647, %v569_v47  ;;  %v572_v57 = vmax.f32 %v569_v47, 0.0 }
 0x2f1   : > { %v574_v50 = vsub.f32 0.0, %v573_v49 }
 0x2f3   : > { %v575_v51 = vmul.f32 1.442695, %v574_v50 }
 0x2f5   : > { %914 = vpow2.f32 %v575_v51 }
 0x2ff   : > { %v915_v52 = vpop.eup %914 }
 0x300   : > { %v577_v53 = vadd.f32 1.0, %v915_v52 }
 0x302   : > { %916 = vlog2.f32 %v577_v53 }
 0x30c   : > { %v917_v56 = vpop.eup %916 }
 0x30d   : > { %v579_v58 = vmul.f32 0.6931472, %v917_v56 }
 0x30f   : > { %v580_v59 = vadd.f32 %v579_v58, %v572_v57 }
 0x311   : > { %v584_v60 = vsel %vm583_vm2, %v569_v47, %v580_v59 }
 0x312   : > { %586 = vst.msk [vmem:[%s296_s28] sm:$0x3] %vm585_vm3, %v584_v60 }
 0x313   : > { %1047 = shalt.err (!%p1044_p11)
}
 0x314   : > { %s1048_s14 = scalar_lea.hbm %s1426_s13, 32  ;;  %s1052_s0 = scalar_lea.hbm %s1479_s4, 64 }
 0x315   : > { %p1049_p3 = scmp.ne.s32.totalorder %s1426_s13, %s1048_s14  ;;  %p1053_p0 = scmp.lt.u32.totalorder %s1426_s13, %s1479_s4 }
 0x316   : > { %p1054_p5 = scmp.lt.u32.totalorder %s1052_s0, %s1048_s14  ;;  %p1056_p13 = scmp.lt.u32.totalorder %s1048_s14, %s1426_s13 }
 0x317   : > { %p1050_p1 = pnand %p1049_p3, %p1287_p8 }
 0x318   : > { %p1055_p10 = por %p1054_p5, %p1053_p0 }
 0x319   : > { %p1051_p12 = pneg %p1050_p1 }
 0x31a   : > { %p1057_p9 = por %p1056_p13, %p1055_p10 }
 0x31c   : > { %p1058_p7 = pnand %p1057_p9, %p1051_p12 }
 0x31e   : > { %1061 = shalt.err (!%p1058_p7)
}
 0x31f   : > { %809 = dma.vmem_to_hbm [thread:$0]  (%p1287_p8), %s1428_s10, 32, %s1426_s13, %s588_s7  }
 0x320 PF: > { %s614_s5 = sand.u32 1, %s1108_s15   ;;  %p1500_p2 = scmp.ne.s32.totalorder %s1486_s24, 0 }
 0x321   : > { %p1501_p4 = scmp.ge.s32.totalorder %s1128_s20, 2  ;;  %s615_s21 = scalar_lea.sflag [#allocation4], %s614_s5 }
 0x323   : > { %p826_p6 = pnand %p1501_p4, %p1500_p2 }
 0x325   : > { %1103 = dma.done.wait (!%p826_p6), %s615_s21, 32  }
 0x326   : > { %1105 = vsyncadd (!%p826_p6), %s615_s21, 4294967264  ;;  %s24_s20 = sadd.s32 1, %s1128_s20   ;;  %s1502_s15 = smov %s1112_s16 }
 0x327   : > { %p21_p11 = scmp.ge.s32.totalorder %s24_s20, 4   ;;  %s1503_s16 = smov %s1116_s17 }
 0x328   : > { %s1504_s17 = smov %s1299_s26  ;;  %s1505_s18 = smov %s1124_s19 }
 0x329   : > { %s1506_s19 = smov %s1508_s11  ;;  %23 = sbr.rel (!%p21_p11) target bundleno = 12 (0xc), region = 102 }
 0x330   :  { %620 = vsyncpa [#allocation3], 1 }
 0x331   :  { %622 = vsyncpa [#allocation3 + $0x1], 1 }
 0x332   :  { %623 = vsyncpa [#allocation6], 1 }
 0x333   :  { %625 = vsyncpa [#allocation6 + $0x1], 1 }
 0x334   :  { %626 = vsyncpa [#allocation9], 1 }
 0x335   :  { %627 = vsyncpa [#allocation4], 1 }
 0x336   :  { %629 = vsyncpa [#allocation4 + $0x1], 1 }

// kernel: _lambda_.2
= control target key start
LH: loop header
LB: loop body
LE: loop exit
PB: predicated region body
PF: predicated region fallthrough
CT: control target
= control target key end

     0   :  { %s10248_s0 = inlined_call_operand.hbm [shape: f32[2,16,16,1], index: 0, kind: input, shape index: {}]   ;;  %s10249_s1 = inlined_call_operand.hbm [shape: f32[2,16,16,1], index: 1, kind: input, shape index: {}]   ;;  %s10250_s2 = inlined_call_operand.hbm [shape: f32[2,16], index: 2, kind: input, shape index: {}]   ;;  %s10251_s3 = inlined_call_operand.hbm [shape: f32[1,16], index: 3, kind: input, shape index: {}]   ;;  %s10252_s4 = inlined_call_operand.hbm [shape: bf16[3,48,32], index: 4, kind: input, shape index: {}]   ;;  %s10253_s5 = inlined_call_operand.hbm [shape: f32[1,32], index: 5, kind: input, shape index: {}]   ;;  %s10254_s6 = inlined_call_operand.hbm [shape: bf16[3,96,32], index: 6, kind: input, shape index: {}]   ;;  %s10255_s7 = inlined_call_operand.hbm [shape: f32[1,32], index: 7, kind: input, shape index: {}]   ;;  %s10256_s8 = inlined_call_operand.hbm [shape: bf16[32,64], index: 8, kind: input, shape index: {}]   ;;  %s10257_s9 = inlined_call_operand.hbm [shape: f32[1,64], index: 9, kind: input, shape index: {}]   ;;  %s10258_s10 = inlined_call_operand.hbm [shape: bf16[64,64], index: 10, kind: input, shape index: {}]   ;;  %s10259_s11 = inlined_call_operand.hbm [shape: f32[1,64], index: 11, kind: input, shape index: {}]   ;;  %s10260_s12 = inlined_call_operand.hbm [shape: bf16[64,64], index: 12, kind: input, shape index: {}]   ;;  %s10261_s13 = inlined_call_operand.hbm [shape: f32[1,64], index: 13, kind: input, shape index: {}]   ;;  %s10262_s14 = inlined_call_operand.hbm [shape: bf16[64,64], index: 14, kind: input, shape index: {}]   ;;  %s10263_s15 = inlined_call_operand.hbm [shape: f32[1,64], index: 15, kind: input, shape index: {}]   ;;  %s10264_s16 = inlined_call_operand.hbm [shape: bf16[2,256,64], index: 16, kind: output, shape index: {}]  }
   0x1   :  { %10277 = sst [smem:[#allocation46_spill]] %s10248_s0 }
   0x2   :  { %10278 = sst [smem:[#allocation47_spill]] %s10249_s1 }
   0x3   :  { %10279 = sst [smem:[#allocation48_spill]] %s10250_s2 }
   0x4   :  { %10280 = sst [smem:[#allocation49_spill]] %s10251_s3 }
   0x5   :  { %10281 = sst [smem:[#allocation50_spill]] %s10252_s4 }
   0x6   :  { %10282 = sst [smem:[#allocation51_spill]] %s10253_s5 }
   0x7   :  { %10283 = sst [smem:[#allocation52_spill]] %s10254_s6 }
   0x8   :  { %10284 = sst [smem:[#allocation53_spill]] %s10255_s7 }
   0x9   :  { %10285 = sst [smem:[#allocation54_spill]] %s10256_s8 }
   0xa   :  { %10286 = sst [smem:[#allocation55_spill]] %s10257_s9 }
   0xb   :  { %10287 = sst [smem:[#allocation56_spill]] %s10264_s16 }
   0xc   :  { %21 = vsyncpa [#allocation5], 0 }
   0xd   :  { %23 = vsyncpa [#allocation5 + $0x1], 0 }
   0xe   :  { %24 = vsyncpa [#allocation8], 0 }
   0xf   :  { %26 = vsyncpa [#allocation8 + $0x1], 0 }
  0x10   :  { %27 = vsyncpa [#allocation11], 0 }
  0x11   :  { %28 = vsyncpa [#allocation14], 0 }
  0x12   :  { %29 = vsyncpa [#allocation17], 0 }
  0x13   :  { %30 = vsyncpa [#allocation20], 0 }
  0x14   :  { %31 = vsyncpa [#allocation23], 0 }
  0x15   :  { %32 = vsyncpa [#allocation26], 0 }
  0x16   :  { %33 = vsyncpa [#allocation29], 0 }
  0x17   :  { %34 = vsyncpa [#allocation6], 0 }
  0x18   :  { %36 = vsyncpa [#allocation6 + $0x1], 0  ;;  %s8103_s21 = smov 0   ;;  %s8105_s22 = smov 0  }
  0x19   :  { %s8107_s23 = smov 0   ;;  %s8109_s24 = smov 0  }
  0x1a LB: > { %10288 = sst [smem:[#allocation42_spill]] %s7978_s21  ;;  %s7992_s25 = smov [#allocation9]   ;;  %s7990_s24 = sphi %s8109_s24, %s10342_s24   ;;  %s7986_s23 = sphi %s8107_s23, %s10341_s23   ;;  %s7982_s22 = sphi %s8105_s22, %s10340_s22   ;;  %s7978_s21 = sphi %s8103_s21, %s10339_s21  }
  0x1b   : > { %10289 = sst [smem:[#allocation43_spill]] %s7982_s22  ;;  %s432_s26 = sshll.u32 %s7992_s25, 4  ;;  %s8129_s26 = int_to_ptr.vmem [resolvable:$true] %s432_s26 }
  0x1c   : > { %s8124_s27 = sadd.s32 4294967295, %s7990_s24   ;;  %p5821_p0 = scmp.ge.s32.totalorder %s7990_s24, 1 }
  0x1d   : > { %10290 = sst [smem:[#allocation44_spill]] %s8124_s27  ;;  %p10273_p1 = scmp.eq.s32.totalorder %s8124_s27, 0 }
  0x1e   : > { %p419_p2 = scmp.lt.s32.totalorder %s7990_s24, 3  ;;  %s7993_s29 = smov [#allocation10]  }
  0x1f   : > { %s443_s30 = sshll.u32 %s7993_s29, 4  ;;  %s7994_s0 = smov [#allocation13]   ;;  %s8138_s30 = int_to_ptr.vmem [resolvable:$true] %s443_s30 }
  0x20   : > { %p8131_p3 = pnand %p5821_p0, %p419_p2  ;;  %s467_s17 = sshll.u32 %s7994_s0, 4  ;;  %s8146_s17 = int_to_ptr.vmem [resolvable:$true] %s467_s17 }
  0x21   : > { %s7995_s19 = smov [#allocation16]   ;;  %s10294_s2 = sld [smem:[#allocation48_spill]] }
  0x22   : > { %s10291_s28 = scalar_select %p8131_p3, 1, 0 }
  0x23   : > { %p6934_p5 = pneg %p8131_p3  ;;  %s8148_s20 = sshll.u32 %s7995_s19, 4  ;;  %s492_s20 = int_to_ptr.vmem [resolvable:$true] %s8148_s20 }
  0x24   : > { %10292 = sst [smem:[#allocation45_spill]] %s10291_s28 }
  0x25   : > { %p8142_p6 = pnand %p6934_p5, %p10273_p1 }
  0x27   : > { %s7436_s28 = scalar_lea.hbm %s10294_s2, 32  ;;  %p8158_p8 = pneg %p8142_p6 }
  0x28   : > { %p7437_p7 = scmp.ne.s32.totalorder %s10294_s2, %s7436_s28  ;;  %p7443_p11 = scmp.lt.u32.totalorder %s7436_s28, %s10294_s2 }
  0x2a   : > { %p7439_p9 = pnand %p8158_p8, %p7437_p7 }
  0x2c   : > { %p7440_p10 = pneg %p7439_p9 }
  0x2e   : > { %p7445_p12 = pnand %p7443_p11, %p7440_p10 }
  0x30   : > { %7448 = shalt.err (!%p7445_p12)
}
  0x31   : > { %s7449_s1 = scalar_lea.vmem %s8129_s26, 32  ;;  %p7457_p5 = scmp.lt.s32.totalorder %s8129_s26, %s8129_s26 }
  0x32   : > { %p7450_p13 = scmp.ne.s32.totalorder %s8129_s26, %s7449_s1  ;;  %p7458_p4 = scmp.lt.s32.totalorder %s7449_s1, %s7449_s1 }
  0x34   : > { %p7452_p0 = pnand %p7450_p13, %p8158_p8  ;;  %p7459_p7 = por %p7458_p4, %p7457_p5 }
  0x36   : > { %p7453_p2 = pneg %p7452_p0 }
  0x38   : > { %p7460_p9 = pnand %p7459_p7, %p7453_p2 }
  0x3a   : > { %7463 = shalt.err (!%p7460_p9)
}
  0x3b   : > { %6937 = dma.hbm_to_vmem [thread:$0]  (!%p8142_p6), %s10294_s2, 32, %s8129_s26, [#allocation8]  }
  0x3c   : > { %s10296_s3 = sld [smem:[#allocation49_spill]] }
  0x42   : > { %s7464_s29 = scalar_lea.hbm %s10296_s3, 16 }
  0x43   : > { %p7465_p10 = scmp.ne.s32.totalorder %s10296_s3, %s7464_s29  ;;  %p7471_p12 = scmp.lt.u32.totalorder %s7464_s29, %s10296_s3 }
  0x45   : > { %p7467_p4 = pnand %p7465_p10, %p8158_p8 }
  0x47   : > { %p7468_p11 = pneg %p7467_p4 }
  0x49   : > { %p7473_p13 = pnand %p7471_p12, %p7468_p11 }
  0x4b   : > { %7476 = shalt.err (!%p7473_p13)
}
  0x4c   : > { %s7477_s26 = scalar_lea.vmem %s8138_s30, 16  ;;  %s7484_s21 = scalar_lea.vmem %s8138_s30, 32 }
  0x4d   : > { %p7478_p0 = scmp.ne.s32.totalorder %s8138_s30, %s7477_s26  ;;  %p7485_p7 = scmp.lt.s32.totalorder %s8138_s30, %s8138_s30 }
  0x4e   : > { %p7486_p9 = scmp.lt.s32.totalorder %s7484_s21, %s7477_s26 }
  0x4f   : > { %p7480_p2 = pnand %p7478_p0, %p8158_p8 }
  0x50   : > { %p7487_p10 = por %p7486_p9, %p7485_p7 }
  0x51   : > { %p7481_p5 = pneg %p7480_p2 }
  0x53   : > { %p7488_p4 = pnand %p7487_p10, %p7481_p5 }
  0x55   : > { %7491 = shalt.err (!%p7488_p4)
}
  0x56   : > { %6940 = dma.hbm_to_vmem [thread:$0]  (!%p8142_p6), %s10296_s3, 16, %s8138_s30, [#allocation11]  }
  0x57   : > { %s10297_s5 = sld [smem:[#allocation51_spill]] }
  0x5d   : > { %s7492_s25 = scalar_lea.hbm %s10297_s5, 16 }
  0x5e   : > { %p7493_p11 = scmp.ne.s32.totalorder %s10297_s5, %s7492_s25  ;;  %p7499_p0 = scmp.lt.u32.totalorder %s7492_s25, %s10297_s5 }
  0x60   : > { %p7495_p12 = pnand %p7493_p11, %p8158_p8 }
  0x62   : > { %p7496_p13 = pneg %p7495_p12 }
  0x64   : > { %p7501_p2 = pnand %p7499_p0, %p7496_p13 }
  0x66   : > { %7504 = shalt.err (!%p7501_p2)
}
  0x67   : > { %s7505_s30 = scalar_lea.vmem %s8146_s17, 16  ;;  %s7512_s21 = scalar_lea.vmem %s8146_s17, 32 }
  0x68   : > { %p7506_p5 = scmp.ne.s32.totalorder %s8146_s17, %s7505_s30  ;;  %p7513_p10 = scmp.lt.s32.totalorder %s8146_s17, %s8146_s17 }
  0x69   : > { %p7514_p4 = scmp.lt.s32.totalorder %s7512_s21, %s7505_s30 }
  0x6a   : > { %p7508_p7 = pnand %p7506_p5, %p8158_p8 }
  0x6b   : > { %p7515_p11 = por %p7514_p4, %p7513_p10 }
  0x6c   : > { %p7509_p9 = pneg %p7508_p7 }
  0x6e   : > { %p7516_p12 = pnand %p7515_p11, %p7509_p9 }
  0x70   : > { %7519 = shalt.err (!%p7516_p12)
}
  0x71   : > { %6946 = dma.hbm_to_vmem [thread:$0]  (!%p8142_p6), %s10297_s5, 16, %s8146_s17, [#allocation14]  }
  0x72   : > { %s7996_s27 = smov [#allocation19]   ;;  %s10298_s7 = sld [smem:[#allocation53_spill]] }
  0x73   : > { %s515_s28 = sshll.u32 %s7996_s27, 4  ;;  %s516_s28 = int_to_ptr.vmem [resolvable:$true] %s515_s28 }
  0x78   : > { %s7520_s19 = scalar_lea.hbm %s10298_s7, 16 }
  0x79   : > { %p7521_p13 = scmp.ne.s32.totalorder %s10298_s7, %s7520_s19  ;;  %p7527_p5 = scmp.lt.u32.totalorder %s7520_s19, %s10298_s7 }
  0x7b   : > { %p7523_p0 = pnand %p7521_p13, %p8158_p8 }
  0x7d   : > { %p7524_p2 = pneg %p7523_p0 }
  0x7f   : > { %p7529_p7 = pnand %p7527_p5, %p7524_p2 }
  0x81   : > { %7532 = shalt.err (!%p7529_p7)
}
  0x82   : > { %s7533_s17 = scalar_lea.vmem %s492_s20, 16  ;;  %s7540_s22 = scalar_lea.vmem %s492_s20, 32 }
  0x83   : > { %p7534_p9 = scmp.ne.s32.totalorder %s492_s20, %s7533_s17  ;;  %p7541_p11 = scmp.lt.s32.totalorder %s492_s20, %s492_s20 }
  0x84   : > { %p7542_p12 = scmp.lt.s32.totalorder %s7540_s22, %s7533_s17 }
  0x85   : > { %p7536_p10 = pnand %p7534_p9, %p8158_p8 }
  0x86   : > { %p7543_p1 = por %p7542_p12, %p7541_p11 }
  0x87   : > { %p7537_p4 = pneg %p7536_p10 }
  0x89   : > { %p7544_p3 = pnand %p7543_p1, %p7537_p4 }
  0x8b   : > { %7547 = shalt.err (!%p7544_p3)
}
  0x8c   : > { %6952 = dma.hbm_to_vmem [thread:$0]  (!%p8142_p6), %s10298_s7, 16, %s492_s20, [#allocation17]  }
  0x8d   : > { %s10299_s9 = sld [smem:[#allocation55_spill]] }
  0x93   : > { %s7548_s19 = scalar_lea.hbm %s10299_s9, 16 }
  0x94   : > { %p7549_p13 = scmp.ne.s32.totalorder %s10299_s9, %s7548_s19  ;;  %p7555_p3 = scmp.lt.u32.totalorder %s7548_s19, %s10299_s9 }
  0x96   : > { %p7551_p0 = pnand %p7549_p13, %p8158_p8 }
  0x98   : > { %p7552_p1 = pneg %p7551_p0 }
  0x9a   : > { %p7557_p2 = pnand %p7555_p3, %p7552_p1 }
  0x9c   : > { %7560 = shalt.err (!%p7557_p2)
}
  0x9d   : > { %s7561_s17 = scalar_lea.vmem %s516_s28, 16  ;;  %s7568_s20 = scalar_lea.vmem %s516_s28, 32 }
  0x9e   : > { %p7562_p5 = scmp.ne.s32.totalorder %s516_s28, %s7561_s17  ;;  %p7569_p10 = scmp.lt.s32.totalorder %s516_s28, %s516_s28 }
  0x9f   : > { %p7570_p4 = scmp.lt.s32.totalorder %s7568_s20, %s7561_s17 }
  0xa0   : > { %p7564_p7 = pnand %p7562_p5, %p8158_p8 }
  0xa1   : > { %p7571_p11 = por %p7570_p4, %p7569_p10 }
  0xa2   : > { %p7565_p9 = pneg %p7564_p7 }
  0xa4   : > { %p7572_p12 = pnand %p7571_p11, %p7565_p9 }
  0xa6   : > { %7575 = shalt.err (!%p7572_p12)
}
  0xa7   : > { %6958 = dma.hbm_to_vmem [thread:$0]  (!%p8142_p6), %s10299_s9, 16, %s516_s28, [#allocation20]  }
  0xa8   : > { %s7997_s27 = smov [#allocation22]   ;;  %s7998_s29 = smov [#allocation25]  }
  0xa9   : > { %s539_s25 = sshll.u32 %s7997_s27, 4  ;;  %s563_s19 = sshll.u32 %s7998_s29, 4  ;;  %s540_s25 = int_to_ptr.vmem [resolvable:$true] %s539_s25  ;;  %s564_s19 = int_to_ptr.vmem [resolvable:$true] %s563_s19 }
  0xaa   : > { %s7576_s30 = scalar_lea.hbm %s10259_s11, 16 }
  0xab   : > { %p7577_p13 = scmp.ne.s32.totalorder %s10259_s11, %s7576_s30  ;;  %p7583_p3 = scmp.lt.u32.totalorder %s7576_s30, %s10259_s11 }
  0xad   : > { %p7579_p0 = pnand %p7577_p13, %p8158_p8 }
  0xaf   : > { %p7580_p1 = pneg %p7579_p0 }
  0xb1   : > { %p7585_p2 = pnand %p7583_p3, %p7580_p1 }
  0xb3   : > { %7588 = shalt.err (!%p7585_p2)
}
  0xb4   : > { %s7589_s28 = scalar_lea.vmem %s540_s25, 16  ;;  %s7596_s16 = scalar_lea.vmem %s540_s25, 32 }
  0xb5   : > { %p7590_p5 = scmp.ne.s32.totalorder %s540_s25, %s7589_s28  ;;  %p7597_p10 = scmp.lt.s32.totalorder %s540_s25, %s540_s25 }
  0xb6   : > { %p7598_p4 = scmp.lt.s32.totalorder %s7596_s16, %s7589_s28 }
  0xb7   : > { %p7592_p7 = pnand %p7590_p5, %p8158_p8 }
  0xb8   : > { %p7599_p11 = por %p7598_p4, %p7597_p10 }
  0xb9   : > { %p7593_p9 = pneg %p7592_p7 }
  0xbb   : > { %p7600_p12 = pnand %p7599_p11, %p7593_p9 }
  0xbd   : > { %7603 = shalt.err (!%p7600_p12)
}
  0xbe   : > { %6964 = dma.hbm_to_vmem [thread:$0]  (!%p8142_p6), %s10259_s11, 16, %s540_s25, [#allocation23]  }
  0xbf   : > { %s7604_s30 = scalar_lea.hbm %s10261_s13, 16 }
  0xc0   : > { %p7605_p13 = scmp.ne.s32.totalorder %s10261_s13, %s7604_s30  ;;  %p7611_p3 = scmp.lt.u32.totalorder %s7604_s30, %s10261_s13 }
  0xc2   : > { %p7607_p0 = pnand %p7605_p13, %p8158_p8 }
  0xc4   : > { %p7608_p1 = pneg %p7607_p0 }
  0xc6   : > { %p7613_p2 = pnand %p7611_p3, %p7608_p1 }
  0xc8   : > { %7616 = shalt.err (!%p7613_p2)
}
  0xc9   : > { %s7617_s28 = scalar_lea.vmem %s564_s19, 16  ;;  %s7624_s25 = scalar_lea.vmem %s564_s19, 32 }
  0xca   : > { %p7618_p5 = scmp.ne.s32.totalorder %s564_s19, %s7617_s28  ;;  %p7625_p10 = scmp.lt.s32.totalorder %s564_s19, %s564_s19 }
  0xcb   : > { %p7626_p4 = scmp.lt.s32.totalorder %s7624_s25, %s7617_s28 }
  0xcc   : > { %p7620_p7 = pnand %p7618_p5, %p8158_p8 }
  0xcd   : > { %p7627_p11 = por %p7626_p4, %p7625_p10 }
  0xce   : > { %p7621_p9 = pneg %p7620_p7 }
  0xd0   : > { %p7628_p12 = pnand %p7627_p11, %p7621_p9 }
  0xd2   : > { %7631 = shalt.err (!%p7628_p12)
}
  0xd3   : > { %6970 = dma.hbm_to_vmem [thread:$0]  (!%p8142_p6), %s10261_s13, 16, %s564_s19, [#allocation26]  }
  0xd4   : > { %s7999_s29 = smov [#allocation12]   ;;  %s10300_s4 = sld [smem:[#allocation50_spill]] }
  0xd5   : > { %s453_s1 = sshll.u32 %s7999_s29, 4  ;;  %s454_s1 = int_to_ptr.vmem [resolvable:$true] %s453_s1 }
  0xda   : > { %s7632_s21 = scalar_lea.hbm %s10300_s4, 1152 }
  0xdb   : > { %p7633_p13 = scmp.ne.s32.totalorder %s10300_s4, %s7632_s21  ;;  %p7639_p3 = scmp.lt.u32.totalorder %s7632_s21, %s10300_s4 }
  0xdd   : > { %p7635_p0 = pnand %p7633_p13, %p8158_p8 }
  0xdf   : > { %p7636_p1 = pneg %p7635_p0 }
  0xe1   : > { %p7641_p2 = pnand %p7639_p3, %p7636_p1 }
  0xe3   : > { %7644 = shalt.err (!%p7641_p2)
}
  0xe4   : > { %s7645_s19 = scalar_lea.vmem %s454_s1, 1152  ;;  %p7653_p10 = scmp.lt.s32.totalorder %s454_s1, %s454_s1 }
  0xe5   : > { %p7646_p5 = scmp.ne.s32.totalorder %s454_s1, %s7645_s19  ;;  %p7654_p4 = scmp.lt.s32.totalorder %s7645_s19, %s7645_s19 }
  0xe7   : > { %p7648_p7 = pnand %p7646_p5, %p8158_p8  ;;  %p7655_p11 = por %p7654_p4, %p7653_p10 }
  0xe9   : > { %p7649_p9 = pneg %p7648_p7 }
  0xeb   : > { %p7656_p12 = pnand %p7655_p11, %p7649_p9 }
  0xed   : > { %7659 = shalt.err (!%p7656_p12)
}
  0xee   : > { %s8000_s25 = smov 64   ;;  %s8001_s16 = smov 4  }
  0xef   : > { %6943 = dma.hbm_to_vmem [thread:$0]  (!%p8142_p6), %s10300_s4, 1152, %s454_s1, [#allocation11], %s8000_s25, %s8000_s25, %s8001_s16  }
  0xf0   : > { %s8002_s26 = smov [#allocation15]   ;;  %s8003_s21 = smov [#allocation18]  }
  0xf1   : > { %s477_s30 = sshll.u32 %s8002_s26, 4  ;;  %s501_s17 = sshll.u32 %s8003_s21, 4  ;;  %s478_s30 = int_to_ptr.vmem [resolvable:$true] %s477_s30  ;;  %s8321_s17 = int_to_ptr.vmem [resolvable:$true] %s501_s17 }
  0xf2   : > { %s10301_s6 = sld [smem:[#allocation52_spill]] }
  0xf8   : > { %s7660_s28 = scalar_lea.hbm %s10301_s6, 2304 }
  0xf9   : > { %p7661_p13 = scmp.ne.s32.totalorder %s10301_s6, %s7660_s28  ;;  %p7667_p3 = scmp.lt.u32.totalorder %s7660_s28, %s10301_s6 }
  0xfb   : > { %p7663_p0 = pnand %p7661_p13, %p8158_p8 }
  0xfd   : > { %p7664_p1 = pneg %p7663_p0 }
  0xff   : > { %p7669_p2 = pnand %p7667_p3, %p7664_p1 }
 0x101   : > { %7672 = shalt.err (!%p7669_p2)
}
 0x102   : > { %s7673_s29 = scalar_lea.vmem %s478_s30, 2304  ;;  %p7681_p10 = scmp.lt.s32.totalorder %s478_s30, %s478_s30 }
 0x103   : > { %p7674_p5 = scmp.ne.s32.totalorder %s478_s30, %s7673_s29  ;;  %p7682_p4 = scmp.lt.s32.totalorder %s7673_s29, %s7673_s29 }
 0x105   : > { %p7676_p7 = pnand %p7674_p5, %p8158_p8  ;;  %p7683_p11 = por %p7682_p4, %p7681_p10 }
 0x107   : > { %p7677_p9 = pneg %p7676_p7 }
 0x109   : > { %p7684_p12 = pnand %p7683_p11, %p7677_p9 }
 0x10b   : > { %7687 = shalt.err (!%p7684_p12)
}
 0x10c   : > { %6949 = dma.hbm_to_vmem [thread:$0]  (!%p8142_p6), %s10301_s6, 2304, %s478_s30, [#allocation14], %s8000_s25, %s8000_s25, %s8001_s16  }
 0x10d   : > { %s10302_s8 = sld [smem:[#allocation54_spill]] }
 0x113   : > { %s7688_s22 = scalar_lea.hbm %s10302_s8, 256 }
 0x114   : > { %p7689_p13 = scmp.ne.s32.totalorder %s10302_s8, %s7688_s22  ;;  %p7695_p3 = scmp.lt.u32.totalorder %s7688_s22, %s10302_s8 }
 0x116   : > { %p7691_p0 = pnand %p7689_p13, %p8158_p8 }
 0x118   : > { %p7692_p1 = pneg %p7691_p0 }
 0x11a   : > { %p7697_p2 = pnand %p7695_p3, %p7692_p1 }
 0x11c   : > { %7700 = shalt.err (!%p7697_p2)
}
 0x11d   : > { %s7701_s30 = scalar_lea.vmem %s8321_s17, 256  ;;  %p7709_p10 = scmp.lt.s32.totalorder %s8321_s17, %s8321_s17 }
 0x11e   : > { %p7702_p5 = scmp.ne.s32.totalorder %s8321_s17, %s7701_s30  ;;  %p7710_p4 = scmp.lt.s32.totalorder %s7701_s30, %s7701_s30 }
 0x120   : > { %p7704_p7 = pnand %p7702_p5, %p8158_p8  ;;  %p7711_p11 = por %p7710_p4, %p7709_p10 }
 0x122   : > { %p7705_p9 = pneg %p7704_p7 }
 0x124   : > { %p7712_p12 = pnand %p7711_p11, %p7705_p9 }
 0x126   : > { %7715 = shalt.err (!%p7712_p12)
}
 0x127   : > { %6955 = dma.hbm_to_vmem [thread:$0]  (!%p8142_p6), %s10302_s8, 256, %s8321_s17, [#allocation17], %s8000_s25, %s8000_s25, %s8001_s16  }
 0x128   : > { %s8004_s26 = smov [#allocation21]   ;;  %s8005_s20 = smov [#allocation24]  }
 0x129   : > { %s525_s21 = sshll.u32 %s8004_s26, 4  ;;  %s549_s22 = sshll.u32 %s8005_s20, 4  ;;  %s526_s21 = int_to_ptr.vmem [resolvable:$true] %s525_s21  ;;  %s8370_s22 = int_to_ptr.vmem [resolvable:$true] %s549_s22 }
 0x12a   : > { %s7716_s27 = scalar_lea.hbm %s10258_s10, 512 }
 0x12b   : > { %p7717_p13 = scmp.ne.s32.totalorder %s10258_s10, %s7716_s27  ;;  %p7723_p3 = scmp.lt.u32.totalorder %s7716_s27, %s10258_s10 }
 0x12d   : > { %p7719_p0 = pnand %p7717_p13, %p8158_p8 }
 0x12f   : > { %p7720_p1 = pneg %p7719_p0 }
 0x131   : > { %p7725_p2 = pnand %p7723_p3, %p7720_p1 }
 0x133   : > { %7728 = shalt.err (!%p7725_p2)
}
 0x134   : > { %s7729_s2 = scalar_lea.vmem %s526_s21, 512  ;;  %p7737_p10 = scmp.lt.s32.totalorder %s526_s21, %s526_s21 }
 0x135   : > { %p7730_p5 = scmp.ne.s32.totalorder %s526_s21, %s7729_s2  ;;  %p7738_p4 = scmp.lt.s32.totalorder %s7729_s2, %s7729_s2 }
 0x137   : > { %p7732_p7 = pnand %p7730_p5, %p8158_p8  ;;  %p7739_p11 = por %p7738_p4, %p7737_p10 }
 0x139   : > { %p7733_p9 = pneg %p7732_p7 }
 0x13b   : > { %p7740_p12 = pnand %p7739_p11, %p7733_p9 }
 0x13d   : > { %7743 = shalt.err (!%p7740_p12)
}
 0x13e   : > { %6961 = dma.hbm_to_vmem [thread:$0]  (!%p8142_p6), %s10258_s10, 512, %s526_s21, [#allocation20], %s8000_s25, %s8000_s25, %s8001_s16  }
 0x13f   : > { %s7744_s27 = scalar_lea.hbm %s10260_s12, 512 }
 0x140   : > { %p7745_p13 = scmp.ne.s32.totalorder %s10260_s12, %s7744_s27  ;;  %p7751_p3 = scmp.lt.u32.totalorder %s7744_s27, %s10260_s12 }
 0x142   : > { %p7747_p0 = pnand %p7745_p13, %p8158_p8 }
 0x144   : > { %p7748_p1 = pneg %p7747_p0 }
 0x146   : > { %p7753_p2 = pnand %p7751_p3, %p7748_p1 }
 0x148   : > { %7756 = shalt.err (!%p7753_p2)
}
 0x149   : > { %s7757_s21 = scalar_lea.vmem %s8370_s22, 512  ;;  %p7765_p10 = scmp.lt.s32.totalorder %s8370_s22, %s8370_s22 }
 0x14a   : > { %p7758_p5 = scmp.ne.s32.totalorder %s8370_s22, %s7757_s21  ;;  %p7766_p4 = scmp.lt.s32.totalorder %s7757_s21, %s7757_s21 }
 0x14c   : > { %p7760_p7 = pnand %p7758_p5, %p8158_p8  ;;  %p7767_p11 = por %p7766_p4, %p7765_p10 }
 0x14e   : > { %p7761_p9 = pneg %p7760_p7 }
 0x150   : > { %p7768_p12 = pnand %p7767_p11, %p7761_p9 }
 0x152   : > { %7771 = shalt.err (!%p7768_p12)
}
 0x153   : > { %6967 = dma.hbm_to_vmem [thread:$0]  (!%p8142_p6), %s10260_s12, 512, %s8370_s22, [#allocation23], %s8000_s25, %s8000_s25, %s8001_s16  }
 0x154   : > { %s8006_s20 = smov [#allocation27]   ;;  %s8007_s19 = smov [#allocation28]  }
 0x155   : > { %s573_s28 = sshll.u32 %s8006_s20, 4  ;;  %s587_s27 = sshll.u32 %s8007_s19, 4  ;;  %s574_s28 = int_to_ptr.vmem [resolvable:$true] %s573_s28  ;;  %s8419_s27 = int_to_ptr.vmem [resolvable:$true] %s587_s27 }
 0x156   : > { %s7772_s29 = scalar_lea.hbm %s10262_s14, 512 }
 0x157   : > { %p7773_p13 = scmp.ne.s32.totalorder %s10262_s14, %s7772_s29  ;;  %p7779_p3 = scmp.lt.u32.totalorder %s7772_s29, %s10262_s14 }
 0x159   : > { %p7775_p0 = pnand %p7773_p13, %p8158_p8 }
 0x15b   : > { %p7776_p1 = pneg %p7775_p0 }
 0x15d   : > { %p7781_p2 = pnand %p7779_p3, %p7776_p1 }
 0x15f   : > { %7784 = shalt.err (!%p7781_p2)
}
 0x160   : > { %s7785_s26 = scalar_lea.vmem %s574_s28, 512  ;;  %p7793_p10 = scmp.lt.s32.totalorder %s574_s28, %s574_s28 }
 0x161   : > { %p7786_p5 = scmp.ne.s32.totalorder %s574_s28, %s7785_s26  ;;  %p7794_p4 = scmp.lt.s32.totalorder %s7785_s26, %s7785_s26 }
 0x163   : > { %p7788_p7 = pnand %p7786_p5, %p8158_p8  ;;  %p7795_p11 = por %p7794_p4, %p7793_p10 }
 0x165   : > { %p7789_p9 = pneg %p7788_p7 }
 0x167   : > { %p7796_p12 = pnand %p7795_p11, %p7789_p9 }
 0x169   : > { %7799 = shalt.err (!%p7796_p12)
}
 0x16a   : > { %6973 = dma.hbm_to_vmem [thread:$0]  (!%p8142_p6), %s10262_s14, 512, %s574_s28, [#allocation26], %s8000_s25, %s8000_s25, %s8001_s16  }
 0x16b   : > { %s7800_s29 = scalar_lea.hbm %s10263_s15, 16 }
 0x16c   : > { %p7801_p13 = scmp.ne.s32.totalorder %s10263_s15, %s7800_s29  ;;  %p7807_p3 = scmp.lt.u32.totalorder %s7800_s29, %s10263_s15 }
 0x16e   : > { %p7803_p0 = pnand %p7801_p13, %p8158_p8 }
 0x170   : > { %p7804_p1 = pneg %p7803_p0 }
 0x172   : > { %p7809_p2 = pnand %p7807_p3, %p7804_p1 }
 0x174   : > { %7812 = shalt.err (!%p7809_p2)
}
 0x175   : > { %s7813_s25 = scalar_lea.vmem %s8419_s27, 16  ;;  %s7820_s16 = scalar_lea.vmem %s8419_s27, 32 }
 0x176   : > { %p7814_p5 = scmp.ne.s32.totalorder %s8419_s27, %s7813_s25  ;;  %p7821_p10 = scmp.lt.s32.totalorder %s8419_s27, %s8419_s27 }
 0x177   : > { %p7822_p4 = scmp.lt.s32.totalorder %s7820_s16, %s7813_s25 }
 0x178   : > { %p7816_p7 = pnand %p7814_p5, %p8158_p8 }
 0x179   : > { %p7823_p11 = por %p7822_p4, %p7821_p10 }
 0x17a   : > { %p7817_p9 = pneg %p7816_p7 }
 0x17c   : > { %p7824_p12 = pnand %p7823_p11, %p7817_p9 }
 0x17e   : > { %7827 = shalt.err (!%p7824_p12)
}
 0x17f   : > { %s10303_s0 = sld [smem:[#allocation43_spill]]  ;;  %s10304_s20 = sld [smem:[#allocation42_spill]] }
 0x180   : > { %s10305_s19 = sld [smem:[#allocation44_spill]]  ;;  %s5820_s18 = sadd.s32 4294967294, %s7990_s24  }
 0x181   : > { %6976 = dma.hbm_to_vmem [thread:$0]  (!%p8142_p6), %s10263_s15, 16, %s8419_s27, [#allocation29]  }
 0x182   : > { %s8468_s1 = sadd.s32 1, %s7990_s24   ;;  %s49_s29 = sadd.s32 1, %s7986_s23 }
 0x183   : > { %s46_s30 = ssub.s32 %s7990_s24, %s8468_s1  ;;  %p57_p0 = scmp.eq.s32.totalorder %s7990_s24, 0 }
 0x184   : > { %p47_p8 = scmp.eq.s32.totalorder %s46_s30, 0  ;;  %p412_p7 = scmp.eq.s32.totalorder %s5820_s18, 1 }
 0x185   : > { %p56_p13 = scmp.ne.s32.totalorder %s7986_s23, %s10303_s0  ;;  %p62_p1 = scmp.ne.s32.totalorder %s10303_s0, %s10304_s20 }
 0x186   : > { %s8479_s17 = scalar_select %p47_p8, %s7986_s23, %s49_s29  }
 0x187   : > { %p8481_p3 = por %p57_p0, %p56_p13  ;;  %p10307_p2 = scmp.eq.s32.totalorder %s10305_s19, 0 }
 0x188   : > { %p406_p5 = scmp.eq.s32.totalorder %s10305_s19, 1  ;;  %p7002_p9 = scmp.lt.s32.totalorder %s7990_s24, 2 }
 0x189   : > { %p8487_p6 = por %p10307_p2, %p62_p1  ;;  %s598_s2 = sand.u32 1, %s7986_s23  }
 0x18a   : > { %p8494_p10 = por %p406_p5, %p56_p13  ;;  %p8498_p4 = por %p412_p7, %p62_p1 }
 0x18b   : > { %s8502_s16 = sshll.u32 %s598_s2, 8  ;;  %s10275_s28 = sshll.u32 %s7990_s24, 12 }
 0x18c   : > { %s10309_s22 = scalar_select %p8494_p10, 1, 0 }
 0x18d   : > { %s10310_s25 = scalar_select %p8498_p4, 1, 0 }
 0x18e   : > { %s10311_s20 = sld [smem:[#allocation46_spill]]  ;;  %s602_s18 = scalar_lea.vmem [#allocation4], %s8502_s16 }
 0x18f   : > { %s609_s30 = sshll.u32 %s602_s18, 4  ;;  %p8517_p11 = pnand %p7002_p9, %p8481_p3  ;;  %s8513_s30 = int_to_ptr.vmem [resolvable:$true] %s609_s30 }
 0x190   : > { %s8521_s3 = scalar_lea.sflag [#allocation5], %s598_s2 }
 0x191   : > { %p7830_p8 = pneg %p8517_p11 }
 0x194   : > { %s8510_s19 = scalar_lea.hbm %s10311_s20, %s10275_s28  ;;  %s7833_s21 = scalar_lea.hbm %s10311_s20, 8192 }
 0x195   : > { %s7828_s26 = scalar_lea.hbm %s8510_s19, 4096  ;;  %p7834_p1 = scmp.lt.u32.totalorder %s8510_s19, %s10311_s20 }
 0x196   : > { %p7829_p12 = scmp.ne.s32.totalorder %s8510_s19, %s7828_s26  ;;  %p7835_p3 = scmp.lt.u32.totalorder %s7833_s21, %s7828_s26 }
 0x197   : > { %p7837_p5 = scmp.lt.u32.totalorder %s7828_s26, %s8510_s19 }
 0x198   : > { %p7831_p13 = pnand %p7830_p8, %p7829_p12  ;;  %p7836_p2 = por %p7835_p3, %p7834_p1 }
 0x19a   : > { %p7832_p0 = pneg %p7831_p13  ;;  %p7838_p7 = por %p7837_p5, %p7836_p2 }
 0x19c   : > { %p7839_p9 = pnand %p7838_p7, %p7832_p0 }
 0x19e   : > { %7842 = shalt.err (!%p7839_p9)
}
 0x19f   : > { %s7843_s2 = scalar_lea.vmem %s8513_s30, 4096  ;;  %s8008_s0 = smov [#allocation4]  }
 0x1a0   : > { %p7844_p12 = scmp.ne.s32.totalorder %s8513_s30, %s7843_s2  ;;  %s7848_s18 = sshll.u32 %s8008_s0, 4  ;;  %s7849_s18 = int_to_ptr.vmem [resolvable:$false] %s7848_s18 }
 0x1a1   : > { %s7850_s4 = scalar_lea.vmem %s7849_s18, 8192  ;;  %p7851_p10 = scmp.lt.s32.totalorder %s8513_s30, %s7849_s18 }
 0x1a2   : > { %p7846_p13 = pnand %p7844_p12, %p7830_p8  ;;  %p7852_p1 = scmp.lt.s32.totalorder %s7850_s4, %s7843_s2 }
 0x1a4   : > { %p7847_p4 = pneg %p7846_p13  ;;  %p7853_p3 = por %p7852_p1, %p7851_p10 }
 0x1a6   : > { %p7854_p2 = pnand %p7853_p3, %p7847_p4 }
 0x1a8   : > { %7857 = shalt.err (!%p7854_p2)
}
 0x1a9   : > { %s8009_s28 = smov 128   ;;  %s8010_s26 = smov 8  }
 0x1aa   : > { %6980 = dma.hbm_to_vmem [thread:$0]  (!%p8517_p11), %s8510_s19, 4096, %s8513_s30, %s8521_s3, %s8009_s28, %s8009_s28, %s8010_s26  }
 0x1ab   : > { %s10313_s21 = sshll.u32 %s7990_s24, 12  ;;  %s10314_s18 = sld [smem:[#allocation47_spill]] }
 0x1ac   : > { %s623_s5 = scalar_lea.vmem [#allocation7], %s8502_s16  ;;  %s619_s7 = sand.u32 1, %s7990_s24  }
 0x1ad   : > { %s630_s6 = sshll.u32 %s623_s5, 4  ;;  %s8563_s8 = scalar_lea.sflag [#allocation8], %s619_s7  ;;  %s8560_s6 = int_to_ptr.vmem [resolvable:$true] %s630_s6 }
 0x1b1   : > { %s8557_s4 = scalar_lea.hbm %s10314_s18, %s10313_s21  ;;  %s7863_s30 = scalar_lea.hbm %s10314_s18, 8192 }
 0x1b2   : > { %s7858_s9 = scalar_lea.hbm %s8557_s4, 4096  ;;  %p7864_p5 = scmp.lt.u32.totalorder %s8557_s4, %s10314_s18 }
 0x1b3   : > { %p7859_p10 = scmp.ne.s32.totalorder %s8557_s4, %s7858_s9  ;;  %p7865_p7 = scmp.lt.u32.totalorder %s7863_s30, %s7858_s9 }
 0x1b4   : > { %p7867_p12 = scmp.lt.u32.totalorder %s7858_s9, %s8557_s4 }
 0x1b5   : > { %p7861_p4 = pnand %p7859_p10, %p7830_p8  ;;  %p7866_p9 = por %p7865_p7, %p7864_p5 }
 0x1b7   : > { %p7862_p0 = pneg %p7861_p4  ;;  %p7868_p13 = por %p7867_p12, %p7866_p9 }
 0x1b9   : > { %p7869_p1 = pnand %p7868_p13, %p7862_p0 }
 0x1bb   : > { %7872 = shalt.err (!%p7869_p1)
}
 0x1bc   : > { %s7873_s5 = scalar_lea.vmem %s8560_s6, 4096  ;;  %s8011_s7 = smov [#allocation7]  }
 0x1bd   : > { %p7874_p3 = scmp.ne.s32.totalorder %s8560_s6, %s7873_s5  ;;  %s7878_s16 = sshll.u32 %s8011_s7, 4  ;;  %s7879_s16 = int_to_ptr.vmem [resolvable:$false] %s7878_s16 }
 0x1be   : > { %s7880_s0 = scalar_lea.vmem %s7879_s16, 8192  ;;  %p7881_p4 = scmp.lt.s32.totalorder %s8560_s6, %s7879_s16 }
 0x1bf   : > { %p7876_p2 = pnand %p7874_p3, %p7830_p8  ;;  %p7882_p5 = scmp.lt.s32.totalorder %s7880_s0, %s7873_s5 }
 0x1c1   : > { %p7877_p10 = pneg %p7876_p2  ;;  %p7883_p7 = por %p7882_p5, %p7881_p4 }
 0x1c3   : > { %p7884_p9 = pnand %p7883_p7, %p7877_p10 }
 0x1c5   : > { %7887 = shalt.err (!%p7884_p9)
}
 0x1c6   : > { %6983 = dma.hbm_to_vmem [thread:$0]  (!%p8517_p11), %s8557_s4, 4096, %s8560_s6, %s8563_s8, %s8009_s28, %s8009_s28, %s8010_s26  }
 0x1c7   : > { %s10315_s9 = sld [smem:[#allocation45_spill]] }
 0x1cd   : > { %p10316_p8 = scmp.ne.s32.totalorder %s10315_s9, 0 }
 0x1ce   : > { %s10317_s3 = sld [smem:[#allocation43_spill]] (!%p10316_p8) }
 0x1cf   : > { %642 = sbr.rel (%p10316_p8) target bundleno = 2637 (0xa4d), region = 84 }
 0x1d4   : > { %s8595_s19 = sand.u32 (!%p10316_p8), 1, %s10317_s3  }
 0x1d5   : > { %s5844_s30 = sshll.u32 (!%p10316_p8), %s8595_s19, 8  ;;  %s645_s21 = scalar_lea.sflag (!%p10316_p8), [#allocation5], %s8595_s19 }
 0x1d6   : > { %s8599_s2 = scalar_lea.vmem [#allocation4], %s5844_s30 }
 0x1d7   : > { %7933 = dma.done.wait (%p8487_p6), %s645_s21, 4096  }
 0x1d8   : > { %7935 = vsyncadd (%p8487_p6), %s645_s21, 4294963200  ;;  %s10318_s29 = sld [smem:[#allocation44_spill]]  ;;  %s8606_s28 = scalar_lea.vmem [#allocation7], %s5844_s30 }
 0x1de   : > { %s653_s6 = sand.u32 1, %s10318_s29  }
 0x1df   : > { %s654_s8 = scalar_lea.sflag [#allocation8], %s653_s6 }
 0x1e0   : > { %7937 = dma.done.wait (%p8487_p6), %s654_s8, 4096  }
 0x1e1   : > { %7939 = vsyncadd (%p8487_p6), %s654_s8, 4294963200  ;;  %p10319_p11 = scmp.eq.s32.totalorder %s10318_s29, 0 }
 0x1e3   : > { %7941 = dma.done.wait (%p10319_p11), [#allocation8], 32   ;;  %p10320_p0 = pmov %p10319_p11 }
 0x1e5   : > { %7943 = vsyncadd (%p10320_p0), [#allocation8], 4294967264  ;;  %p10321_p12 = pmov %p10320_p0 }
 0x1e6   : > { %p10322_p13 = pmov %p10320_p0 }
 0x1e7   : > { %7945 = dma.done.wait (%p10321_p12), [#allocation11], 1168  }
 0x1e8   : > { %7947 = vsyncadd (%p10322_p13), [#allocation11], 4294966128  ;;  %p10323_p1 = pmov %p10320_p0 }
 0x1e9   : > { %p10324_p3 = pmov %p10320_p0 }
 0x1ea   : > { %7949 = dma.done.wait (%p10323_p1), [#allocation14], 2320  }
 0x1eb   : > { %7951 = vsyncadd (%p10324_p3), [#allocation14], 4294964976  ;;  %p10325_p6 = pmov %p10320_p0 }
 0x1ec   : > { %p10326_p2 = pmov %p10320_p0 }
 0x1ed   : > { %7953 = dma.done.wait (%p10325_p6), [#allocation17], 272  }
 0x1ee   : > { %7955 = vsyncadd (%p10326_p2), [#allocation17], 4294967024  ;;  %p10327_p10 = pmov %p10320_p0 }
 0x1ef   : > { %p10328_p4 = pmov %p10320_p0 }
 0x1f0   : > { %7957 = dma.done.wait (%p10327_p10), [#allocation20], 528  }
 0x1f1   : > { %7959 = vsyncadd (%p10328_p4), [#allocation20], 4294966768  ;;  %p10329_p5 = pmov %p10320_p0 }
 0x1f2   : > { %p10330_p7 = pmov %p10320_p0 }
 0x1f3   : > { %7961 = dma.done.wait (%p10329_p5), [#allocation23], 528  }
 0x1f4   : > { %7963 = vsyncadd (%p10330_p7), [#allocation23], 4294966768  ;;  %p10331_p9 = pmov %p10320_p0 }
 0x1f5   : > { %p10332_p8 = pmov %p10320_p0 }
 0x1f6   : > { %7965 = dma.done.wait (%p10331_p9), [#allocation26], 528  }
 0x1f7   : > { %7967 = vsyncadd (%p10332_p8), [#allocation26], 4294966768  ;;  %p10333_p11 = pmov %p10320_p0 }
 0x1f9   : > { %7969 = dma.done.wait (%p10333_p11), [#allocation29], 16  }
 0x1fa   : > { %7971 = vsyncadd (%p10320_p0), [#allocation29], 4294967280  ;;  %vm1883_vm0 = vcmask 392192   ;;  %vm3286_vm1 = vcmask 785408   ;;  %v8012_v0 = vmov 0   ;;  %v800_v1 = vld [vmem:[%s8606_s28] sm:$0xff]  ;;  %v993_v59 = vlaneseq }
 0x1fb   : > { %7074 = vset.pattern.permute.xlu1 %v8012_v0  ;;  %1884 = vst.msk [vmem:[#allocation2] sm:$0xff] %vm1883_vm0, %v8012_v0  ;;  %1886 = vst.msk [vmem:[#allocation2 + $0x88] sm:$0xff] %vm1883_vm0, %v8012_v0  ;;  %7073 = vset.pattern.permute.xlu0 %v8012_v0  ;;  %v768_v2 = vld [vmem:[%s8599_s2] sm:$0xff]  ;;  %v801_v3 = vld [vmem:[%s8606_s28 + $0x8] sm:$0xff]  ;;  %s8013_s27 = smov 16   ;;  %s8014_s26 = smov 32  }
 0x1fc   : > { %3287 = vst.msk [vmem:[#allocation3] sm:$0xff] %vm3286_vm1, %v8012_v0  ;;  %3289 = vst.msk [vmem:[#allocation3 + $0x88] sm:$0xff] %vm3286_vm1, %v8012_v0  ;;  %1063 = vperm.xlu1 %7074, %v800_v1   ;;  %835 = vperm.xlu0 %7073, %v768_v2   ;;  %v769_v4 = vld [vmem:[%s8599_s2 + $0x8] sm:$0xff]  ;;  %v771_v5 = vld [vmem:[%s8599_s2 + $0x18] sm:$0xff]  ;;  %v8708_v62 = vshrl.u32 %v993_v59, 7  ;;  %vm1817_vm6 = vcmask 130048  }
 0x1fd   : > { %v770_v6 = vld [vmem:[%s8599_s2 + $0x10] sm:$0xff]  ;;  %v803_v7 = vld [vmem:[%s8606_s28 + $0x18] sm:$0xff]  ;;  %v773_v9 = vld [vmem:[%s8599_s2 + $0x28] sm:$0xff]  ;;  %vm1850_vm7 = vcmask 261120   ;;  %s8015_s4 = smov 64   ;;  %vm3253_vm8 = vcmask 523264  }
 0x1fe   : > { %v802_v8 = vld [vmem:[%s8606_s28 + $0x10] sm:$0xff]  ;;  %v772_v10 = vld [vmem:[%s8599_s2 + $0x20] sm:$0xff]  ;;  %v805_v11 = vld [vmem:[%s8606_s28 + $0x28] sm:$0xff]  ;;  %v1223_v1 = vsub.s32 1, %v8708_v62  ;;  %v995_v2 = vsub.s32 0, %v8708_v62  ;;  %vm1397_vm2 = vcmp.lt.s32.totalorder %v8708_v62, 1 }
 0x1ff   : > { %v804_v12 = vld [vmem:[%s8606_s28 + $0x20] sm:$0xff]  ;;  %v775_v13 = vld [vmem:[%s8599_s2 + $0x38] sm:$0xff]  ;;  %v774_v14 = vld [vmem:[%s8599_s2 + $0x30] sm:$0xff]  ;;  %vm1496_vm3 = vcmp.lt.s32.totalorder %v8708_v62, 7  ;;  %vm1363_vm5 = vcmp.eq.s32.totalorder %v8708_v62, 0  ;;  %s5860_s5 = sshll.u32 %s8595_s19, 7 }
 0x200   : > { %1068 = vperm.xlu1 %7074, %v801_v3   ;;  %840 = vperm.xlu0 %7073, %v769_v4   ;;  %v807_v15 = vld [vmem:[%s8606_s28 + $0x38] sm:$0xff]  ;;  %v806_v16 = vld [vmem:[%s8606_s28 + $0x30] sm:$0xff]  ;;  %v777_v17 = vld [vmem:[%s8599_s2 + $0x48] sm:$0xff]  ;;  %vm5544_vm9 = vcmask 519168   ;;  %s10101_s7 = scalar_lea.vmem [#allocation30], %s5860_s5  ;;  %s6140_s16 = sshll.u32 %s10318_s29, 11 }
 0x201   : > { %v776_v18 = vld [vmem:[%s8599_s2 + $0x40] sm:$0xff]  ;;  %v809_v19 = vld [vmem:[%s8606_s28 + $0x48] sm:$0xff]  ;;  %v779_v21 = vld [vmem:[%s8599_s2 + $0x58] sm:$0xff]  ;;  %s5591_s0 = sshll.u32 %s10101_s7, 4  ;;  %s10334_s30 = sld [smem:[#allocation56_spill]]  ;;  %s10198_s0 = int_to_ptr.vmem [resolvable:$true] %s5591_s0 }
 0x202   : > { %v808_v20 = vld [vmem:[%s8606_s28 + $0x40] sm:$0xff]  ;;  %v778_v22 = vld [vmem:[%s8599_s2 + $0x50] sm:$0xff]  ;;  %v811_v23 = vld [vmem:[%s8606_s28 + $0x58] sm:$0xff]  ;;  %s7888_s29 = scalar_lea.vmem %s10198_s0, 2048  ;;  %p10335_p13 = scmp.ne.s32.totalorder %s10309_s22, 0 }
 0x203   : > { %v810_v24 = vld [vmem:[%s8606_s28 + $0x50] sm:$0xff]  ;;  %v781_v25 = vld [vmem:[%s8599_s2 + $0x68] sm:$0xff]  ;;  %v780_v26 = vld [vmem:[%s8599_s2 + $0x60] sm:$0xff]  ;;  %p7889_p12 = scmp.ne.s32.totalorder %s10198_s0, %s7888_s29  ;;  %s8016_s6 = smov [#allocation30]  }
 0x204   : > { %850 = vperm.xlu1 %7074, %v771_v5   ;;  %845 = vperm.xlu0 %7073, %v770_v6   ;;  %v813_v27 = vld [vmem:[%s8606_s28 + $0x68] sm:$0xff]  ;;  %v812_v28 = vld [vmem:[%s8606_s28 + $0x60] sm:$0xff]  ;;  %v783_v29 = vld [vmem:[%s8599_s2 + $0x78] sm:$0xff]  ;;  %s7892_s8 = sshll.u32 %s8016_s6, 4  ;;  %s7893_s8 = int_to_ptr.vmem [resolvable:$false] %s7892_s8 }
 0x205   : > { %v782_v30 = vld [vmem:[%s8599_s2 + $0x70] sm:$0xff]  ;;  %v815_v31 = vld [vmem:[%s8606_s28 + $0x78] sm:$0xff]  ;;  %v785_v33 = vld [vmem:[%s8599_s2 + $0x88] sm:$0xff]  ;;  %p7890_p1 = pnand %p7889_p12, %p10335_p13  ;;  %p7895_p6 = scmp.lt.s32.totalorder %s10198_s0, %s7893_s8 }
 0x206   : > { %v814_v32 = vld [vmem:[%s8606_s28 + $0x70] sm:$0xff]  ;;  %v784_v34 = vld [vmem:[%s8599_s2 + $0x80] sm:$0xff]  ;;  %v817_v35 = vld [vmem:[%s8606_s28 + $0x88] sm:$0xff] }
 0x207   : > { %v816_v36 = vld [vmem:[%s8606_s28 + $0x80] sm:$0xff]  ;;  %v787_v37 = vld [vmem:[%s8599_s2 + $0x98] sm:$0xff]  ;;  %v786_v38 = vld [vmem:[%s8599_s2 + $0x90] sm:$0xff]  ;;  %s10194_s21 = scalar_lea.hbm %s10334_s30, %s6140_s16  ;;  %p7891_p3 = pneg %p7890_p1 }
 0x208   : > { %1078 = vperm.xlu1 %7074, %v803_v7   ;;  %1073 = vperm.xlu0 %7073, %v802_v8   ;;  %v819_v39 = vld [vmem:[%s8606_s28 + $0x98] sm:$0xff]  ;;  %v818_v40 = vld [vmem:[%s8606_s28 + $0x90] sm:$0xff]  ;;  %v789_v41 = vld [vmem:[%s8599_s2 + $0xa8] sm:$0xff] }
 0x209   : > { %v788_v42 = vld [vmem:[%s8599_s2 + $0xa0] sm:$0xff]  ;;  %v821_v43 = vld [vmem:[%s8606_s28 + $0xa8] sm:$0xff]  ;;  %v791_v45 = vld [vmem:[%s8599_s2 + $0xb8] sm:$0xff] }
 0x20a   : > { %v820_v44 = vld [vmem:[%s8606_s28 + $0xa0] sm:$0xff]  ;;  %v790_v46 = vld [vmem:[%s8599_s2 + $0xb0] sm:$0xff]  ;;  %v823_v47 = vld [vmem:[%s8606_s28 + $0xb8] sm:$0xff] }
 0x20b   : > { %v822_v48 = vld [vmem:[%s8606_s28 + $0xb0] sm:$0xff]  ;;  %v793_v49 = vld [vmem:[%s8599_s2 + $0xc8] sm:$0xff]  ;;  %v792_v50 = vld [vmem:[%s8599_s2 + $0xc0] sm:$0xff] }
 0x20c   : > { %860 = vperm.xlu1 %7074, %v773_v9   ;;  %855 = vperm.xlu0 %7073, %v772_v10   ;;  %v825_v51 = vld [vmem:[%s8606_s28 + $0xc8] sm:$0xff]  ;;  %v824_v52 = vld [vmem:[%s8606_s28 + $0xc0] sm:$0xff]  ;;  %v795_v53 = vld [vmem:[%s8599_s2 + $0xd8] sm:$0xff] }
 0x20d   : > { %v794_v54 = vld [vmem:[%s8599_s2 + $0xd0] sm:$0xff]  ;;  %v827_v55 = vld [vmem:[%s8606_s28 + $0xd8] sm:$0xff]  ;;  %v797_v57 = vld [vmem:[%s8599_s2 + $0xe8] sm:$0xff] }
 0x20e   : > { %v826_v56 = vld [vmem:[%s8606_s28 + $0xd0] sm:$0xff]  ;;  %v796_v58 = vld [vmem:[%s8599_s2 + $0xe0] sm:$0xff]  ;;  %v829_v60 = vld [vmem:[%s8606_s28 + $0xe8] sm:$0xff] }
 0x20f   : > { %v828_v61 = vld [vmem:[%s8606_s28 + $0xe0] sm:$0xff]  ;;  %v799_v63 = vld [vmem:[%s8599_s2 + $0xf8] sm:$0xff]  ;;  %v798_v0 = vld [vmem:[%s8599_s2 + $0xf0] sm:$0xff]  ;;  %s5578_s2 = scalar_lea.sflag [#allocation6], %s8595_s19 }
 0x210   : > { %1088 = vperm.xlu1 %7074, %v805_v11   ;;  %1083 = vperm.xlu0 %7073, %v804_v12   ;;  %v831_v3 = vld [vmem:[%s8606_s28 + $0xf8] sm:$0xff]  ;;  %v830_v4 = vld [vmem:[%s8606_s28 + $0xf0] sm:$0xff]  ;;  %v832_v5 = vld [vmem:[#allocation9] sm:$0x3]  ;;  %s7894_s28 = scalar_lea.vmem %s7893_s8, 4096 }
 0x211   : > { %v8716_v6 = vrot.slane %v832_v5, %v1223_v1  ;;  %v8718_v7 = vrot.slane %v832_v5, %v995_v2  ;;  %v8722_v12 = vld [vmem:[#allocation10] ss:$0 sm:$0xff]  ;;  %v7397_v5 = vld [vmem:[#allocation12 + $0x28] sm:$0xff]   ;;  %p7896_p2 = scmp.lt.s32.totalorder %s7894_s28, %s7888_s29 }
 0x213   : > { %p7897_p10 = por %p7896_p2, %p7895_p6 }
 0x214   : > { %870 = vperm.xlu1 %7074, %v775_v13   ;;  %865 = vperm.xlu0 %7073, %v774_v14  }
 0x215   : > { %p7898_p4 = pnand %p7897_p10, %p7891_p3 }
 0x218   : > { %1098 = vperm.xlu1 %7074, %v807_v15   ;;  %1093 = vperm.xlu0 %7073, %v806_v16  }
 0x21c   : > { %880 = vperm.xlu1 %7074, %v777_v17   ;;  %875 = vperm.xlu0 %7073, %v776_v18  }
 0x220   : > { %1108 = vperm.xlu1 %7074, %v809_v19   ;;  %1103 = vperm.xlu0 %7073, %v808_v20  }
 0x224   : > { %890 = vperm.xlu1 %7074, %v779_v21   ;;  %885 = vperm.xlu0 %7073, %v778_v22  }
 0x228   : > { %1118 = vperm.xlu1 %7074, %v811_v23   ;;  %1113 = vperm.xlu0 %7073, %v810_v24   ;;  %v8729_v24 = vadd.s32 8, %v8708_v62 }
 0x22a   : > { %vm1463_vm4 = vcmp.eq.s32.totalorder %v8729_v24, 15 }
 0x22c   : > { %900 = vperm.xlu1 %7074, %v781_v25   ;;  %895 = vperm.xlu0 %7073, %v780_v26  }
 0x230   : > { %1128 = vperm.xlu1 %7074, %v813_v27   ;;  %1123 = vperm.xlu0 %7073, %v812_v28  }
 0x234   : > { %910 = vperm.xlu1 %7074, %v783_v29   ;;  %905 = vperm.xlu0 %7073, %v782_v30  }
 0x238   : > { %1138 = vperm.xlu1 %7074, %v815_v31   ;;  %1133 = vperm.xlu0 %7073, %v814_v32  }
 0x23c   : > { %920 = vperm.xlu1 %7074, %v785_v33   ;;  %915 = vperm.xlu0 %7073, %v784_v34  }
 0x240   : > { %1148 = vperm.xlu1 %7074, %v817_v35   ;;  %1143 = vperm.xlu0 %7073, %v816_v36  }
 0x244   : > { %930 = vperm.xlu1 %7074, %v787_v37   ;;  %925 = vperm.xlu0 %7073, %v786_v38  }
 0x248   : > { %1158 = vperm.xlu1 %7074, %v819_v39   ;;  %1153 = vperm.xlu0 %7073, %v818_v40  }
 0x24c   : > { %940 = vperm.xlu1 %7074, %v789_v41   ;;  %935 = vperm.xlu0 %7073, %v788_v42   ;;  %v7395_v41 = vld [vmem:[#allocation12 + $0x18] sm:$0xff]  }
 0x24d   : > { %6342 = vmatprep.subr.bf16.mxu0 %v7395_v41 }
 0x24e   : > { %6343 = vmatpush3.bf16.msra.mxu0 %v7395_v41 }
 0x250   : > { %1168 = vperm.xlu1 %7074, %v821_v43   ;;  %1163 = vperm.xlu0 %7073, %v820_v44  }
 0x254   : > { %950 = vperm.xlu1 %7074, %v791_v45   ;;  %945 = vperm.xlu0 %7073, %v790_v46  }
 0x258   : > { %1178 = vperm.xlu1 %7074, %v823_v47   ;;  %1173 = vperm.xlu0 %7073, %v822_v48  }
 0x25c   : > { %960 = vperm.xlu1 %7074, %v793_v49   ;;  %955 = vperm.xlu0 %7073, %v792_v50  }
 0x260   : > { %1188 = vperm.xlu1 %7074, %v825_v51   ;;  %1183 = vperm.xlu0 %7073, %v824_v52   ;;  %v7396_v52 = vld [vmem:[#allocation12 + $0x20] sm:$0xff]  }
 0x261   : > { %6344 = vmatprep.subr.bf16.mxu0 %v7396_v52 }
 0x262   : > { %6345 = vmatpush3.bf16.msra.mxu0 %v7396_v52 }
 0x263   : > { %6346 = vmatprep.subr.bf16.mxu0 %v7397_v5 }
 0x264   : > { %970 = vperm.xlu1 %7074, %v795_v53   ;;  %965 = vperm.xlu0 %7073, %v794_v54  }
 0x266   : > { %6347 = vmatpush3.bf16.msra.mxu0 %v7397_v5 }
 0x268   : > { %1198 = vperm.xlu1 %7074, %v827_v55   ;;  %1193 = vperm.xlu0 %7073, %v826_v56  }
 0x26c   : > { %980 = vperm.xlu1 %7074, %v797_v57   ;;  %975 = vperm.xlu0 %7073, %v796_v58  }
 0x270   : > { %1208 = vperm.xlu1 %7074, %v829_v60   ;;  %1203 = vperm.xlu0 %7073, %v828_v61  }
 0x274   : > { %990 = vperm.xlu1 %7074, %v799_v63   ;;  %985 = vperm.xlu0 %7073, %v798_v0  }
 0x278   : > { %1218 = vperm.xlu1 %7074, %v831_v3   ;;  %1213 = vperm.xlu0 %7073, %v830_v4  }
 0x27b   : > { %v1064_v8 = vpop.permute.xlu1 %1063  ;;  %v836_v9 = vpop.permute.xlu0 %835 }
 0x27c   : > { %v1225_v10 = vmul.f32 %v8716_v6, %v1064_v8  ;;  %v997_v11 = vmul.f32 %v8718_v7, %v836_v9 }
 0x27e   : > { %v1257_v13 = vadd.f32 %v1225_v10, %v997_v11 }
 0x27f   : > { %v1069_v14 = vpop.permute.xlu1 %1068  ;;  %v841_v15 = vpop.permute.xlu0 %840 }
 0x280   : > { %v1296_v16 = vadd.f32 %v8722_v12, %v1257_v13  ;;  %v1226_v17 = vmul.f32 %v8716_v6, %v1069_v14  ;;  %v998_v18 = vmul.f32 %v8718_v7, %v841_v15 }
 0x282   : > { %v1258_v19 = vadd.f32 %v1226_v17, %v998_v18  ;;  %v1328_v20 = vmax.f32 %v1296_v16, 0.0 }
 0x283   : > { %v851_v21 = vpop.permute.xlu1 %850  ;;  %v846_v22 = vpop.permute.xlu0 %845 }
 0x284   : > { %v1297_v23 = vadd.f32 %v8722_v12, %v1258_v19  ;;  %v1365_v26 = vrot.slane %v1328_v20, 7  ;;  %v1000_v27 = vmul.f32 %v8718_v7, %v851_v21  ;;  %v999_v28 = vmul.f32 %v8718_v7, %v846_v22 }
 0x285   : > { %v1464_v35 = vrot.slane %v1328_v20, 1 }
 0x286   : > { %v1329_v25 = vmax.f32 %v1297_v23, 0.0 }
 0x287   : > { %v1079_v29 = vpop.permute.xlu1 %1078  ;;  %v1074_v30 = vpop.permute.xlu0 %1073 }
 0x288   : > { %v1381_v31 = vrot.slane %v1329_v25, 7  ;;  %v1228_v32 = vmul.f32 %v8716_v6, %v1079_v29  ;;  %v1227_v33 = vmul.f32 %v8716_v6, %v1074_v30  ;;  %v7075_v34 = vpack.i.bf16 %v1329_v25, %v1328_v20 }
 0x289   : > { %v1480_v36 = vrot.slane %v1329_v25, 1 }
 0x28a   : > { %v1260_v37 = vadd.f32 %v1228_v32, %v1000_v27  ;;  %v1259_v38 = vadd.f32 %v1227_v33, %v999_v28  ;;  %7076 = vrot.lane.b32.xlu0 %v7075_v34, %s8013_s27  ;;  %v8741_v39 = vsel %vm1397_vm2, %v1365_v26, %v1381_v31  ;;  %v8745_v40 = vsel %vm1397_vm2, %v1381_v31, %v1365_v26 }
 0x28b   : > { %v861_v42 = vpop.permute.xlu1 %860  ;;  %v856_v43 = vpop.permute.xlu0 %855  ;;  %v1497_v44 = vsel %vm1496_vm3, %v1464_v35, %v1480_v36  ;;  %v1513_v45 = vsel %vm1496_vm3, %v1480_v36, %v1464_v35 }
 0x28c   : > { %v1299_v46 = vadd.f32 %v8722_v12, %v1260_v37  ;;  %v1298_v47 = vadd.f32 %v8722_v12, %v1259_v38  ;;  %v1530_v48 = vsel %vm1463_vm4, 0.0, %v1513_v45  ;;  %v1002_v53 = vmul.f32 %v8718_v7, %v861_v42 }
 0x28d   : > { %v7085_v51 = vpack.i.bf16 %v1530_v48, %v1497_v44  ;;  %v1001_v54 = vmul.f32 %v8718_v7, %v856_v43 }
 0x28e   : > { %v1331_v49 = vmax.f32 %v1299_v46, 0.0  ;;  %v1330_v50 = vmax.f32 %v1298_v47, 0.0 }
 0x28f   : > { %v1089_v55 = vpop.permute.xlu1 %1088  ;;  %v1084_v56 = vpop.permute.xlu0 %1083  ;;  %7086 = vrot.lane.b32.xlu0 %v7085_v51, %s8014_s26 }
 0x290   : > { %v1382_v57 = vrot.slane %v1331_v49, 7  ;;  %v1366_v58 = vrot.slane %v1330_v50, 7  ;;  %v1230_v59 = vmul.f32 %v8716_v6, %v1089_v55  ;;  %v1229_v60 = vmul.f32 %v8716_v6, %v1084_v56 }
 0x291   : > { %v7080_v61 = vpack.i.bf16 %v1331_v49, %v1330_v50  ;;  %v1465_v63 = vrot.slane %v1330_v50, 1  ;;  %v1481_v0 = vrot.slane %v1331_v49, 1 }
 0x292   : > { %v1262_v1 = vadd.f32 %v1230_v59, %v1002_v53  ;;  %v1261_v2 = vadd.f32 %v1229_v60, %v1001_v54  ;;  %v8762_v3 = vsel %vm1397_vm2, %v1366_v58, %v1382_v57  ;;  %v8766_v4 = vsel %vm1397_vm2, %v1382_v57, %v1366_v58 }
 0x293   : > { %7081 = vrot.lane.b32.xlu1 %v7080_v61, %s8013_s27  ;;  %v871_v8 = vpop.permute.xlu1 %870  ;;  %v866_v9 = vpop.permute.xlu0 %865  ;;  %v1498_v10 = vsel %vm1496_vm3, %v1465_v63, %v1481_v0  ;;  %v1514_v11 = vsel %vm1496_vm3, %v1481_v0, %v1465_v63 }
 0x294   : > { %v1301_v13 = vadd.f32 %v8722_v12, %v1262_v1  ;;  %v1300_v14 = vadd.f32 %v8722_v12, %v1261_v2  ;;  %v1532_v15 = vsel %vm1463_vm4, 0.0, %v1514_v11  ;;  %v1004_v19 = vmul.f32 %v8718_v7, %v871_v8 }
 0x295   : > { %v7095_v18 = vpack.i.bf16 %v1532_v15, %v1498_v10  ;;  %v1003_v20 = vmul.f32 %v8718_v7, %v866_v9 }
 0x296   : > { %v1333_v16 = vmax.f32 %v1301_v13, 0.0  ;;  %v1332_v17 = vmax.f32 %v1300_v14, 0.0 }
 0x297   : > { %v1099_v21 = vpop.permute.xlu1 %1098  ;;  %v1094_v22 = vpop.permute.xlu0 %1093  ;;  %7096 = vrot.lane.b32.xlu1 %v7095_v18, %s8014_s26 }
 0x298   : > { %v1383_v23 = vrot.slane %v1333_v16, 7  ;;  %v1367_v25 = vrot.slane %v1332_v17, 7  ;;  %v1232_v26 = vmul.f32 %v8716_v6, %v1099_v21  ;;  %v1231_v27 = vmul.f32 %v8716_v6, %v1094_v22 }
 0x299   : > { %v7090_v28 = vpack.i.bf16 %v1333_v16, %v1332_v17  ;;  %v1466_v29 = vrot.slane %v1332_v17, 1  ;;  %v1482_v30 = vrot.slane %v1333_v16, 1 }
 0x29a   : > { %v1264_v31 = vadd.f32 %v1232_v26, %v1004_v19  ;;  %v1263_v32 = vadd.f32 %v1231_v27, %v1003_v20  ;;  %v8784_v33 = vsel %vm1397_vm2, %v1367_v25, %v1383_v23  ;;  %v8788_v34 = vsel %vm1397_vm2, %v1383_v23, %v1367_v25 }
 0x29b   : > { %7091 = vrot.lane.b32.xlu0 %v7090_v28, %s8013_s27  ;;  %v881_v35 = vpop.permute.xlu1 %880  ;;  %v876_v36 = vpop.permute.xlu0 %875  ;;  %v1499_v37 = vsel %vm1496_vm3, %v1466_v29, %v1482_v30  ;;  %v1515_v38 = vsel %vm1496_vm3, %v1482_v30, %v1466_v29 }
 0x29c   : > { %v1303_v41 = vadd.f32 %v8722_v12, %v1264_v31  ;;  %v1302_v42 = vadd.f32 %v8722_v12, %v1263_v32  ;;  %v1534_v43 = vsel %vm1463_vm4, 0.0, %v1515_v38  ;;  %v1006_v47 = vmul.f32 %v8718_v7, %v881_v35 }
 0x29d   : > { %v7105_v46 = vpack.i.bf16 %v1534_v43, %v1499_v37  ;;  %v1005_v48 = vmul.f32 %v8718_v7, %v876_v36 }
 0x29e   : > { %v1335_v44 = vmax.f32 %v1303_v41, 0.0  ;;  %v1334_v45 = vmax.f32 %v1302_v42, 0.0 }
 0x29f   : > { %v1109_v49 = vpop.permute.xlu1 %1108  ;;  %v1104_v50 = vpop.permute.xlu0 %1103  ;;  %7106 = vrot.lane.b32.xlu0 %v7105_v46, %s8014_s26 }
 0x2a0   : > { %v1384_v51 = vrot.slane %v1335_v44, 7  ;;  %v1368_v52 = vrot.slane %v1334_v45, 7  ;;  %v1234_v53 = vmul.f32 %v8716_v6, %v1109_v49  ;;  %v1233_v54 = vmul.f32 %v8716_v6, %v1104_v50 }
 0x2a1   : > { %v7100_v55 = vpack.i.bf16 %v1335_v44, %v1334_v45  ;;  %v1467_v56 = vrot.slane %v1334_v45, 1  ;;  %v1483_v57 = vrot.slane %v1335_v44, 1 }
 0x2a2   : > { %v1266_v58 = vadd.f32 %v1234_v53, %v1006_v47  ;;  %v1265_v59 = vadd.f32 %v1233_v54, %v1005_v48  ;;  %v8806_v60 = vsel %vm1397_vm2, %v1368_v52, %v1384_v51  ;;  %v8810_v61 = vsel %vm1397_vm2, %v1384_v51, %v1368_v52 }
 0x2a3   : > { %7101 = vrot.lane.b32.xlu1 %v7100_v55, %s8013_s27  ;;  %v891_v63 = vpop.permute.xlu1 %890  ;;  %v886_v0 = vpop.permute.xlu0 %885  ;;  %v1500_v1 = vsel %vm1496_vm3, %v1467_v56, %v1483_v57  ;;  %v1516_v2 = vsel %vm1496_vm3, %v1483_v57, %v1467_v56 }
 0x2a4   : > { %v1305_v5 = vadd.f32 %v8722_v12, %v1266_v58  ;;  %v1304_v8 = vadd.f32 %v8722_v12, %v1265_v59  ;;  %v1536_v9 = vsel %vm1463_vm4, 0.0, %v1516_v2  ;;  %v1008_v14 = vmul.f32 %v8718_v7, %v891_v63 }
 0x2a5   : > { %v7115_v13 = vpack.i.bf16 %v1536_v9, %v1500_v1  ;;  %v1007_v15 = vmul.f32 %v8718_v7, %v886_v0 }
 0x2a6   : > { %v1337_v10 = vmax.f32 %v1305_v5, 0.0  ;;  %v1336_v11 = vmax.f32 %v1304_v8, 0.0 }
 0x2a7   : > { %v1119_v16 = vpop.permute.xlu1 %1118  ;;  %v1114_v17 = vpop.permute.xlu0 %1113  ;;  %7116 = vrot.lane.b32.xlu1 %v7115_v13, %s8014_s26 }
 0x2a8   : > { %v1385_v18 = vrot.slane %v1337_v10, 7  ;;  %v1369_v19 = vrot.slane %v1336_v11, 7  ;;  %v1236_v20 = vmul.f32 %v8716_v6, %v1119_v16  ;;  %v1235_v21 = vmul.f32 %v8716_v6, %v1114_v17 }
 0x2a9   : > { %v7110_v22 = vpack.i.bf16 %v1337_v10, %v1336_v11  ;;  %v1468_v23 = vrot.slane %v1336_v11, 1  ;;  %v1484_v25 = vrot.slane %v1337_v10, 1 }
 0x2aa   : > { %v1268_v26 = vadd.f32 %v1236_v20, %v1008_v14  ;;  %v1267_v27 = vadd.f32 %v1235_v21, %v1007_v15  ;;  %v8828_v28 = vsel %vm1397_vm2, %v1369_v19, %v1385_v18  ;;  %v8832_v29 = vsel %vm1397_vm2, %v1385_v18, %v1369_v19 }
 0x2ab   : > { %7111 = vrot.lane.b32.xlu0 %v7110_v22, %s8013_s27  ;;  %v901_v30 = vpop.permute.xlu1 %900  ;;  %v896_v31 = vpop.permute.xlu0 %895  ;;  %v1501_v32 = vsel %vm1496_vm3, %v1468_v23, %v1484_v25  ;;  %v1517_v35 = vsel %vm1496_vm3, %v1484_v25, %v1468_v23 }
 0x2ac   : > { %v1307_v36 = vadd.f32 %v8722_v12, %v1268_v26  ;;  %v1306_v37 = vadd.f32 %v8722_v12, %v1267_v27  ;;  %v1538_v38 = vsel %vm1463_vm4, 0.0, %v1517_v35  ;;  %v1010_v44 = vmul.f32 %v8718_v7, %v901_v30 }
 0x2ad   : > { %v7125_v43 = vpack.i.bf16 %v1538_v38, %v1501_v32  ;;  %v1009_v45 = vmul.f32 %v8718_v7, %v896_v31 }
 0x2ae   : > { %v1339_v41 = vmax.f32 %v1307_v36, 0.0  ;;  %v1338_v42 = vmax.f32 %v1306_v37, 0.0 }
 0x2af   : > { %v1129_v46 = vpop.permute.xlu1 %1128  ;;  %v1124_v47 = vpop.permute.xlu0 %1123  ;;  %7126 = vrot.lane.b32.xlu0 %v7125_v43, %s8014_s26 }
 0x2b0   : > { %v1386_v48 = vrot.slane %v1339_v41, 7  ;;  %v1370_v49 = vrot.slane %v1338_v42, 7  ;;  %v1238_v50 = vmul.f32 %v8716_v6, %v1129_v46  ;;  %v1237_v51 = vmul.f32 %v8716_v6, %v1124_v47 }
 0x2b1   : > { %v7120_v52 = vpack.i.bf16 %v1339_v41, %v1338_v42  ;;  %v1469_v53 = vrot.slane %v1338_v42, 1  ;;  %v1485_v54 = vrot.slane %v1339_v41, 1 }
 0x2b2   : > { %v1270_v55 = vadd.f32 %v1238_v50, %v1010_v44  ;;  %v1269_v56 = vadd.f32 %v1237_v51, %v1009_v45  ;;  %v8850_v57 = vsel %vm1397_vm2, %v1370_v49, %v1386_v48  ;;  %v8854_v58 = vsel %vm1397_vm2, %v1386_v48, %v1370_v49 }
 0x2b3   : > { %7121 = vrot.lane.b32.xlu1 %v7120_v52, %s8013_s27  ;;  %v911_v59 = vpop.permute.xlu1 %910  ;;  %v906_v63 = vpop.permute.xlu0 %905  ;;  %v1502_v0 = vsel %vm1496_vm3, %v1469_v53, %v1485_v54  ;;  %v1518_v1 = vsel %vm1496_vm3, %v1485_v54, %v1469_v53 }
 0x2b4   : > { %v1309_v2 = vadd.f32 %v8722_v12, %v1270_v55  ;;  %v1308_v5 = vadd.f32 %v8722_v12, %v1269_v56  ;;  %v1540_v8 = vsel %vm1463_vm4, 0.0, %v1518_v1  ;;  %v1012_v13 = vmul.f32 %v8718_v7, %v911_v59 }
 0x2b5   : > { %v7135_v11 = vpack.i.bf16 %v1540_v8, %v1502_v0  ;;  %v1011_v14 = vmul.f32 %v8718_v7, %v906_v63 }
 0x2b6   : > { %v1341_v9 = vmax.f32 %v1309_v2, 0.0  ;;  %v1340_v10 = vmax.f32 %v1308_v5, 0.0 }
 0x2b7   : > { %v1139_v15 = vpop.permute.xlu1 %1138  ;;  %v1134_v16 = vpop.permute.xlu0 %1133  ;;  %7136 = vrot.lane.b32.xlu1 %v7135_v11, %s8014_s26 }
 0x2b8   : > { %v1387_v17 = vrot.slane %v1341_v9, 7  ;;  %v1371_v18 = vrot.slane %v1340_v10, 7  ;;  %v1240_v19 = vmul.f32 %v8716_v6, %v1139_v15  ;;  %v1239_v20 = vmul.f32 %v8716_v6, %v1134_v16 }
 0x2b9   : > { %v7130_v21 = vpack.i.bf16 %v1341_v9, %v1340_v10  ;;  %v1470_v22 = vrot.slane %v1340_v10, 1  ;;  %v1486_v23 = vrot.slane %v1341_v9, 1 }
 0x2ba   : > { %v1272_v25 = vadd.f32 %v1240_v19, %v1012_v13  ;;  %v1271_v26 = vadd.f32 %v1239_v20, %v1011_v14  ;;  %v8872_v27 = vsel %vm1397_vm2, %v1371_v18, %v1387_v17  ;;  %v8876_v30 = vsel %vm1397_vm2, %v1387_v17, %v1371_v18 }
 0x2bb   : > { %7131 = vrot.lane.b32.xlu0 %v7130_v21, %s8013_s27  ;;  %v921_v31 = vpop.permute.xlu1 %920  ;;  %v916_v32 = vpop.permute.xlu0 %915  ;;  %v1503_v35 = vsel %vm1496_vm3, %v1470_v22, %v1486_v23  ;;  %v1519_v36 = vsel %vm1496_vm3, %v1486_v23, %v1470_v22 }
 0x2bc   : > { %v1311_v37 = vadd.f32 %v8722_v12, %v1272_v25  ;;  %v1310_v38 = vadd.f32 %v8722_v12, %v1271_v26  ;;  %v1542_v41 = vsel %vm1463_vm4, 0.0, %v1519_v36  ;;  %v1014_v45 = vmul.f32 %v8718_v7, %v921_v31 }
 0x2bd   : > { %v7145_v44 = vpack.i.bf16 %v1542_v41, %v1503_v35  ;;  %v1013_v46 = vmul.f32 %v8718_v7, %v916_v32 }
 0x2be   : > { %v1343_v42 = vmax.f32 %v1311_v37, 0.0  ;;  %v1342_v43 = vmax.f32 %v1310_v38, 0.0 }
 0x2bf   : > { %v1149_v47 = vpop.permute.xlu1 %1148  ;;  %v1144_v48 = vpop.permute.xlu0 %1143  ;;  %7146 = vrot.lane.b32.xlu0 %v7145_v44, %s8014_s26 }
 0x2c0   : > { %v1388_v49 = vrot.slane %v1343_v42, 7  ;;  %v1372_v50 = vrot.slane %v1342_v43, 7  ;;  %v1242_v51 = vmul.f32 %v8716_v6, %v1149_v47  ;;  %v1241_v52 = vmul.f32 %v8716_v6, %v1144_v48 }
 0x2c1   : > { %v7140_v53 = vpack.i.bf16 %v1343_v42, %v1342_v43  ;;  %v1471_v54 = vrot.slane %v1342_v43, 1  ;;  %v1487_v55 = vrot.slane %v1343_v42, 1 }
 0x2c2   : > { %v1274_v56 = vadd.f32 %v1242_v51, %v1014_v45  ;;  %v1273_v59 = vadd.f32 %v1241_v52, %v1013_v46  ;;  %v8894_v63 = vsel %vm1397_vm2, %v1372_v50, %v1388_v49  ;;  %v8898_v0 = vsel %vm1397_vm2, %v1388_v49, %v1372_v50 }
 0x2c3   : > { %7141 = vrot.lane.b32.xlu1 %v7140_v53, %s8013_s27  ;;  %v931_v1 = vpop.permute.xlu1 %930  ;;  %v926_v2 = vpop.permute.xlu0 %925  ;;  %v1504_v5 = vsel %vm1496_vm3, %v1471_v54, %v1487_v55  ;;  %v1520_v8 = vsel %vm1496_vm3, %v1487_v55, %v1471_v54 }
 0x2c4   : > { %v1313_v9 = vadd.f32 %v8722_v12, %v1274_v56  ;;  %v1312_v10 = vadd.f32 %v8722_v12, %v1273_v59  ;;  %v1544_v11 = vsel %vm1463_vm4, 0.0, %v1520_v8  ;;  %v1016_v16 = vmul.f32 %v8718_v7, %v931_v1  ;;  %v8936_v1 = vld [vmem:[#allocation12] sm:$0xff]  }
 0x2c5   : > { %v7150_v15 = vpack.i.bf16 %v1544_v11, %v1504_v5  ;;  %v1015_v17 = vmul.f32 %v8718_v7, %v926_v2  ;;  %6380 = vmatprep.subr.bf16.mxu0 %v8936_v1 }
 0x2c6   : > { %v1345_v13 = vmax.f32 %v1313_v9, 0.0  ;;  %v1344_v14 = vmax.f32 %v1312_v10, 0.0 }
 0x2c7   : > { %v1159_v18 = vpop.permute.xlu1 %1158  ;;  %v1154_v19 = vpop.permute.xlu0 %1153  ;;  %7151 = vrot.lane.b32.xlu1 %v7150_v15, %s8014_s26 }
 0x2c8   : > { %v1389_v20 = vrot.slane %v1345_v13, 7  ;;  %v1373_v21 = vrot.slane %v1344_v14, 7  ;;  %v1244_v22 = vmul.f32 %v8716_v6, %v1159_v18  ;;  %v1243_v23 = vmul.f32 %v8716_v6, %v1154_v19 }
 0x2c9   : > { %v7155_v25 = vpack.i.bf16 %v1345_v13, %v1344_v14  ;;  %v1472_v26 = vrot.slane %v1344_v14, 1  ;;  %v1488_v31 = vrot.slane %v1345_v13, 1 }
 0x2ca   : > { %v1276_v32 = vadd.f32 %v1244_v22, %v1016_v16  ;;  %v1275_v35 = vadd.f32 %v1243_v23, %v1015_v17  ;;  %v8916_v36 = vsel %vm1397_vm2, %v1373_v21, %v1389_v20  ;;  %v8920_v37 = vsel %vm1397_vm2, %v1389_v20, %v1373_v21 }
 0x2cb   : > { %7156 = vrot.lane.b32.xlu0 %v7155_v25, %s8013_s27  ;;  %v941_v38 = vpop.permute.xlu1 %940  ;;  %v936_v41 = vpop.permute.xlu0 %935  ;;  %v1505_v42 = vsel %vm1496_vm3, %v1472_v26, %v1488_v31  ;;  %v1521_v43 = vsel %vm1496_vm3, %v1488_v31, %v1472_v26 }
 0x2cc   : > { %v1315_v44 = vadd.f32 %v8722_v12, %v1276_v32  ;;  %v1314_v45 = vadd.f32 %v8722_v12, %v1275_v35  ;;  %v1546_v46 = vsel %vm1463_vm4, 0.0, %v1521_v43  ;;  %v1018_v50 = vmul.f32 %v8718_v7, %v941_v38 }
 0x2cd   : > { %v7165_v49 = vpack.i.bf16 %v1546_v46, %v1505_v42  ;;  %v1017_v51 = vmul.f32 %v8718_v7, %v936_v41 }
 0x2ce   : > { %v1347_v47 = vmax.f32 %v1315_v44, 0.0  ;;  %v1346_v48 = vmax.f32 %v1314_v45, 0.0 }
 0x2cf   : > { %v1169_v52 = vpop.permute.xlu1 %1168  ;;  %v1164_v53 = vpop.permute.xlu0 %1163  ;;  %7166 = vrot.lane.b32.xlu0 %v7165_v49, %s8014_s26 }
 0x2d0   : > { %v1390_v54 = vrot.slane %v1347_v47, 7  ;;  %v1374_v55 = vrot.slane %v1346_v48, 7  ;;  %v1246_v56 = vmul.f32 %v8716_v6, %v1169_v52  ;;  %v1245_v59 = vmul.f32 %v8716_v6, %v1164_v53 }
 0x2d1   : > { %v7160_v2 = vpack.i.bf16 %v1347_v47, %v1346_v48  ;;  %v1473_v5 = vrot.slane %v1346_v48, 1  ;;  %v1489_v8 = vrot.slane %v1347_v47, 1 }
 0x2d2   : > { %v1278_v9 = vadd.f32 %v1246_v56, %v1018_v50  ;;  %v1277_v10 = vadd.f32 %v1245_v59, %v1017_v51  ;;  %v8940_v11 = vsel %vm1397_vm2, %v1374_v55, %v1390_v54  ;;  %v8944_v13 = vsel %vm1397_vm2, %v1390_v54, %v1374_v55 }
 0x2d3   : > { %7161 = vrot.lane.b32.xlu1 %v7160_v2, %s8013_s27  ;;  %v951_v14 = vpop.permute.xlu1 %950  ;;  %v946_v15 = vpop.permute.xlu0 %945  ;;  %v1506_v16 = vsel %vm1496_vm3, %v1473_v5, %v1489_v8  ;;  %v1522_v17 = vsel %vm1496_vm3, %v1489_v8, %v1473_v5 }
 0x2d4   : > { %v1317_v18 = vadd.f32 %v8722_v12, %v1278_v9  ;;  %v1316_v19 = vadd.f32 %v8722_v12, %v1277_v10  ;;  %v1548_v20 = vsel %vm1463_vm4, 0.0, %v1522_v17  ;;  %v1020_v25 = vmul.f32 %v8718_v7, %v951_v14 }
 0x2d5   : > { %v7170_v23 = vpack.i.bf16 %v1548_v20, %v1506_v16  ;;  %v1019_v26 = vmul.f32 %v8718_v7, %v946_v15 }
 0x2d6   : > { %v1349_v21 = vmax.f32 %v1317_v18, 0.0  ;;  %v1348_v22 = vmax.f32 %v1316_v19, 0.0 }
 0x2d7   : > { %v1179_v31 = vpop.permute.xlu1 %1178  ;;  %v1174_v32 = vpop.permute.xlu0 %1173  ;;  %7171 = vrot.lane.b32.xlu1 %v7170_v23, %s8014_s26 }
 0x2d8   : > { %v1391_v35 = vrot.slane %v1349_v21, 7  ;;  %v1375_v38 = vrot.slane %v1348_v22, 7  ;;  %v1248_v41 = vmul.f32 %v8716_v6, %v1179_v31  ;;  %v1247_v42 = vmul.f32 %v8716_v6, %v1174_v32 }
 0x2d9   : > { %v7175_v43 = vpack.i.bf16 %v1349_v21, %v1348_v22  ;;  %v1474_v44 = vrot.slane %v1348_v22, 1  ;;  %v1490_v45 = vrot.slane %v1349_v21, 1 }
 0x2da   : > { %v1280_v46 = vadd.f32 %v1248_v41, %v1020_v25  ;;  %v1279_v47 = vadd.f32 %v1247_v42, %v1019_v26  ;;  %v8963_v48 = vsel %vm1397_vm2, %v1375_v38, %v1391_v35  ;;  %v8967_v49 = vsel %vm1397_vm2, %v1391_v35, %v1375_v38 }
 0x2db   : > { %7176 = vrot.lane.b32.xlu0 %v7175_v43, %s8013_s27  ;;  %v961_v50 = vpop.permute.xlu1 %960  ;;  %v956_v51 = vpop.permute.xlu0 %955  ;;  %v1507_v52 = vsel %vm1496_vm3, %v1474_v44, %v1490_v45  ;;  %v1523_v53 = vsel %vm1496_vm3, %v1490_v45, %v1474_v44 }
 0x2dc   : > { %v1319_v54 = vadd.f32 %v8722_v12, %v1280_v46  ;;  %v1318_v55 = vadd.f32 %v8722_v12, %v1279_v47  ;;  %v1550_v56 = vsel %vm1463_vm4, 0.0, %v1523_v53  ;;  %v1022_v8 = vmul.f32 %v8718_v7, %v961_v50 }
 0x2dd   : > { %v7185_v5 = vpack.i.bf16 %v1550_v56, %v1507_v52  ;;  %v1021_v9 = vmul.f32 %v8718_v7, %v956_v51 }
 0x2de   : > { %v1351_v59 = vmax.f32 %v1319_v54, 0.0  ;;  %v1350_v2 = vmax.f32 %v1318_v55, 0.0 }
 0x2df   : > { %v1189_v10 = vpop.permute.xlu1 %1188  ;;  %v1184_v14 = vpop.permute.xlu0 %1183  ;;  %7186 = vrot.lane.b32.xlu0 %v7185_v5, %s8014_s26 }
 0x2e0   : > { %v1392_v15 = vrot.slane %v1351_v59, 7  ;;  %v1376_v16 = vrot.slane %v1350_v2, 7  ;;  %v1250_v17 = vmul.f32 %v8716_v6, %v1189_v10  ;;  %v1249_v18 = vmul.f32 %v8716_v6, %v1184_v14 }
 0x2e1   : > { %v7180_v19 = vpack.i.bf16 %v1351_v59, %v1350_v2  ;;  %v1475_v20 = vrot.slane %v1350_v2, 1  ;;  %v1491_v21 = vrot.slane %v1351_v59, 1 }
 0x2e2   : > { %v1282_v22 = vadd.f32 %v1250_v17, %v1022_v8  ;;  %v1281_v23 = vadd.f32 %v1249_v18, %v1021_v9  ;;  %v8985_v25 = vsel %vm1397_vm2, %v1376_v16, %v1392_v15  ;;  %v8989_v26 = vsel %vm1397_vm2, %v1392_v15, %v1376_v16 }
 0x2e3   : > { %7181 = vrot.lane.b32.xlu1 %v7180_v19, %s8013_s27  ;;  %v971_v31 = vpop.permute.xlu1 %970  ;;  %v966_v32 = vpop.permute.xlu0 %965  ;;  %v1508_v35 = vsel %vm1496_vm3, %v1475_v20, %v1491_v21  ;;  %v1524_v38 = vsel %vm1496_vm3, %v1491_v21, %v1475_v20 }
 0x2e4   : > { %v1321_v41 = vadd.f32 %v8722_v12, %v1282_v22  ;;  %v1320_v42 = vadd.f32 %v8722_v12, %v1281_v23  ;;  %v1552_v43 = vsel %vm1463_vm4, 0.0, %v1524_v38  ;;  %v1024_v47 = vmul.f32 %v8718_v7, %v971_v31 }
 0x2e5   : > { %v7190_v46 = vpack.i.bf16 %v1552_v43, %v1508_v35  ;;  %v1023_v50 = vmul.f32 %v8718_v7, %v966_v32 }
 0x2e6   : > { %v1353_v44 = vmax.f32 %v1321_v41, 0.0  ;;  %v1352_v45 = vmax.f32 %v1320_v42, 0.0 }
 0x2e7   : > { %v1199_v51 = vpop.permute.xlu1 %1198  ;;  %v1194_v52 = vpop.permute.xlu0 %1193  ;;  %7191 = vrot.lane.b32.xlu1 %v7190_v46, %s8014_s26 }
 0x2e8   : > { %v1393_v53 = vrot.slane %v1353_v44, 7  ;;  %v1377_v54 = vrot.slane %v1352_v45, 7  ;;  %v1252_v55 = vmul.f32 %v8716_v6, %v1199_v51  ;;  %v1251_v56 = vmul.f32 %v8716_v6, %v1194_v52 }
 0x2e9   : > { %v7195_v59 = vpack.i.bf16 %v1353_v44, %v1352_v45  ;;  %v1476_v2 = vrot.slane %v1352_v45, 1  ;;  %v1492_v5 = vrot.slane %v1353_v44, 1 }
 0x2ea   : > { %v1284_v8 = vadd.f32 %v1252_v55, %v1024_v47  ;;  %v1283_v9 = vadd.f32 %v1251_v56, %v1023_v50  ;;  %v9007_v10 = vsel %vm1397_vm2, %v1377_v54, %v1393_v53  ;;  %v9011_v14 = vsel %vm1397_vm2, %v1393_v53, %v1377_v54 }
 0x2eb   : > { %7196 = vrot.lane.b32.xlu0 %v7195_v59, %s8013_s27  ;;  %v981_v15 = vpop.permute.xlu1 %980  ;;  %v976_v16 = vpop.permute.xlu0 %975  ;;  %v1509_v17 = vsel %vm1496_vm3, %v1476_v2, %v1492_v5  ;;  %v1525_v18 = vsel %vm1496_vm3, %v1492_v5, %v1476_v2 }
 0x2ec   : > { %v1323_v19 = vadd.f32 %v8722_v12, %v1284_v8  ;;  %v1322_v20 = vadd.f32 %v8722_v12, %v1283_v9  ;;  %v1554_v21 = vsel %vm1463_vm4, 0.0, %v1525_v18  ;;  %v1026_v32 = vmul.f32 %v8718_v7, %v981_v15 }
 0x2ed   : > { %v7205_v31 = vpack.i.bf16 %v1554_v21, %v1509_v17  ;;  %v1025_v35 = vmul.f32 %v8718_v7, %v976_v16 }
 0x2ee   : > { %v1355_v22 = vmax.f32 %v1323_v19, 0.0  ;;  %v1354_v23 = vmax.f32 %v1322_v20, 0.0 }
 0x2ef   : > { %v1209_v38 = vpop.permute.xlu1 %1208  ;;  %v1204_v41 = vpop.permute.xlu0 %1203  ;;  %7206 = vrot.lane.b32.xlu0 %v7205_v31, %s8014_s26 }
 0x2f0   : > { %v1394_v42 = vrot.slane %v1355_v22, 7  ;;  %v1378_v43 = vrot.slane %v1354_v23, 7  ;;  %v1254_v44 = vmul.f32 %v8716_v6, %v1209_v38  ;;  %v1253_v45 = vmul.f32 %v8716_v6, %v1204_v41 }
 0x2f1   : > { %v7200_v46 = vpack.i.bf16 %v1355_v22, %v1354_v23  ;;  %v1477_v47 = vrot.slane %v1354_v23, 1  ;;  %v1493_v50 = vrot.slane %v1355_v22, 1 }
 0x2f2   : > { %v1286_v51 = vadd.f32 %v1254_v44, %v1026_v32  ;;  %v1285_v52 = vadd.f32 %v1253_v45, %v1025_v35  ;;  %v9029_v53 = vsel %vm1397_vm2, %v1378_v43, %v1394_v42  ;;  %v9033_v54 = vsel %vm1397_vm2, %v1394_v42, %v1378_v43 }
 0x2f3   : > { %7201 = vrot.lane.b32.xlu1 %v7200_v46, %s8013_s27  ;;  %v991_v55 = vpop.permute.xlu1 %990  ;;  %v986_v56 = vpop.permute.xlu0 %985  ;;  %v1510_v59 = vsel %vm1496_vm3, %v1477_v47, %v1493_v50  ;;  %v1526_v2 = vsel %vm1496_vm3, %v1493_v50, %v1477_v47 }
 0x2f4   : > { %v1325_v5 = vadd.f32 %v8722_v12, %v1286_v51  ;;  %v1324_v8 = vadd.f32 %v8722_v12, %v1285_v52  ;;  %v1556_v9 = vsel %vm1463_vm4, 0.0, %v1526_v2  ;;  %v1028_v18 = vmul.f32 %v8718_v7, %v991_v55 }
 0x2f5   : > { %v7210_v17 = vpack.i.bf16 %v1556_v9, %v1510_v59  ;;  %v1027_v19 = vmul.f32 %v8718_v7, %v986_v56 }
 0x2f6   : > { %v1357_v15 = vmax.f32 %v1325_v5, 0.0  ;;  %v1356_v16 = vmax.f32 %v1324_v8, 0.0 }
 0x2f7   : > { %v1219_v20 = vpop.permute.xlu1 %1218  ;;  %v1214_v21 = vpop.permute.xlu0 %1213  ;;  %7211 = vrot.lane.b32.xlu1 %v7210_v17, %s8014_s26 }
 0x2f8   : > { %v1395_v22 = vrot.slane %v1357_v15, 7  ;;  %v1379_v23 = vrot.slane %v1356_v16, 7  ;;  %v1256_v31 = vmul.f32 %v8716_v6, %v1219_v20  ;;  %v1255_v32 = vmul.f32 %v8716_v6, %v1214_v21 }
 0x2f9   : > { %v7215_v35 = vpack.i.bf16 %v1357_v15, %v1356_v16  ;;  %v1478_v38 = vrot.slane %v1356_v16, 1  ;;  %v1494_v41 = vrot.slane %v1357_v15, 1 }
 0x2fa   : > { %v1288_v42 = vadd.f32 %v1256_v31, %v1028_v18  ;;  %v1287_v43 = vadd.f32 %v1255_v32, %v1027_v19  ;;  %v9051_v44 = vsel %vm1397_vm2, %v1379_v23, %v1395_v22  ;;  %v9055_v7 = vsel %vm1397_vm2, %v1395_v22, %v1379_v23 }
 0x2fb   : > { %7216 = vrot.lane.b32.xlu0 %v7215_v35, %s8013_s27  ;;  %v1511_v45 = vsel %vm1496_vm3, %v1478_v38, %v1494_v41  ;;  %v1527_v6 = vsel %vm1496_vm3, %v1494_v41, %v1478_v38 }
 0x2fc   : > { %v1327_v46 = vadd.f32 %v8722_v12, %v1288_v42  ;;  %v1326_v47 = vadd.f32 %v8722_v12, %v1287_v43  ;;  %v7077_v50 = vpop.permute.xlu0 %7076  ;;  %v1558_v51 = vsel %vm1463_vm4, 0.0, %v1527_v6  ;;  %v1430_v12 = vsel %vm1363_vm5, 0.0, %v8745_v40 }
 0x2fd   : > { %v7225_v52 = vpack.i.bf16 %v1558_v51, %v1511_v45  ;;  %v7079_v59 = vunpack.i.h.bf16 %v7077_v50  ;;  %v7078_v2 = vunpack.i.l.bf16 %v7077_v50 }
 0x2fe   : > { %v1359_v55 = vmax.f32 %v1327_v46, 0.0  ;;  %v1358_v56 = vmax.f32 %v1326_v47, 0.0 }
 0x2ff   : > { %7226 = vrot.lane.b32.xlu0 %v7225_v52, %s8014_s26  ;;  %v1819_v23 = vsel %vm1817_vm6, %v8741_v39, %v7079_v59  ;;  %v1818_v31 = vsel %vm1817_vm6, %v1430_v12, %v7078_v2  ;;  %v1432_v39 = vsel %vm1363_vm5, 0.0, %v8766_v4 }
 0x300   : > { %v1396_v5 = vrot.slane %v1359_v55, 7  ;;  %v1380_v8 = vrot.slane %v1358_v56, 7  ;;  %v7220_v9 = vpack.i.bf16 %v1359_v55, %v1358_v56  ;;  %v1479_v15 = vrot.slane %v1358_v56, 1 }
 0x301   : > { %v1495_v16 = vrot.slane %v1359_v55, 1  ;;  %v7087_v17 = vpop.permute.xlu0 %7086 }
 0x302   : > { %7221 = vrot.lane.b32.xlu1 %v7220_v9, %s8013_s27  ;;  %v9074_v18 = vsel %vm1397_vm2, %v1380_v8, %v1396_v5  ;;  %v9078_v19 = vsel %vm1397_vm2, %v1396_v5, %v1380_v8  ;;  %v7089_v20 = vunpack.i.h.bf16 %v7087_v17  ;;  %v7088_v21 = vunpack.i.l.bf16 %v7087_v17 }
 0x303   : > { %v1512_v22 = vsel %vm1496_vm3, %v1479_v15, %v1495_v16  ;;  %v1528_v40 = vsel %vm1496_vm3, %v1495_v16, %v1479_v15 }
 0x304   : > { %v1560_v32 = vsel %vm1463_vm4, 0.0, %v1528_v40  ;;  %v1851_v35 = vsel %vm1850_vm7, %v1818_v31, %v7088_v21  ;;  %v1852_v38 = vsel %vm1850_vm7, %v1819_v23, %v7089_v20  ;;  %v7399_v23 = vld [vmem:[#allocation12 + $0x8] sm:$0xff]  }
 0x305   : > { %v7082_v41 = vpop.permute.xlu1 %7081  ;;  %v7230_v42 = vpack.i.bf16 %v1560_v32, %v1512_v22  ;;  %v1887_v43 = vpack.c.bf16 %v1852_v38, %v1851_v35  ;;  %v7400_v35 = vld [vmem:[#allocation12 + $0x10] sm:$0xff]   ;;  %v1436_v38 = vsel %vm1363_vm5, 0.0, %v8810_v61 }
 0x306   : > { %v7084_v45 = vunpack.i.h.bf16 %v7082_v41  ;;  %v7083_v6 = vunpack.i.l.bf16 %v7082_v41 }
 0x307   : > { %7231 = vrot.lane.b32.xlu1 %v7230_v42, %s8014_s26  ;;  %1904 = vst.msk [vmem:[#allocation2 + $0x8] sm:$0xff] %vm1883_vm0, %v1887_v43 }
 0x308   : > { %v1820_v51 = vsel %vm1817_vm6, %v1432_v39, %v7083_v6  ;;  %v1821_v52 = vsel %vm1817_vm6, %v8762_v3, %v7084_v45  ;;  %v1434_v3 = vsel %vm1363_vm5, 0.0, %v8788_v34 }
 0x309   : > { %v7097_v46 = vpop.permute.xlu1 %7096 }
 0x30a   : > { %v7099_v47 = vunpack.i.h.bf16 %v7097_v46  ;;  %v7098_v50 = vunpack.i.l.bf16 %v7097_v46 }
 0x30c   : > { %v1853_v55 = vsel %vm1850_vm7, %v1820_v51, %v7098_v50  ;;  %v1854_v56 = vsel %vm1850_vm7, %v1821_v52, %v7099_v47  ;;  %v9128_v47 = vld [vmem:[#allocation12 + $0x30] sm:$0xff]   ;;  %v1438_v52 = vsel %vm1363_vm5, 0.0, %v8832_v29 }
 0x30d   : > { %v7092_v59 = vpop.permute.xlu0 %7091  ;;  %v1888_v2 = vpack.c.bf16 %v1854_v56, %v1853_v55 }
 0x30e   : > { %v9101_v5 = vld [vmem:[#allocation2 + $0x8] sm:$0xff]  ;;  %v7094_v8 = vunpack.i.h.bf16 %v7092_v59  ;;  %v7093_v9 = vunpack.i.l.bf16 %v7092_v59 }
 0x30f   : > { %1905 = vst.msk [vmem:[#allocation2 + $0x10] sm:$0xff] %vm1883_vm0, %v1888_v2  ;;  %6348 = vmatprep.mubr.msk.bf16.mxu0 %vm1883_vm0, %v9101_v5 }
 0x310   : > { %v1823_v12 = vsel %vm1817_vm6, %v8784_v33, %v7094_v8  ;;  %v1822_v17 = vsel %vm1817_vm6, %v1434_v3, %v7093_v9 }
 0x311   : > { %v7107_v4 = vpop.permute.xlu0 %7106 }
 0x312   : > { %v7109_v15 = vunpack.i.h.bf16 %v7107_v4  ;;  %v7108_v16 = vunpack.i.l.bf16 %v7107_v4 }
 0x314   : > { %v1855_v20 = vsel %vm1850_vm7, %v1822_v17, %v7108_v16  ;;  %v1856_v21 = vsel %vm1850_vm7, %v1823_v12, %v7109_v15 }
 0x315   : > { %v7102_v22 = vpop.permute.xlu1 %7101  ;;  %v1889_v40 = vpack.c.bf16 %v1856_v21, %v1855_v20 }
 0x316   : > { %v9114_v31 = vld [vmem:[#allocation2 + $0x10] sm:$0xff]  ;;  %v7104_v32 = vunpack.i.h.bf16 %v7102_v22  ;;  %v7103_v34 = vunpack.i.l.bf16 %v7102_v22 }
 0x317   : > { %1906 = vst.msk [vmem:[#allocation2 + $0x18] sm:$0xff] %vm1883_vm0, %v1889_v40  ;;  %6349 = vmatmul.mubr.msk.bf16.vlgmr.msra.gmra.mrb[0].mxu0 %vm1883_vm0, %v9114_v31 }
 0x318   : > { %6381 = vmatpush3.bf16.msra.mxu0 %v8936_v1  ;;  %v1824_v43 = vsel %vm1817_vm6, %v1436_v38, %v7103_v34  ;;  %v1825_v45 = vsel %vm1817_vm6, %v8806_v60, %v7104_v32 }
 0x319   : > { %v7117_v33 = vpop.permute.xlu1 %7116  ;;  %6382 = vmatprep.subr.bf16.mxu0 %v7399_v23 }
 0x31a   : > { %v7119_v41 = vunpack.i.h.bf16 %v7117_v33  ;;  %v7118_v42 = vunpack.i.l.bf16 %v7117_v33 }
 0x31c   : > { %v1857_v6 = vsel %vm1850_vm7, %v1824_v43, %v7118_v42  ;;  %v1858_v46 = vsel %vm1850_vm7, %v1825_v45, %v7119_v41  ;;  %6383 = vmatpush3.bf16.msra.mxu0 %v7399_v23 }
 0x31d   : > { %v7112_v39 = vpop.permute.xlu0 %7111  ;;  %v1890_v1 = vpack.c.bf16 %v1858_v46, %v1857_v6  ;;  %6384 = vmatprep.subr.bf16.mxu0 %v7400_v35 }
 0x31e   : > { %v9130_v50 = vld [vmem:[#allocation2 + $0x18] sm:$0xff]  ;;  %v7114_v61 = vunpack.i.h.bf16 %v7112_v39  ;;  %v7113_v51 = vunpack.i.l.bf16 %v7112_v39 }
 0x31f   : > { %1907 = vst.msk [vmem:[#allocation2 + $0x20] sm:$0xff] %vm1883_vm0, %v1890_v1  ;;  %6352 = vmatprep.mubr.msk.bf16.mxu0 %vm1883_vm0, %v9130_v50 }
 0x320   : > { %6385 = vmatpush3.bf16.msra.mxu0 %v7400_v35  ;;  %v1827_v59 = vsel %vm1817_vm6, %v8828_v28, %v7114_v61  ;;  %v1826_v2 = vsel %vm1817_vm6, %v1438_v52, %v7113_v51  ;;  %v1440_v28 = vsel %vm1363_vm5, 0.0, %v8854_v58 }
 0x321   : > { %v7127_v60 = vpop.permute.xlu0 %7126  ;;  %6418 = vmatprep.subr.bf16.mxu0 %v9128_v47 }
 0x322   : > { %v7129_v55 = vunpack.i.h.bf16 %v7127_v60  ;;  %v7128_v56 = vunpack.i.l.bf16 %v7127_v60 }
 0x324   : > { %v1859_v8 = vsel %vm1850_vm7, %v1826_v2, %v7128_v56  ;;  %v1860_v9 = vsel %vm1850_vm7, %v1827_v59, %v7129_v55 }
 0x325   : > { %v7122_v4 = vpop.permute.xlu1 %7121  ;;  %v1891_v3 = vpack.c.bf16 %v1860_v9, %v1859_v8 }
 0x326   : > { %v9144_v15 = vld [vmem:[#allocation2 + $0x20] sm:$0xff]  ;;  %v7124_v16 = vunpack.i.h.bf16 %v7122_v4  ;;  %v7123_v12 = vunpack.i.l.bf16 %v7122_v4 }
 0x327   : > { %1908 = vst.msk [vmem:[#allocation2 + $0x28] sm:$0xff] %vm1883_vm0, %v1891_v3  ;;  %6353 = vmatmul.mubr.msk.bf16.gmra.mrb[4].mxu0 %vm1883_vm0, %v9144_v15 }
 0x328   : > { %v1828_v21 = vsel %vm1817_vm6, %v1440_v28, %v7123_v12  ;;  %v1829_v22 = vsel %vm1817_vm6, %v8850_v57, %v7124_v16  ;;  %v1442_v57 = vsel %vm1363_vm5, 0.0, %v8876_v30 }
 0x329   : > { %v7137_v29 = vpop.permute.xlu1 %7136 }
 0x32a   : > { %v7139_v17 = vunpack.i.h.bf16 %v7137_v29  ;;  %v7138_v20 = vunpack.i.l.bf16 %v7137_v29 }
 0x32c   : > { %v1861_v40 = vsel %vm1850_vm7, %v1828_v21, %v7138_v20  ;;  %v1862_v23 = vsel %vm1850_vm7, %v1829_v22, %v7139_v17 }
 0x32d   : > { %v7132_v32 = vpop.permute.xlu0 %7131  ;;  %v1892_v34 = vpack.c.bf16 %v1862_v23, %v1861_v40 }
 0x32e   : > { %v9157_v33 = vld [vmem:[#allocation2 + $0x28] sm:$0xff]  ;;  %v7134_v35 = vunpack.i.h.bf16 %v7132_v32  ;;  %v7133_v38 = vunpack.i.l.bf16 %v7132_v32 }
 0x32f   : > { %1909 = vst.msk [vmem:[#allocation2 + $0x30] sm:$0xff] %vm1883_vm0, %v1892_v34  ;;  %6356 = vmatprep.mubr.msk.bf16.mxu0 %vm1883_vm0, %v9157_v33 }
 0x330   : > { %v1831_v43 = vsel %vm1817_vm6, %v8872_v27, %v7134_v35  ;;  %v1830_v45 = vsel %vm1817_vm6, %v1442_v57, %v7133_v38  ;;  %v1444_v27 = vsel %vm1363_vm5, 0.0, %v8898_v0 }
 0x331   : > { %v7147_v58 = vpop.permute.xlu0 %7146 }
 0x332   : > { %v7149_v41 = vunpack.i.h.bf16 %v7147_v58  ;;  %v7148_v42 = vunpack.i.l.bf16 %v7147_v58 }
 0x334   : > { %v1863_v6 = vsel %vm1850_vm7, %v1830_v45, %v7148_v42  ;;  %v1864_v46 = vsel %vm1850_vm7, %v1831_v43, %v7149_v41 }
 0x335   : > { %v7142_v39 = vpop.permute.xlu1 %7141  ;;  %v1893_v1 = vpack.c.bf16 %v1864_v46, %v1863_v6 }
 0x336   : > { %v9170_v61 = vld [vmem:[#allocation2 + $0x30] sm:$0xff]  ;;  %v7144_v51 = vunpack.i.h.bf16 %v7142_v39  ;;  %v7143_v60 = vunpack.i.l.bf16 %v7142_v39 }
 0x337   : > { %1910 = vst.msk [vmem:[#allocation2 + $0x38] sm:$0xff] %vm1883_vm0, %v1893_v1  ;;  %6357 = vmatmul.mubr.msk.bf16.gmra.mrb[8].mxu0 %vm1883_vm0, %v9170_v61 }
 0x338   : > { %v1832_v56 = vsel %vm1817_vm6, %v1444_v27, %v7143_v60  ;;  %v1833_v59 = vsel %vm1817_vm6, %v8894_v63, %v7144_v51  ;;  %v1446_v63 = vsel %vm1363_vm5, 0.0, %v8920_v37 }
 0x339   : > { %v7152_v30 = vpop.permute.xlu1 %7151 }
 0x33a   : > { %v7154_v52 = vunpack.i.h.bf16 %v7152_v30  ;;  %v7153_v55 = vunpack.i.l.bf16 %v7152_v30 }
 0x33c   : > { %v1865_v2 = vsel %vm1850_vm7, %v1832_v56, %v7153_v55  ;;  %v1866_v8 = vsel %vm1850_vm7, %v1833_v59, %v7154_v52 }
 0x33d   : > { %v7157_v9 = vpop.permute.xlu0 %7156  ;;  %v1894_v4 = vpack.c.bf16 %v1866_v8, %v1865_v2 }
 0x33e   : > { %v9183_v3 = vld [vmem:[#allocation2 + $0x38] sm:$0xff]  ;;  %v7159_v16 = vunpack.i.h.bf16 %v7157_v9  ;;  %v7158_v12 = vunpack.i.l.bf16 %v7157_v9 }
 0x33f   : > { %1911 = vst.msk [vmem:[#allocation2 + $0x40] sm:$0xff] %vm1883_vm0, %v1894_v4  ;;  %6360 = vmatprep.mubr.msk.bf16.mxu0 %vm1883_vm0, %v9183_v3 }
 0x340   : > { %v1835_v17 = vsel %vm1817_vm6, %v8916_v36, %v7159_v16  ;;  %v1834_v20 = vsel %vm1817_vm6, %v1446_v63, %v7158_v12  ;;  %v1448_v36 = vsel %vm1363_vm5, 0.0, %v8944_v13 }
 0x341   : > { %v7167_v0 = vpop.permute.xlu0 %7166 }
 0x342   : > { %v7169_v29 = vunpack.i.h.bf16 %v7167_v0  ;;  %v7168_v28 = vunpack.i.l.bf16 %v7167_v0 }
 0x344   : > { %v1867_v21 = vsel %vm1850_vm7, %v1834_v20, %v7168_v28  ;;  %v1868_v22 = vsel %vm1850_vm7, %v1835_v17, %v7169_v29 }
 0x345   : > { %v7162_v40 = vpop.permute.xlu1 %7161  ;;  %v1895_v23 = vpack.c.bf16 %v1868_v22, %v1867_v21 }
 0x346   : > { %v9196_v32 = vld [vmem:[#allocation2 + $0x40] sm:$0xff]  ;;  %v7164_v34 = vunpack.i.h.bf16 %v7162_v40  ;;  %v7163_v35 = vunpack.i.l.bf16 %v7162_v40 }
 0x347   : > { %1912 = vst.msk [vmem:[#allocation2 + $0x48] sm:$0xff] %vm1883_vm0, %v1895_v23  ;;  %6361 = vmatmul.mubr.msk.bf16.gmra.mrb[12].mxu0 %vm1883_vm0, %v9196_v32 }
 0x348   : > { %v1836_v57 = vsel %vm1817_vm6, %v1448_v36, %v7163_v35  ;;  %v1837_v41 = vsel %vm1817_vm6, %v8940_v11, %v7164_v34  ;;  %v1450_v11 = vsel %vm1363_vm5, 0.0, %v8967_v49 }
 0x349   : > { %v7172_v37 = vpop.permute.xlu1 %7171 }
 0x34a   : > { %v7174_v38 = vunpack.i.h.bf16 %v7172_v37  ;;  %v7173_v58 = vunpack.i.l.bf16 %v7172_v37 }
 0x34c   : > { %v1869_v42 = vsel %vm1850_vm7, %v1836_v57, %v7173_v58  ;;  %v1870_v43 = vsel %vm1850_vm7, %v1837_v41, %v7174_v38 }
 0x34d   : > { %v7177_v45 = vpop.permute.xlu0 %7176  ;;  %v1896_v6 = vpack.c.bf16 %v1870_v43, %v1869_v42 }
 0x34e   : > { %v9209_v46 = vld [vmem:[#allocation2 + $0x48] sm:$0xff]  ;;  %v7179_v39 = vunpack.i.h.bf16 %v7177_v45  ;;  %v7178_v1 = vunpack.i.l.bf16 %v7177_v45 }
 0x34f   : > { %1913 = vst.msk [vmem:[#allocation2 + $0x50] sm:$0xff] %vm1883_vm0, %v1896_v6  ;;  %6364 = vmatprep.mubr.msk.bf16.mxu0 %vm1883_vm0, %v9209_v46 }
 0x350   : > { %v1839_v30 = vsel %vm1817_vm6, %v8963_v48, %v7179_v39  ;;  %v1838_v27 = vsel %vm1817_vm6, %v1450_v11, %v7178_v1  ;;  %v1452_v48 = vsel %vm1363_vm5, 0.0, %v8989_v26 }
 0x351   : > { %v7187_v13 = vpop.permute.xlu0 %7186 }
 0x352   : > { %v7189_v51 = vunpack.i.h.bf16 %v7187_v13  ;;  %v7188_v60 = vunpack.i.l.bf16 %v7187_v13 }
 0x354   : > { %v1871_v52 = vsel %vm1850_vm7, %v1838_v27, %v7188_v60  ;;  %v1872_v55 = vsel %vm1850_vm7, %v1839_v30, %v7189_v51 }
 0x355   : > { %v7182_v56 = vpop.permute.xlu1 %7181  ;;  %v1897_v59 = vpack.c.bf16 %v1872_v55, %v1871_v52 }
 0x356   : > { %v9222_v2 = vld [vmem:[#allocation2 + $0x50] sm:$0xff]  ;;  %v7184_v8 = vunpack.i.h.bf16 %v7182_v56  ;;  %v7183_v9 = vunpack.i.l.bf16 %v7182_v56 }
 0x357   : > { %1914 = vst.msk [vmem:[#allocation2 + $0x58] sm:$0xff] %vm1883_vm0, %v1897_v59  ;;  %6365 = vmatmul.mubr.msk.bf16.gmra.mrb[16].mxu0 %vm1883_vm0, %v9222_v2 }
 0x358   : > { %v1840_v12 = vsel %vm1817_vm6, %v1452_v48, %v7183_v9  ;;  %v1841_v0 = vsel %vm1817_vm6, %v8985_v25, %v7184_v8  ;;  %v1454_v25 = vsel %vm1363_vm5, 0.0, %v9011_v14 }
 0x359   : > { %v7192_v49 = vpop.permute.xlu1 %7191 }
 0x35a   : > { %v7194_v4 = vunpack.i.h.bf16 %v7192_v49  ;;  %v7193_v16 = vunpack.i.l.bf16 %v7192_v49 }
 0x35c   : > { %v1873_v63 = vsel %vm1850_vm7, %v1840_v12, %v7193_v16  ;;  %v1874_v29 = vsel %vm1850_vm7, %v1841_v0, %v7194_v4 }
 0x35d   : > { %v7197_v28 = vpop.permute.xlu0 %7196  ;;  %v1898_v17 = vpack.c.bf16 %v1874_v29, %v1873_v63 }
 0x35e   : > { %v9235_v20 = vld [vmem:[#allocation2 + $0x58] sm:$0xff]  ;;  %v7199_v21 = vunpack.i.h.bf16 %v7197_v28  ;;  %v7198_v22 = vunpack.i.l.bf16 %v7197_v28 }
 0x35f   : > { %1915 = vst.msk [vmem:[#allocation2 + $0x60] sm:$0xff] %vm1883_vm0, %v1898_v17  ;;  %6368 = vmatprep.mubr.msk.bf16.mxu0 %vm1883_vm0, %v9235_v20 }
 0x360   : > { %v1843_v34 = vsel %vm1817_vm6, %v9007_v10, %v7199_v21  ;;  %v1842_v35 = vsel %vm1817_vm6, %v1454_v25, %v7198_v22  ;;  %v1456_v10 = vsel %vm1363_vm5, 0.0, %v9033_v54  ;;  %v1920_v25 = vld [vmem:[#allocation2] sm:$0xff] }
 0x361   : > { %v7207_v26 = vpop.permute.xlu0 %7206 }
 0x362   : > { %v7209_v40 = vunpack.i.h.bf16 %v7207_v26  ;;  %v7208_v23 = vunpack.i.l.bf16 %v7207_v26 }
 0x364   : > { %v1875_v37 = vsel %vm1850_vm7, %v1842_v35, %v7208_v23  ;;  %v1876_v36 = vsel %vm1850_vm7, %v1843_v34, %v7209_v40 }
 0x365   : > { %v7202_v38 = vpop.permute.xlu1 %7201  ;;  %v1899_v58 = vpack.c.bf16 %v1876_v36, %v1875_v37 }
 0x366   : > { %v9248_v57 = vld [vmem:[#allocation2 + $0x60] sm:$0xff]  ;;  %v7204_v41 = vunpack.i.h.bf16 %v7202_v38  ;;  %v7203_v42 = vunpack.i.l.bf16 %v7202_v38 }
 0x367   : > { %1916 = vst.msk [vmem:[#allocation2 + $0x68] sm:$0xff] %vm1883_vm0, %v1899_v58  ;;  %6369 = vmatmul.mubr.msk.bf16.gmra.mrb[20].mxu0 %vm1883_vm0, %v9248_v57 }
 0x368   : > { %v1844_v6 = vsel %vm1817_vm6, %v1456_v10, %v7203_v42  ;;  %v1845_v39 = vsel %vm1817_vm6, %v9029_v53, %v7204_v41  ;;  %v1458_v53 = vsel %vm1363_vm5, 0.0, %v9055_v7 }
 0x369   : > { %v7212_v14 = vpop.permute.xlu1 %7211 }
 0x36a   : > { %v7214_v43 = vunpack.i.h.bf16 %v7212_v14  ;;  %v7213_v45 = vunpack.i.l.bf16 %v7212_v14 }
 0x36c   : > { %v1877_v1 = vsel %vm1850_vm7, %v1844_v6, %v7213_v45  ;;  %v1878_v13 = vsel %vm1850_vm7, %v1845_v39, %v7214_v43  ;;  %v7408_v43 = vld [vmem:[#allocation15 + $0x50] sm:$0xff]  }
 0x36d   : > { %v7217_v11 = vpop.permute.xlu0 %7216  ;;  %v1900_v51 = vpack.c.bf16 %v1878_v13, %v1877_v1 }
 0x36e   : > { %v7219_v60 = vunpack.i.h.bf16 %v7217_v11  ;;  %v7218_v30 = vunpack.i.l.bf16 %v7217_v11  ;;  %v9261_v27 = vld [vmem:[#allocation2 + $0x68] sm:$0xff] }
 0x36f   : > { %1917 = vst.msk [vmem:[#allocation2 + $0x70] sm:$0xff] %vm1883_vm0, %v1900_v51  ;;  %6372 = vmatprep.mubr.msk.bf16.mxu0 %vm1883_vm0, %v9261_v27 }
 0x370   : > { %v1847_v56 = vsel %vm1817_vm6, %v9051_v44, %v7219_v60  ;;  %v1846_v59 = vsel %vm1817_vm6, %v1458_v53, %v7218_v30  ;;  %v1460_v44 = vsel %vm1363_vm5, 0.0, %v9078_v19  ;;  %v7402_v19 = vld [vmem:[#allocation12 + $0x38] sm:$0xff]  }
 0x371   : > { %v7227_v54 = vpop.permute.xlu0 %7226 }
 0x372   : > { %v7229_v52 = vunpack.i.h.bf16 %v7227_v54  ;;  %v7228_v55 = vunpack.i.l.bf16 %v7227_v54 }
 0x374   : > { %v1879_v8 = vsel %vm1850_vm7, %v1846_v59, %v7228_v55  ;;  %v1880_v9 = vsel %vm1850_vm7, %v1847_v56, %v7229_v52  ;;  %v7222_v49 = vpop.permute.xlu1 %7221 }
 0x375   : > { %v1901_v48 = vpack.c.bf16 %v1880_v9, %v1879_v8  ;;  %v7224_v4 = vunpack.i.h.bf16 %v7222_v49  ;;  %v7223_v16 = vunpack.i.l.bf16 %v7222_v49 }
 0x376   : > { %v1955_v12 = vld [vmem:[#allocation2 + $0x70] sm:$0xff] }
 0x377   : > { %1918 = vst.msk [vmem:[#allocation2 + $0x78] sm:$0xff] %vm1883_vm0, %v1901_v48  ;;  %6373 = vmatmul.mubr.msk.bf16.gmra.mrb[24].mxu0 %vm1883_vm0, %v1955_v12  ;;  %v1848_v29 = vsel %vm1817_vm6, %v1460_v44, %v7223_v16  ;;  %v1849_v28 = vsel %vm1817_vm6, %v9074_v18, %v7224_v4  ;;  %v7403_v18 = vld [vmem:[#allocation12 + $0x40] sm:$0xff]  }
 0x379   : > { %v7232_v7 = vpop.permute.xlu1 %7231 }
 0x37a   : > { %v7234_v0 = vunpack.i.h.bf16 %v7232_v7  ;;  %v7233_v63 = vunpack.i.l.bf16 %v7232_v7 }
 0x37c   : > { %v1881_v17 = vsel %vm1850_vm7, %v1848_v29, %v7233_v63  ;;  %v1882_v21 = vsel %vm1850_vm7, %v1849_v28, %v7234_v0 }
 0x37d   : > { %v1902_v22 = vpack.c.bf16 %v1882_v21, %v1881_v17  ;;  %v7409_v21 = vld [vmem:[#allocation15 + $0x58] sm:$0xff]  }
 0x37e   : > { %v1956_v26 = vld [vmem:[#allocation2 + $0x78] sm:$0xff] }
 0x37f   : > { %1919 = vst.msk [vmem:[#allocation2 + $0x80] sm:$0xff] %vm1883_vm0, %v1902_v22  ;;  %6376 = vmatprep.mubr.msk.bf16.mxu0 %vm1883_vm0, %v1956_v26 }
 0x386   : > { %v1957_v40 = vld [vmem:[#allocation2 + $0x80] sm:$0xff] }
 0x387   : > { %6377 = vmatmul.mubr.msk.bf16.gmra.mrb[28].mxu0 %vm1883_vm0, %v1957_v40 }
 0x388   : > { %6386 = vmatprep.mubr.msk.bf16.mxu0 %vm1883_vm0, %v1920_v25 }
 0x38f   : > { %6387 = vmatmul.mubr.msk.bf16.vlgmr.msra.gmra.mrb[0].mxu0 %vm1883_vm0, %v9101_v5  ;;  %v2435_v5 = vld [vmem:[#allocation2 + $0x88] sm:$0xff] }
 0x390   : > { %6419 = vmatpush3.bf16.msra.mxu0 %v9128_v47  ;;  %6390 = vmatprep.mubr.msk.bf16.mxu0 %vm1883_vm0, %v9114_v31  ;;  %v7405_v47 = vld [vmem:[#allocation15 + $0x38] sm:$0xff]  }
 0x391   : > { %6420 = vmatprep.subr.bf16.mxu0 %v7402_v19 }
 0x394   : > { %6421 = vmatpush3.bf16.msra.mxu0 %v7402_v19  ;;  %v9387_v19 = vld [vmem:[#allocation15] sm:$0xff]  }
 0x395   : > { %6422 = vmatprep.subr.bf16.mxu0 %v7403_v18 }
 0x397   : > { %6391 = vmatmul.mubr.msk.bf16.gmra.mrb[4].mxu0 %vm1883_vm0, %v9130_v50 }
 0x398   : > { %6394 = vmatprep.mubr.msk.bf16.mxu0 %vm1883_vm0, %v9144_v15  ;;  %6423 = vmatpush3.bf16.msra.mxu0 %v7403_v18 }
 0x39f   : > { %6395 = vmatmul.mubr.msk.bf16.gmra.mrb[8].mxu0 %vm1883_vm0, %v9157_v33 }
 0x3a0   : > { %6398 = vmatprep.mubr.msk.bf16.mxu0 %vm1883_vm0, %v9170_v61 }
 0x3a7   : > { %6399 = vmatmul.mubr.msk.bf16.gmra.mrb[12].mxu0 %vm1883_vm0, %v9183_v3 }
 0x3a8   : > { %6402 = vmatprep.mubr.msk.bf16.mxu0 %vm1883_vm0, %v9196_v32 }
 0x3af   : > { %6403 = vmatmul.mubr.msk.bf16.gmra.mrb[16].mxu0 %vm1883_vm0, %v9209_v46 }
 0x3b0   : > { %6406 = vmatprep.mubr.msk.bf16.mxu0 %vm1883_vm0, %v9222_v2 }
 0x3b7   : > { %6407 = vmatmul.mubr.msk.bf16.gmra.mrb[20].mxu0 %vm1883_vm0, %v9235_v20 }
 0x3b8   : > { %6410 = vmatprep.mubr.msk.bf16.mxu0 %vm1883_vm0, %v9248_v57 }
 0x3bf   : > { %6411 = vmatmul.mubr.msk.bf16.gmra.mrb[24].mxu0 %vm1883_vm0, %v9261_v27 }
 0x3c0   : > { %6414 = vmatprep.mubr.msk.bf16.mxu0 %vm1883_vm0, %v1955_v12 }
 0x3c7   : > { %6415 = vmatmul.mubr.msk.bf16.gmra.mrb[28].mxu0 %vm1883_vm0, %v1956_v26 }
 0x3c8   : > { %6424 = vmatprep.mubr.msk.bf16.mxu0 %vm1883_vm0, %v9114_v31  ;;  %v7404_v31 = vld [vmem:[#allocation15 + $0x30] sm:$0xff]  }
 0x3c9   : > { %6456 = vmatprep.subr.bf16.mxu1 %v7404_v31 }
 0x3ca   : > { %6457 = vmatpush3.bf16.msra.mxu1 %v7404_v31 }
 0x3cb   : > { %6458 = vmatprep.subr.bf16.mxu1 %v7405_v47 }
 0x3ce   : > { %6459 = vmatpush3.bf16.msra.mxu1 %v7405_v47 }
 0x3cf   : > { %6425 = vmatmul.mubr.msk.bf16.vlgmr.msra.gmra.mrb[0].mxu0 %vm1883_vm0, %v9130_v50  ;;  %v9345_v50 = vld [vmem:[#allocation13] ss:$0 sm:$0xff] }
 0x3d0   : > { %6428 = vmatprep.mubr.msk.bf16.mxu0 %vm1883_vm0, %v9144_v15  ;;  %v7406_v15 = vld [vmem:[#allocation15 + $0x40] sm:$0xff]  }
 0x3d1   : > { %6460 = vmatprep.subr.bf16.mxu1 %v7406_v15 }
 0x3d2   : > { %6461 = vmatpush3.bf16.msra.mxu1 %v7406_v15 }
 0x3d7   : > { %6429 = vmatmul.mubr.msk.bf16.gmra.mrb[4].mxu0 %vm1883_vm0, %v9157_v33 }
 0x3d8   : > { %6432 = vmatprep.mubr.msk.bf16.mxu0 %vm1883_vm0, %v9170_v61 }
 0x3df   : > { %6433 = vmatmul.mubr.msk.bf16.gmra.mrb[8].mxu0 %vm1883_vm0, %v9183_v3 }
 0x3e0   : > { %6436 = vmatprep.mubr.msk.bf16.mxu0 %vm1883_vm0, %v9196_v32 }
 0x3e7   : > { %6437 = vmatmul.mubr.msk.bf16.gmra.mrb[12].mxu0 %vm1883_vm0, %v9209_v46 }
 0x3e8   : > { %6440 = vmatprep.mubr.msk.bf16.mxu0 %vm1883_vm0, %v9222_v2 }
 0x3ef   : > { %6441 = vmatmul.mubr.msk.bf16.gmra.mrb[16].mxu0 %vm1883_vm0, %v9235_v20 }
 0x3f0   : > { %6444 = vmatprep.mubr.msk.bf16.mxu0 %vm1883_vm0, %v9248_v57  ;;  %v7407_v57 = vld [vmem:[#allocation15 + $0x48] sm:$0xff]  }
 0x3f1   : > { %6462 = vmatprep.subr.bf16.mxu1 %v7407_v57 }
 0x3f2   : > { %6463 = vmatpush3.bf16.msra.mxu1 %v7407_v57 }
 0x3f3   : > { %6464 = vmatprep.subr.bf16.mxu1 %v7408_v43 }
 0x3f6   : > { %6465 = vmatpush3.bf16.msra.mxu1 %v7408_v43 }
 0x3f7   : > { %6445 = vmatmul.mubr.msk.bf16.gmra.mrb[20].mxu0 %vm1883_vm0, %v9261_v27  ;;  %6466 = vmatprep.subr.bf16.mxu1 %v7409_v21 }
 0x3f8   : > { %6448 = vmatprep.mubr.msk.bf16.mxu0 %vm1883_vm0, %v1955_v12 }
 0x3fa   : > { %6467 = vmatpush3.bf16.msra.mxu1 %v7409_v21 }
 0x3fb   : > { %6500 = vmatprep.subr.bf16.mxu1 %v9387_v19 }
 0x3ff   : > { %6449 = vmatmul.mubr.msk.bf16.gmra.mrb[24].mxu0 %vm1883_vm0, %v1956_v26 }
 0x400   : > { %6452 = vmatprep.mubr.msk.bf16.mxu0 %vm1883_vm0, %v1957_v40 }
 0x407   : > { %6453 = vmatmul.mubr.msk.bf16.gmra.mrb[28].mxu0 %vm1883_vm0, %v2435_v5 }
 0x4a2   : > { %v6426_v33 = vpop.f32.mrb[0].mxu0 }
 0x4a3   : > { %v2711_v61 = vadd.f32 %v6426_v33, %v9345_v50  ;;  %v2543_v3 = vpop.f32.mrb[1].mxu0 }
 0x4a4   : > { %v2709_v32 = vadd.f32 %v9345_v50, %v2543_v3  ;;  %v6427_v46 = vpop.f32.mrb[2].mxu0 }
 0x4a5   : > { %v2743_v2 = vmax.f32 %v2711_v61, 0.0  ;;  %v2712_v20 = vadd.f32 %v6427_v46, %v9345_v50  ;;  %v2546_v23 = vpop.f32.mrb[3].mxu0 }
 0x4a6   : > { %v2741_v34 = vmax.f32 %v2709_v32, 0.0  ;;  %v2710_v35 = vadd.f32 %v9345_v50, %v2546_v23 }
 0x4a7   : > { %v2744_v37 = vmax.f32 %v2712_v20, 0.0  ;;  %v2774_v36 = vrot.slane %v2743_v2, 7  ;;  %v2870_v38 = vrot.slane %v2743_v2, 1 }
 0x4a8   : > { %v2742_v58 = vmax.f32 %v2710_v35, 0.0  ;;  %v2773_v41 = vrot.slane %v2741_v34, 7  ;;  %v2869_v45 = vrot.slane %v2741_v34, 1 }
 0x4a9   : > { %v2790_v42 = vrot.slane %v2744_v37, 7  ;;  %v2886_v14 = vrot.slane %v2744_v37, 1  ;;  %v7235_v10 = vpack.i.bf16 %v2744_v37, %v2743_v2 }
 0x4aa   : > { %v2789_v6 = vrot.slane %v2742_v58, 7  ;;  %v2885_v39 = vrot.slane %v2742_v58, 1  ;;  %v6430_v1 = vpop.f32.mrb[4].mxu0  ;;  %v7240_v13 = vpack.i.bf16 %v2742_v58, %v2741_v34 }
 0x4ab   : > { %v2715_v11 = vadd.f32 %v6430_v1, %v9345_v50  ;;  %7236 = vrot.lane.b32.xlu1 %v7235_v10, %s8014_s26  ;;  %v2559_v51 = vpop.f32.mrb[5].mxu0  ;;  %v2902_v60 = vsel %vm1496_vm3, %v2870_v38, %v2886_v14  ;;  %v2918_v30 = vsel %vm1496_vm3, %v2886_v14, %v2870_v38  ;;  %v9359_v27 = vsel %vm1397_vm2, %v2774_v36, %v2790_v42 }
 0x4ac   : > { %v2713_v54 = vadd.f32 %v9345_v50, %v2559_v51  ;;  %7241 = vrot.lane.b32.xlu0 %v7240_v13, %s8014_s26  ;;  %v6431_v53 = vpop.f32.mrb[6].mxu0  ;;  %v2936_v52 = vsel %vm1463_vm4, 0.0, %v2918_v30  ;;  %v2901_v55 = vsel %vm1496_vm3, %v2869_v45, %v2885_v39  ;;  %v2917_v56 = vsel %vm1496_vm3, %v2885_v39, %v2869_v45 }
 0x4ad   : > { %v2747_v59 = vmax.f32 %v2715_v11, 0.0  ;;  %v2716_v8 = vadd.f32 %v6431_v53, %v9345_v50  ;;  %v2562_v9 = vpop.f32.mrb[7].mxu0  ;;  %v7245_v49 = vpack.i.bf16 %v2936_v52, %v2902_v60  ;;  %v2934_v48 = vsel %vm1463_vm4, 0.0, %v2917_v56 }
 0x4ae   : > { %v2745_v4 = vmax.f32 %v2713_v54, 0.0  ;;  %v2714_v16 = vadd.f32 %v9345_v50, %v2562_v9  ;;  %v7250_v12 = vpack.i.bf16 %v2934_v48, %v2901_v55  ;;  %v9375_v7 = vsel %vm1397_vm2, %v2790_v42, %v2774_v36 }
 0x4af   : > { %v2776_v44 = vrot.slane %v2747_v59, 7  ;;  %v2748_v0 = vmax.f32 %v2716_v8, 0.0  ;;  %7246 = vrot.lane.b32.xlu1 %v7245_v49, %s8015_s4  ;;  %v2872_v63 = vrot.slane %v2747_v59, 1  ;;  %v9381_v17 = vsel %vm1397_vm2, %v2773_v41, %v2789_v6 }
 0x4b0   : > { %v2775_v29 = vrot.slane %v2745_v4, 7  ;;  %v2746_v28 = vmax.f32 %v2714_v16, 0.0  ;;  %7251 = vrot.lane.b32.xlu0 %v7250_v12, %s8015_s4  ;;  %v9385_v40 = vsel %vm1397_vm2, %v2789_v6, %v2773_v41  ;;  %v2871_v18 = vrot.slane %v2745_v4, 1 }
 0x4b1   : > { %v7255_v22 = vpack.i.bf16 %v2748_v0, %v2747_v59  ;;  %v2792_v26 = vrot.slane %v2748_v0, 7  ;;  %v2888_v25 = vrot.slane %v2748_v0, 1 }
 0x4b2   : > { %v7260_v5 = vpack.i.bf16 %v2746_v28, %v2745_v4  ;;  %v2791_v31 = vrot.slane %v2746_v28, 7  ;;  %v2887_v47 = vrot.slane %v2746_v28, 1  ;;  %v6434_v15 = vpop.f32.mrb[8].mxu0 }
 0x4b3   : > { %v2719_v33 = vadd.f32 %v6434_v15, %v9345_v50  ;;  %7256 = vrot.lane.b32.xlu1 %v7255_v22, %s8014_s26  ;;  %v2575_v61 = vpop.f32.mrb[9].mxu0  ;;  %v2904_v3 = vsel %vm1496_vm3, %v2872_v63, %v2888_v25  ;;  %v2920_v32 = vsel %vm1496_vm3, %v2888_v25, %v2872_v63  ;;  %v9397_v46 = vsel %vm1397_vm2, %v2776_v44, %v2792_v26 }
 0x4b4   : > { %v2717_v2 = vadd.f32 %v9345_v50, %v2575_v61  ;;  %7261 = vrot.lane.b32.xlu0 %v7260_v5, %s8014_s26  ;;  %v6435_v20 = vpop.f32.mrb[10].mxu0  ;;  %v2940_v23 = vsel %vm1463_vm4, 0.0, %v2920_v32  ;;  %v2903_v34 = vsel %vm1496_vm3, %v2871_v18, %v2887_v47  ;;  %v2919_v35 = vsel %vm1496_vm3, %v2887_v47, %v2871_v18 }
 0x4b5   : > { %v2751_v37 = vmax.f32 %v2719_v33, 0.0  ;;  %v2720_v36 = vadd.f32 %v6435_v20, %v9345_v50  ;;  %v2578_v38 = vpop.f32.mrb[11].mxu0  ;;  %v7265_v58 = vpack.i.bf16 %v2940_v23, %v2904_v3  ;;  %v2938_v57 = vsel %vm1463_vm4, 0.0, %v2919_v35 }
 0x4b6   : > { %v2749_v41 = vmax.f32 %v2717_v2, 0.0  ;;  %v2718_v42 = vadd.f32 %v9345_v50, %v2578_v38  ;;  %v7270_v14 = vpack.i.bf16 %v2938_v57, %v2903_v34  ;;  %v9414_v10 = vsel %vm1397_vm2, %v2792_v26, %v2776_v44 }
 0x4b7   : > { %v2778_v43 = vrot.slane %v2751_v37, 7  ;;  %v2752_v45 = vmax.f32 %v2720_v36, 0.0  ;;  %7266 = vrot.lane.b32.xlu1 %v7265_v58, %s8015_s4  ;;  %v2874_v6 = vrot.slane %v2751_v37, 1  ;;  %v9420_v13 = vsel %vm1397_vm2, %v2775_v29, %v2791_v31 }
 0x4b8   : > { %v2777_v39 = vrot.slane %v2749_v41, 7  ;;  %v2750_v1 = vmax.f32 %v2718_v42, 0.0  ;;  %7271 = vrot.lane.b32.xlu0 %v7270_v14, %s8015_s4  ;;  %v9424_v30 = vsel %vm1397_vm2, %v2791_v31, %v2775_v29  ;;  %v2873_v54 = vrot.slane %v2749_v41, 1 }
 0x4b9   : > { %v7275_v11 = vpack.i.bf16 %v2752_v45, %v2751_v37  ;;  %v2794_v51 = vrot.slane %v2752_v45, 7  ;;  %v2890_v60 = vrot.slane %v2752_v45, 1 }
 0x4ba   : > { %v7280_v53 = vpack.i.bf16 %v2750_v1, %v2749_v41  ;;  %v2793_v52 = vrot.slane %v2750_v1, 7  ;;  %v2889_v55 = vrot.slane %v2750_v1, 1  ;;  %v6438_v56 = vpop.f32.mrb[12].mxu0 }
 0x4bb   : > { %v2723_v59 = vadd.f32 %v6438_v56, %v9345_v50  ;;  %7276 = vrot.lane.b32.xlu1 %v7275_v11, %s8014_s26  ;;  %v2591_v8 = vpop.f32.mrb[13].mxu0  ;;  %v2906_v9 = vsel %vm1496_vm3, %v2874_v6, %v2890_v60  ;;  %v2922_v49 = vsel %vm1496_vm3, %v2890_v60, %v2874_v6  ;;  %v9434_v48 = vsel %vm1397_vm2, %v2778_v43, %v2794_v51 }
 0x4bc   : > { %v2721_v4 = vadd.f32 %v9345_v50, %v2591_v8  ;;  %7281 = vrot.lane.b32.xlu0 %v7280_v53, %s8014_s26  ;;  %v6439_v16 = vpop.f32.mrb[14].mxu0  ;;  %v2944_v12 = vsel %vm1463_vm4, 0.0, %v2922_v49  ;;  %v2905_v44 = vsel %vm1496_vm3, %v2873_v54, %v2889_v55  ;;  %v2921_v0 = vsel %vm1496_vm3, %v2889_v55, %v2873_v54 }
 0x4bd   : > { %v2755_v63 = vmax.f32 %v2723_v59, 0.0  ;;  %v2724_v29 = vadd.f32 %v6439_v16, %v9345_v50  ;;  %v2594_v28 = vpop.f32.mrb[15].mxu0  ;;  %v7285_v21 = vpack.i.bf16 %v2944_v12, %v2906_v9  ;;  %v2942_v22 = vsel %vm1463_vm4, 0.0, %v2921_v0 }
 0x4be   : > { %v2753_v26 = vmax.f32 %v2721_v4, 0.0  ;;  %v2722_v25 = vadd.f32 %v9345_v50, %v2594_v28  ;;  %v7290_v18 = vpack.i.bf16 %v2942_v22, %v2905_v44  ;;  %v9450_v5 = vsel %vm1397_vm2, %v2794_v51, %v2778_v43 }
 0x4bf   : > { %v2780_v31 = vrot.slane %v2755_v63, 7  ;;  %v2756_v47 = vmax.f32 %v2724_v29, 0.0  ;;  %7286 = vrot.lane.b32.xlu1 %v7285_v21, %s8015_s4  ;;  %v2876_v15 = vrot.slane %v2755_v63, 1  ;;  %v9456_v3 = vsel %vm1397_vm2, %v2777_v39, %v2793_v52 }
 0x4c0   : > { %v2779_v33 = vrot.slane %v2753_v26, 7  ;;  %v2754_v61 = vmax.f32 %v2722_v25, 0.0  ;;  %7291 = vrot.lane.b32.xlu0 %v7290_v18, %s8015_s4  ;;  %v9460_v23 = vsel %vm1397_vm2, %v2793_v52, %v2777_v39  ;;  %v2875_v34 = vrot.slane %v2753_v26, 1 }
 0x4c1   : > { %v7295_v32 = vpack.i.bf16 %v2756_v47, %v2755_v63  ;;  %v2796_v2 = vrot.slane %v2756_v47, 7  ;;  %v2892_v20 = vrot.slane %v2756_v47, 1 }
 0x4c2   : > { %v7300_v35 = vpack.i.bf16 %v2754_v61, %v2753_v26  ;;  %v2795_v37 = vrot.slane %v2754_v61, 7  ;;  %v2891_v36 = vrot.slane %v2754_v61, 1  ;;  %v6442_v38 = vpop.f32.mrb[16].mxu0 }
 0x4c3   : > { %v2727_v58 = vadd.f32 %v6442_v38, %v9345_v50  ;;  %7296 = vrot.lane.b32.xlu1 %v7295_v32, %s8014_s26  ;;  %v2607_v57 = vpop.f32.mrb[17].mxu0  ;;  %v2908_v41 = vsel %vm1496_vm3, %v2876_v15, %v2892_v20  ;;  %v2924_v42 = vsel %vm1496_vm3, %v2892_v20, %v2876_v15  ;;  %v9470_v14 = vsel %vm1397_vm2, %v2780_v31, %v2796_v2 }
 0x4c4   : > { %v2725_v43 = vadd.f32 %v9345_v50, %v2607_v57  ;;  %7301 = vrot.lane.b32.xlu0 %v7300_v35, %s8014_s26  ;;  %v6443_v45 = vpop.f32.mrb[18].mxu0  ;;  %v2948_v6 = vsel %vm1463_vm4, 0.0, %v2924_v42  ;;  %v2907_v39 = vsel %vm1496_vm3, %v2875_v34, %v2891_v36  ;;  %v2923_v1 = vsel %vm1496_vm3, %v2891_v36, %v2875_v34 }
 0x4c5   : > { %v2759_v11 = vmax.f32 %v2727_v58, 0.0  ;;  %v2728_v51 = vadd.f32 %v6443_v45, %v9345_v50  ;;  %v2610_v60 = vpop.f32.mrb[19].mxu0  ;;  %v7305_v54 = vpack.i.bf16 %v2948_v6, %v2908_v41  ;;  %v2946_v53 = vsel %vm1463_vm4, 0.0, %v2923_v1 }
 0x4c6   : > { %v2757_v52 = vmax.f32 %v2725_v43, 0.0  ;;  %v2726_v55 = vadd.f32 %v9345_v50, %v2610_v60  ;;  %v7310_v56 = vpack.i.bf16 %v2946_v53, %v2907_v39  ;;  %v9486_v59 = vsel %vm1397_vm2, %v2796_v2, %v2780_v31 }
 0x4c7   : > { %v2782_v8 = vrot.slane %v2759_v11, 7  ;;  %v2760_v9 = vmax.f32 %v2728_v51, 0.0  ;;  %7306 = vrot.lane.b32.xlu1 %v7305_v54, %s8015_s4  ;;  %v2878_v49 = vrot.slane %v2759_v11, 1  ;;  %v9492_v12 = vsel %vm1397_vm2, %v2779_v33, %v2795_v37 }
 0x4c8   : > { %v2781_v4 = vrot.slane %v2757_v52, 7  ;;  %v2758_v16 = vmax.f32 %v2726_v55, 0.0  ;;  %7311 = vrot.lane.b32.xlu0 %v7310_v56, %s8015_s4  ;;  %v9496_v29 = vsel %vm1397_vm2, %v2795_v37, %v2779_v33  ;;  %v2877_v28 = vrot.slane %v2757_v52, 1 }
 0x4c9   : > { %v7315_v44 = vpack.i.bf16 %v2760_v9, %v2759_v11  ;;  %v2798_v0 = vrot.slane %v2760_v9, 7  ;;  %v2894_v63 = vrot.slane %v2760_v9, 1 }
 0x4ca   : > { %v7320_v21 = vpack.i.bf16 %v2758_v16, %v2757_v52  ;;  %v2797_v22 = vrot.slane %v2758_v16, 7  ;;  %v2893_v26 = vrot.slane %v2758_v16, 1  ;;  %v6446_v25 = vpop.f32.mrb[20].mxu0 }
 0x4cb   : > { %v2731_v18 = vadd.f32 %v6446_v25, %v9345_v50  ;;  %7316 = vrot.lane.b32.xlu1 %v7315_v44, %s8014_s26  ;;  %v2623_v31 = vpop.f32.mrb[21].mxu0  ;;  %v2910_v47 = vsel %vm1496_vm3, %v2878_v49, %v2894_v63  ;;  %v2926_v15 = vsel %vm1496_vm3, %v2894_v63, %v2878_v49  ;;  %v9506_v33 = vsel %vm1397_vm2, %v2782_v8, %v2798_v0 }
 0x4cc   : > { %v2729_v61 = vadd.f32 %v9345_v50, %v2623_v31  ;;  %7321 = vrot.lane.b32.xlu0 %v7320_v21, %s8014_s26  ;;  %v6447_v32 = vpop.f32.mrb[22].mxu0  ;;  %v2952_v2 = vsel %vm1463_vm4, 0.0, %v2926_v15  ;;  %v2909_v20 = vsel %vm1496_vm3, %v2877_v28, %v2893_v26  ;;  %v2925_v34 = vsel %vm1496_vm3, %v2893_v26, %v2877_v28 }
 0x4cd   : > { %v2763_v35 = vmax.f32 %v2731_v18, 0.0  ;;  %v2732_v37 = vadd.f32 %v6447_v32, %v9345_v50  ;;  %v2626_v36 = vpop.f32.mrb[23].mxu0  ;;  %v7325_v38 = vpack.i.bf16 %v2952_v2, %v2910_v47  ;;  %v2950_v58 = vsel %vm1463_vm4, 0.0, %v2925_v34 }
 0x4ce   : > { %v2761_v57 = vmax.f32 %v2729_v61, 0.0  ;;  %v2730_v41 = vadd.f32 %v9345_v50, %v2626_v36  ;;  %v7330_v42 = vpack.i.bf16 %v2950_v58, %v2909_v20  ;;  %v9522_v43 = vsel %vm1397_vm2, %v2798_v0, %v2782_v8 }
 0x4cf   : > { %v2784_v45 = vrot.slane %v2763_v35, 7  ;;  %v2764_v6 = vmax.f32 %v2732_v37, 0.0  ;;  %7326 = vrot.lane.b32.xlu1 %v7325_v38, %s8015_s4  ;;  %v2880_v39 = vrot.slane %v2763_v35, 1  ;;  %v9528_v51 = vsel %vm1397_vm2, %v2781_v4, %v2797_v22 }
 0x4d0   : > { %v2783_v1 = vrot.slane %v2761_v57, 7  ;;  %v2762_v11 = vmax.f32 %v2730_v41, 0.0  ;;  %7331 = vrot.lane.b32.xlu0 %v7330_v42, %s8015_s4  ;;  %v9532_v52 = vsel %vm1397_vm2, %v2797_v22, %v2781_v4  ;;  %v2879_v55 = vrot.slane %v2761_v57, 1 }
 0x4d1   : > { %v7335_v60 = vpack.i.bf16 %v2764_v6, %v2763_v35  ;;  %v2800_v54 = vrot.slane %v2764_v6, 7  ;;  %v2896_v53 = vrot.slane %v2764_v6, 1 }
 0x4d2   : > { %v7340_v56 = vpack.i.bf16 %v2762_v11, %v2761_v57  ;;  %v2799_v8 = vrot.slane %v2762_v11, 7  ;;  %v2895_v9 = vrot.slane %v2762_v11, 1  ;;  %v6450_v49 = vpop.f32.mrb[24].mxu0 }
 0x4d3   : > { %v2735_v16 = vadd.f32 %v6450_v49, %v9345_v50  ;;  %7336 = vrot.lane.b32.xlu1 %v7335_v60, %s8014_s26  ;;  %v2639_v44 = vpop.f32.mrb[25].mxu0  ;;  %v2912_v0 = vsel %vm1496_vm3, %v2880_v39, %v2896_v53  ;;  %v2928_v63 = vsel %vm1496_vm3, %v2896_v53, %v2880_v39  ;;  %v9542_v4 = vsel %vm1397_vm2, %v2784_v45, %v2800_v54 }
 0x4d4   : > { %v2733_v28 = vadd.f32 %v9345_v50, %v2639_v44  ;;  %7341 = vrot.lane.b32.xlu0 %v7340_v56, %s8014_s26  ;;  %v6451_v21 = vpop.f32.mrb[26].mxu0  ;;  %v2956_v22 = vsel %vm1463_vm4, 0.0, %v2928_v63  ;;  %v2911_v26 = vsel %vm1496_vm3, %v2879_v55, %v2895_v9  ;;  %v2927_v25 = vsel %vm1496_vm3, %v2895_v9, %v2879_v55 }
 0x4d5   : > { %v2767_v18 = vmax.f32 %v2735_v16, 0.0  ;;  %v2736_v31 = vadd.f32 %v6451_v21, %v9345_v50  ;;  %v2642_v47 = vpop.f32.mrb[27].mxu0  ;;  %v7345_v15 = vpack.i.bf16 %v2956_v22, %v2912_v0  ;;  %v2954_v61 = vsel %vm1463_vm4, 0.0, %v2927_v25 }
 0x4d6   : > { %v2765_v32 = vmax.f32 %v2733_v28, 0.0  ;;  %v2734_v2 = vadd.f32 %v9345_v50, %v2642_v47  ;;  %v7350_v20 = vpack.i.bf16 %v2954_v61, %v2911_v26  ;;  %v9558_v34 = vsel %vm1397_vm2, %v2800_v54, %v2784_v45 }
 0x4d7   : > { %v2786_v35 = vrot.slane %v2767_v18, 7  ;;  %v2768_v37 = vmax.f32 %v2736_v31, 0.0  ;;  %7346 = vrot.lane.b32.xlu1 %v7345_v15, %s8015_s4  ;;  %v2882_v36 = vrot.slane %v2767_v18, 1  ;;  %v9564_v57 = vsel %vm1397_vm2, %v2783_v1, %v2799_v8 }
 0x4d8   : > { %v2785_v38 = vrot.slane %v2765_v32, 7  ;;  %v2766_v58 = vmax.f32 %v2734_v2, 0.0  ;;  %7351 = vrot.lane.b32.xlu0 %v7350_v20, %s8015_s4  ;;  %v9568_v45 = vsel %vm1397_vm2, %v2799_v8, %v2783_v1  ;;  %v2881_v39 = vrot.slane %v2765_v32, 1 }
 0x4d9   : > { %v7355_v41 = vpack.i.bf16 %v2768_v37, %v2767_v18  ;;  %v2802_v42 = vrot.slane %v2768_v37, 7  ;;  %v2898_v6 = vrot.slane %v2768_v37, 1 }
 0x4da   : > { %v7360_v11 = vpack.i.bf16 %v2766_v58, %v2765_v32  ;;  %v2801_v60 = vrot.slane %v2766_v58, 7  ;;  %v2897_v54 = vrot.slane %v2766_v58, 1  ;;  %v6454_v53 = vpop.f32.mrb[28].mxu0 }
 0x4db   : > { %v2739_v55 = vadd.f32 %v6454_v53, %v9345_v50  ;;  %7356 = vrot.lane.b32.xlu1 %v7355_v41, %s8014_s26  ;;  %v2655_v56 = vpop.f32.mrb[29].mxu0  ;;  %v2914_v9 = vsel %vm1496_vm3, %v2882_v36, %v2898_v6  ;;  %v2930_v49 = vsel %vm1496_vm3, %v2898_v6, %v2882_v36  ;;  %v9578_v1 = vsel %vm1397_vm2, %v2786_v35, %v2802_v42 }
 0x4dc   : > { %v2737_v8 = vadd.f32 %v9345_v50, %v2655_v56  ;;  %7361 = vrot.lane.b32.xlu0 %v7360_v11, %s8014_s26  ;;  %v6455_v16 = vpop.f32.mrb[30].mxu0  ;;  %v2960_v44 = vsel %vm1463_vm4, 0.0, %v2930_v49  ;;  %v2913_v0 = vsel %vm1496_vm3, %v2881_v39, %v2897_v54  ;;  %v2929_v63 = vsel %vm1496_vm3, %v2897_v54, %v2881_v39 }
 0x4dd   : > { %v2771_v28 = vmax.f32 %v2739_v55, 0.0  ;;  %v2740_v21 = vadd.f32 %v6455_v16, %v9345_v50  ;;  %v2658_v22 = vpop.f32.mrb[31].mxu0  ;;  %v7365_v26 = vpack.i.bf16 %v2960_v44, %v2914_v9  ;;  %v2958_v25 = vsel %vm1463_vm4, 0.0, %v2929_v63 }
 0x4de   : > { %v2769_v18 = vmax.f32 %v2737_v8, 0.0  ;;  %v2738_v31 = vadd.f32 %v9345_v50, %v2658_v22  ;;  %v7370_v47 = vpack.i.bf16 %v2958_v25, %v2913_v0  ;;  %v9594_v15 = vsel %vm1397_vm2, %v2802_v42, %v2786_v35 }
 0x4df   : > { %v2788_v61 = vrot.slane %v2771_v28, 7  ;;  %v2772_v32 = vmax.f32 %v2740_v21, 0.0  ;;  %7366 = vrot.lane.b32.xlu1 %v7365_v26, %s8015_s4  ;;  %v2884_v2 = vrot.slane %v2771_v28, 1  ;;  %v9600_v36 = vsel %vm1397_vm2, %v2785_v38, %v2801_v60 }
 0x4e0   : > { %v2787_v20 = vrot.slane %v2769_v18, 7  ;;  %v2770_v37 = vmax.f32 %v2738_v31, 0.0  ;;  %7371 = vrot.lane.b32.xlu0 %v7370_v47, %s8015_s4  ;;  %v9604_v35 = vsel %vm1397_vm2, %v2801_v60, %v2785_v38  ;;  %v2883_v42 = vrot.slane %v2769_v18, 1 }
 0x4e1   : > { %v7375_v58 = vpack.i.bf16 %v2772_v32, %v2771_v28  ;;  %v2804_v50 = vrot.slane %v2772_v32, 7  ;;  %v2900_v41 = vrot.slane %v2772_v32, 1  ;;  %v2837_v31 = vsel %vm1363_vm5, 0.0, %v9385_v40 }
 0x4e2   : > { %v7380_v6 = vpack.i.bf16 %v2770_v37, %v2769_v18  ;;  %v2803_v39 = vrot.slane %v2770_v37, 7  ;;  %v2899_v11 = vrot.slane %v2770_v37, 1  ;;  %v2839_v18 = vsel %vm1363_vm5, 0.0, %v9375_v7 }
 0x4e3   : > { %7376 = vrot.lane.b32.xlu1 %v7375_v58, %s8014_s26  ;;  %v2916_v54 = vsel %vm1496_vm3, %v2884_v2, %v2900_v41  ;;  %v2932_v53 = vsel %vm1496_vm3, %v2900_v41, %v2884_v2  ;;  %v9613_v55 = vsel %vm1397_vm2, %v2788_v61, %v2804_v50  ;;  %v9617_v38 = vsel %vm1397_vm2, %v2804_v50, %v2788_v61 }
 0x4e4   : > { %7381 = vrot.lane.b32.xlu0 %v7380_v6, %s8014_s26  ;;  %v2964_v60 = vsel %vm1463_vm4, 0.0, %v2932_v53  ;;  %v2915_v56 = vsel %vm1496_vm3, %v2883_v42, %v2899_v11  ;;  %v2931_v9 = vsel %vm1496_vm3, %v2899_v11, %v2883_v42  ;;  %v9630_v16 = vsel %vm1397_vm2, %v2787_v20, %v2803_v39 }
 0x4e5   : > { %v7390_v49 = vpack.i.bf16 %v2964_v60, %v2916_v54  ;;  %v2962_v8 = vsel %vm1463_vm4, 0.0, %v2931_v9  ;;  %v9634_v44 = vsel %vm1397_vm2, %v2803_v39, %v2787_v20 }
 0x4e6   : > { %v7385_v0 = vpack.i.bf16 %v2962_v8, %v2915_v56  ;;  %v2841_v8 = vsel %vm1363_vm5, 0.0, %v9424_v30 }
 0x4e7   : > { %7391 = vrot.lane.b32.xlu1 %v7390_v49, %s8015_s4  ;;  %v2843_v49 = vsel %vm1363_vm5, 0.0, %v9414_v10 }
 0x4e8   : > { %7386 = vrot.lane.b32.xlu0 %v7385_v0, %s8015_s4 }
 0x51d   : > { %v7237_v63 = vpop.permute.xlu1 %7236 }
 0x51e   : > { %v7242_v28 = vpop.permute.xlu0 %7241  ;;  %v7239_v21 = vunpack.i.h.bf16 %v7237_v63  ;;  %v7238_v22 = vunpack.i.l.bf16 %v7237_v63 }
 0x51f   : > { %v7244_v26 = vunpack.i.h.bf16 %v7242_v28  ;;  %v7243_v24 = vunpack.i.l.bf16 %v7242_v28 }
 0x520   : > { %v3223_v2 = vsel %vm1850_vm7, %v2839_v18, %v7238_v22  ;;  %v3224_v20 = vsel %vm1850_vm7, %v9359_v27, %v7239_v21 }
 0x521   : > { %v7247_v25 = vpop.permute.xlu1 %7246  ;;  %v3221_v50 = vsel %vm1850_vm7, %v2837_v31, %v7243_v24  ;;  %v3222_v41 = vsel %vm1850_vm7, %v9381_v17, %v7244_v26 }
 0x522   : > { %v7249_v47 = vunpack.i.h.bf16 %v7247_v25  ;;  %v7248_v61 = vunpack.i.l.bf16 %v7247_v25  ;;  %v7252_v32 = vpop.permute.xlu0 %7251 }
 0x523   : > { %v7254_v37 = vunpack.i.h.bf16 %v7252_v32  ;;  %v7253_v58 = vunpack.i.l.bf16 %v7252_v32 }
 0x524   : > { %v3256_v7 = vsel %vm3253_vm8, %v3223_v2, %v7248_v61  ;;  %v3257_v42 = vsel %vm3253_vm8, %v3224_v20, %v7249_v47 }
 0x525   : > { %v3291_v40 = vpack.c.bf16 %v3257_v42, %v3256_v7  ;;  %v3254_v6 = vsel %vm3253_vm8, %v3221_v50, %v7253_v58  ;;  %v3255_v39 = vsel %vm3253_vm8, %v3222_v41, %v7254_v37  ;;  %v7257_v11 = vpop.permute.xlu1 %7256  ;;  %v7411_v50 = vld [vmem:[#allocation15 + $0x8] sm:$0xff]  }
 0x526   : > { %v3290_v54 = vpack.c.bf16 %v3255_v39, %v3254_v6  ;;  %v7262_v53 = vpop.permute.xlu0 %7261  ;;  %v7259_v27 = vunpack.i.h.bf16 %v7257_v11  ;;  %v7258_v60 = vunpack.i.l.bf16 %v7257_v11  ;;  %v2845_v6 = vsel %vm1363_vm5, 0.0, %v9460_v23 }
 0x527   : > { %3308 = vst.msk [vmem:[#allocation3 + $0x10] sm:$0xff] %vm3286_vm1, %v3291_v40  ;;  %v7264_v56 = vunpack.i.h.bf16 %v7262_v53  ;;  %v7263_v17 = vunpack.i.l.bf16 %v7262_v53  ;;  %v2847_v40 = vsel %vm1363_vm5, 0.0, %v9450_v5 }
 0x528   : > { %3307 = vst.msk [vmem:[#allocation3 + $0x8] sm:$0xff] %vm3286_vm1, %v3290_v54  ;;  %v3227_v21 = vsel %vm1850_vm7, %v2843_v49, %v7258_v60  ;;  %v3228_v22 = vsel %vm1850_vm7, %v9397_v46, %v7259_v27 }
 0x529   : > { %v7267_v9 = vpop.permute.xlu1 %7266  ;;  %v3225_v25 = vsel %vm1850_vm7, %v2841_v8, %v7263_v17  ;;  %v3226_v18 = vsel %vm1850_vm7, %v9420_v13, %v7264_v56  ;;  %v7412_v17 = vld [vmem:[#allocation15 + $0x10] sm:$0xff]  }
 0x52a   : > { %v7269_v0 = vunpack.i.h.bf16 %v7267_v9  ;;  %v7268_v63 = vunpack.i.l.bf16 %v7267_v9  ;;  %v7272_v28 = vpop.permute.xlu0 %7271 }
 0x52b   : > { %v7274_v26 = vunpack.i.h.bf16 %v7272_v28  ;;  %v7273_v24 = vunpack.i.l.bf16 %v7272_v28 }
 0x52c   : > { %v3260_v10 = vsel %vm3253_vm8, %v3227_v21, %v7268_v63  ;;  %v3261_v31 = vsel %vm3253_vm8, %v3228_v22, %v7269_v0 }
 0x52d   : > { %v3293_v30 = vpack.c.bf16 %v3261_v31, %v3260_v10  ;;  %v3258_v47 = vsel %vm3253_vm8, %v3225_v25, %v7273_v24  ;;  %v3259_v61 = vsel %vm3253_vm8, %v3226_v18, %v7274_v26  ;;  %v7277_v32 = vpop.permute.xlu1 %7276  ;;  %v2851_v31 = vsel %vm1363_vm5, 0.0, %v9486_v59 }
 0x52e   : > { %v3292_v2 = vpack.c.bf16 %v3259_v61, %v3258_v47  ;;  %v7282_v20 = vpop.permute.xlu0 %7281  ;;  %v7279_v46 = vunpack.i.h.bf16 %v7277_v32  ;;  %v7278_v37 = vunpack.i.l.bf16 %v7277_v32  ;;  %v9678_v7 = vld [vmem:[#allocation3 + $0x10] sm:$0xff] }
 0x52f   : > { %3310 = vst.msk [vmem:[#allocation3 + $0x20] sm:$0xff] %vm3286_vm1, %v3293_v30  ;;  %v9673_v58 = vld [vmem:[#allocation3 + $0x8] sm:$0xff]  ;;  %v7284_v13 = vunpack.i.h.bf16 %v7282_v20  ;;  %v7283_v41 = vunpack.i.l.bf16 %v7282_v20  ;;  %v2849_v30 = vsel %vm1363_vm5, 0.0, %v9496_v29 }
 0x530   : > { %3309 = vst.msk [vmem:[#allocation3 + $0x18] sm:$0xff] %vm3286_vm1, %v3292_v2  ;;  %6468 = vmatprep.mubr.msk.bf16.mxu1 %vm3286_vm1, %v9673_v58  ;;  %v3231_v53 = vsel %vm1850_vm7, %v2847_v40, %v7278_v37  ;;  %v3232_v27 = vsel %vm1850_vm7, %v9434_v48, %v7279_v46 }
 0x531   : > { %6469 = vmatmul.mubr.msk.bf16.vlgmr.msra.gmra.mrb[0].mxu1 %vm3286_vm1, %v9678_v7  ;;  %v7287_v42 = vpop.permute.xlu1 %7286  ;;  %v3229_v5 = vsel %vm1850_vm7, %v2845_v6, %v7283_v41  ;;  %v3230_v9 = vsel %vm1850_vm7, %v9456_v3, %v7284_v13  ;;  %v7413_v3 = vld [vmem:[#allocation15 + $0x18] sm:$0xff]  }
 0x532   : > { %6501 = vmatpush3.bf16.msra.mxu1 %v9387_v19  ;;  %v7289_v39 = vunpack.i.h.bf16 %v7287_v42  ;;  %v7288_v11 = vunpack.i.l.bf16 %v7287_v42  ;;  %v7292_v54 = vpop.permute.xlu0 %7291 }
 0x533   : > { %v7294_v60 = vunpack.i.h.bf16 %v7292_v54  ;;  %v7293_v56 = vunpack.i.l.bf16 %v7292_v54  ;;  %6502 = vmatprep.subr.bf16.mxu1 %v7411_v50 }
 0x534   : > { %v3264_v23 = vsel %vm3253_vm8, %v3231_v53, %v7288_v11  ;;  %v3265_v19 = vsel %vm3253_vm8, %v3232_v27, %v7289_v39 }
 0x535   : > { %v3295_v49 = vpack.c.bf16 %v3265_v19, %v3264_v23  ;;  %v3262_v8 = vsel %vm3253_vm8, %v3229_v5, %v7293_v56  ;;  %v3263_v0 = vsel %vm3253_vm8, %v3230_v9, %v7294_v60  ;;  %v7297_v63 = vpop.permute.xlu1 %7296  ;;  %v2855_v9 = vsel %vm1363_vm5, 0.0, %v9522_v43 }
 0x536   : > { %v3294_v48 = vpack.c.bf16 %v3263_v0, %v3262_v8  ;;  %v7302_v28 = vpop.permute.xlu0 %7301  ;;  %6503 = vmatpush3.bf16.msra.mxu1 %v7411_v50  ;;  %v7299_v21 = vunpack.i.h.bf16 %v7297_v63  ;;  %v7298_v22 = vunpack.i.l.bf16 %v7297_v63  ;;  %v9705_v18 = vld [vmem:[#allocation3 + $0x20] sm:$0xff]  ;;  %v2853_v23 = vsel %vm1363_vm5, 0.0, %v9532_v52 }
 0x537   : > { %3312 = vst.msk [vmem:[#allocation3 + $0x30] sm:$0xff] %vm3286_vm1, %v3295_v49  ;;  %v9700_v26 = vld [vmem:[#allocation3 + $0x18] sm:$0xff]  ;;  %6504 = vmatprep.subr.bf16.mxu1 %v7412_v17  ;;  %v7304_v24 = vunpack.i.h.bf16 %v7302_v28  ;;  %v7303_v25 = vunpack.i.l.bf16 %v7302_v28 }
 0x538   : > { %3311 = vst.msk [vmem:[#allocation3 + $0x28] sm:$0xff] %vm3286_vm1, %v3294_v48  ;;  %6472 = vmatprep.mubr.msk.bf16.mxu1 %vm3286_vm1, %v9700_v26  ;;  %v3235_v2 = vsel %vm1850_vm7, %v2851_v31, %v7298_v22  ;;  %v3236_v20 = vsel %vm1850_vm7, %v9470_v14, %v7299_v21  ;;  %v7414_v50 = vld [vmem:[#allocation15 + $0x20] sm:$0xff]  }
 0x539   : > { %6473 = vmatmul.mubr.msk.bf16.gmra.mrb[4].mxu1 %vm3286_vm1, %v9705_v18  ;;  %v7307_v10 = vpop.permute.xlu1 %7306  ;;  %v3233_v13 = vsel %vm1850_vm7, %v2849_v30, %v7303_v25  ;;  %v3234_v59 = vsel %vm1850_vm7, %v9492_v12, %v7304_v24  ;;  %v7415_v12 = vld [vmem:[#allocation15 + $0x28] sm:$0xff]   ;;  %v9744_v21 = vld [vmem:[#allocation15 + $0x60] sm:$0xff]  }
 0x53a   : > { %v7309_v47 = vunpack.i.h.bf16 %v7307_v10  ;;  %v7308_v61 = vunpack.i.l.bf16 %v7307_v10  ;;  %v7312_v32 = vpop.permute.xlu0 %7311  ;;  %6505 = vmatpush3.bf16.msra.mxu1 %v7412_v17 }
 0x53b   : > { %v7314_v46 = vunpack.i.h.bf16 %v7312_v32  ;;  %v7313_v37 = vunpack.i.l.bf16 %v7312_v32  ;;  %6506 = vmatprep.subr.bf16.mxu1 %v7413_v3 }
 0x53c   : > { %v3268_v29 = vsel %vm3253_vm8, %v3235_v2, %v7308_v61  ;;  %v3269_v41 = vsel %vm3253_vm8, %v3236_v20, %v7309_v47 }
 0x53d   : > { %v3297_v42 = vpack.c.bf16 %v3269_v41, %v3268_v29  ;;  %v3266_v40 = vsel %vm3253_vm8, %v3233_v13, %v7313_v37  ;;  %v3267_v6 = vsel %vm3253_vm8, %v3234_v59, %v7314_v46  ;;  %v7317_v39 = vpop.permute.xlu1 %7316  ;;  %v2859_v37 = vsel %vm1363_vm5, 0.0, %v9558_v34 }
 0x53e   : > { %v3296_v14 = vpack.c.bf16 %v3267_v6, %v3266_v40  ;;  %v7322_v11 = vpop.permute.xlu0 %7321  ;;  %6507 = vmatpush3.bf16.msra.mxu1 %v7413_v3  ;;  %v7319_v54 = vunpack.i.h.bf16 %v7317_v39  ;;  %v7318_v53 = vunpack.i.l.bf16 %v7317_v39  ;;  %v9731_v17 = vld [vmem:[#allocation3 + $0x30] sm:$0xff] }
 0x53f   : > { %3314 = vst.msk [vmem:[#allocation3 + $0x40] sm:$0xff] %vm3286_vm1, %v3297_v42  ;;  %v9726_v27 = vld [vmem:[#allocation3 + $0x28] sm:$0xff]  ;;  %6508 = vmatprep.subr.bf16.mxu1 %v7414_v50  ;;  %v7324_v60 = vunpack.i.h.bf16 %v7322_v11  ;;  %v7323_v56 = vunpack.i.l.bf16 %v7322_v11 }
 0x540   : > { %3313 = vst.msk [vmem:[#allocation3 + $0x38] sm:$0xff] %vm3286_vm1, %v3296_v14  ;;  %6476 = vmatprep.mubr.msk.bf16.mxu1 %vm3286_vm1, %v9726_v27  ;;  %v3239_v0 = vsel %vm1850_vm7, %v2855_v9, %v7318_v53  ;;  %v3240_v63 = vsel %vm1850_vm7, %v9506_v33, %v7319_v54 }
 0x541   : > { %6477 = vmatmul.mubr.msk.bf16.gmra.mrb[8].mxu1 %vm3286_vm1, %v9731_v17  ;;  %v7327_v5 = vpop.permute.xlu1 %7326  ;;  %v3237_v43 = vsel %vm1850_vm7, %v2853_v23, %v7323_v56  ;;  %v3238_v22 = vsel %vm1850_vm7, %v9528_v51, %v7324_v60 }
 0x542   : > { %v7329_v19 = vunpack.i.h.bf16 %v7327_v5  ;;  %v7328_v49 = vunpack.i.l.bf16 %v7327_v5  ;;  %v7332_v8 = vpop.permute.xlu0 %7331  ;;  %6509 = vmatpush3.bf16.msra.mxu1 %v7414_v50  ;;  %v2857_v50 = vsel %vm1363_vm5, 0.0, %v9568_v45 }
 0x543   : > { %v7334_v48 = vunpack.i.h.bf16 %v7332_v8  ;;  %v7333_v28 = vunpack.i.l.bf16 %v7332_v8  ;;  %6510 = vmatprep.subr.bf16.mxu1 %v7415_v12  ;;  %v2863_v8 = vsel %vm1363_vm5, 0.0, %v9594_v15 }
 0x544   : > { %v3272_v52 = vsel %vm3253_vm8, %v3239_v0, %v7328_v49  ;;  %v3273_v3 = vsel %vm3253_vm8, %v3240_v63, %v7329_v19  ;;  %v2861_v0 = vsel %vm1363_vm5, 0.0, %v9604_v35 }
 0x545   : > { %v3299_v24 = vpack.c.bf16 %v3273_v3, %v3272_v52  ;;  %v3270_v25 = vsel %vm3253_vm8, %v3237_v43, %v7333_v28  ;;  %v3271_v10 = vsel %vm3253_vm8, %v3238_v22, %v7334_v48  ;;  %v7337_v33 = vpop.permute.xlu1 %7336 }
 0x546   : > { %v3298_v31 = vpack.c.bf16 %v3271_v10, %v3270_v25  ;;  %v7342_v30 = vpop.permute.xlu0 %7341  ;;  %6511 = vmatpush3.bf16.msra.mxu1 %v7415_v12  ;;  %v7339_v47 = vunpack.i.h.bf16 %v7337_v33  ;;  %v7338_v61 = vunpack.i.l.bf16 %v7337_v33  ;;  %v9760_v20 = vld [vmem:[#allocation3 + $0x40] sm:$0xff] }
 0x547   : > { %3316 = vst.msk [vmem:[#allocation3 + $0x50] sm:$0xff] %vm3286_vm1, %v3299_v24  ;;  %v9754_v32 = vld [vmem:[#allocation3 + $0x38] sm:$0xff]  ;;  %6544 = vmatprep.subr.bf16.mxu1 %v9744_v21  ;;  %v7344_v51 = vunpack.i.h.bf16 %v7342_v30  ;;  %v7343_v2 = vunpack.i.l.bf16 %v7342_v30 }
 0x548   : > { %3315 = vst.msk [vmem:[#allocation3 + $0x48] sm:$0xff] %vm3286_vm1, %v3298_v31  ;;  %6480 = vmatprep.mubr.msk.bf16.mxu1 %vm3286_vm1, %v9754_v32  ;;  %v3243_v41 = vsel %vm1850_vm7, %v2859_v37, %v7338_v61  ;;  %v3244_v42 = vsel %vm1850_vm7, %v9542_v4, %v7339_v47 }
 0x549   : > { %6481 = vmatmul.mubr.msk.bf16.gmra.mrb[12].mxu1 %vm3286_vm1, %v9760_v20  ;;  %v7347_v46 = vpop.permute.xlu1 %7346  ;;  %v3241_v39 = vsel %vm1850_vm7, %v2857_v50, %v7343_v2  ;;  %v3242_v14 = vsel %vm1850_vm7, %v9564_v57, %v7344_v51 }
 0x54a   : > { %v7349_v13 = vunpack.i.h.bf16 %v7347_v46  ;;  %v7348_v59 = vunpack.i.l.bf16 %v7347_v46  ;;  %v7352_v29 = vpop.permute.xlu0 %7351 }
 0x54b   : > { %v7354_v40 = vunpack.i.h.bf16 %v7352_v29  ;;  %v7353_v6 = vunpack.i.l.bf16 %v7352_v29 }
 0x54c   : > { %v3276_v34 = vsel %vm3253_vm8, %v3243_v41, %v7348_v59  ;;  %v3277_v11 = vsel %vm3253_vm8, %v3244_v42, %v7349_v13  ;;  %v2867_v13 = vsel %vm1363_vm5, 0.0, %v9617_v38  ;;  %v2865_v59 = vsel %vm1363_vm5, 0.0, %v9634_v44 }
 0x54d   : > { %v3301_v45 = vpack.c.bf16 %v3277_v11, %v3276_v34  ;;  %v3274_v54 = vsel %vm3253_vm8, %v3241_v39, %v7353_v6  ;;  %v3275_v53 = vsel %vm3253_vm8, %v3242_v14, %v7354_v40  ;;  %v7357_v12 = vpop.permute.xlu1 %7356 }
 0x54e   : > { %v3300_v60 = vpack.c.bf16 %v3275_v53, %v3274_v54  ;;  %v7362_v56 = vpop.permute.xlu0 %7361  ;;  %v7359_v4 = vunpack.i.h.bf16 %v7357_v12  ;;  %v7358_v5 = vunpack.i.l.bf16 %v7357_v12  ;;  %v9786_v19 = vld [vmem:[#allocation3 + $0x50] sm:$0xff] }
 0x54f   : > { %3318 = vst.msk [vmem:[#allocation3 + $0x60] sm:$0xff] %vm3286_vm1, %v3301_v45  ;;  %v9781_v9 = vld [vmem:[#allocation3 + $0x48] sm:$0xff]  ;;  %v7364_v57 = vunpack.i.h.bf16 %v7362_v56  ;;  %v7363_v23 = vunpack.i.l.bf16 %v7362_v56 }
 0x550   : > { %3317 = vst.msk [vmem:[#allocation3 + $0x58] sm:$0xff] %vm3286_vm1, %v3300_v60  ;;  %6484 = vmatprep.mubr.msk.bf16.mxu1 %vm3286_vm1, %v9781_v9  ;;  %v3247_v43 = vsel %vm1850_vm7, %v2863_v8, %v7358_v5  ;;  %v3248_v22 = vsel %vm1850_vm7, %v9578_v1, %v7359_v4  ;;  %v3323_v60 = vld [vmem:[#allocation3] sm:$0xff]  ;;  %v7422_v4 = vld [vmem:[#allocation18] sm:$0xff]   ;;  %v7423_v5 = vld [vmem:[#allocation18 + $0x8] sm:$0xff]  }
 0x551   : > { %6485 = vmatmul.mubr.msk.bf16.gmra.mrb[16].mxu1 %vm3286_vm1, %v9786_v19  ;;  %v7367_v49 = vpop.permute.xlu1 %7366  ;;  %v3245_v24 = vsel %vm1850_vm7, %v2861_v0, %v7363_v23  ;;  %v3246_v25 = vsel %vm1850_vm7, %v9600_v36, %v7364_v57  ;;  %6588 = vmatprep.subr.bf16.mxu0 %v7422_v4  ;;  %v7417_v57 = vld [vmem:[#allocation15 + $0x68] sm:$0xff]   ;;  %v7418_v23 = vld [vmem:[#allocation15 + $0x70] sm:$0xff]   ;;  %v7420_v8 = vld [vmem:[#allocation15 + $0x80] sm:$0xff]  }
 0x552   : > { %v7369_v63 = vunpack.i.h.bf16 %v7367_v49  ;;  %v7368_v48 = vunpack.i.l.bf16 %v7367_v49  ;;  %v7372_v28 = vpop.permute.xlu0 %7371  ;;  %6589 = vmatpush3.bf16.msra.mxu0 %v7422_v4  ;;  %v7419_v49 = vld [vmem:[#allocation15 + $0x78] sm:$0xff]  }
 0x553   : > { %v7374_v52 = vunpack.i.h.bf16 %v7372_v28  ;;  %v7373_v3 = vunpack.i.l.bf16 %v7372_v28  ;;  %6590 = vmatprep.subr.bf16.mxu0 %v7423_v5 }
 0x554   : > { %v3280_v15 = vsel %vm3253_vm8, %v3247_v43, %v7368_v48  ;;  %v3281_v10 = vsel %vm3253_vm8, %v3248_v22, %v7369_v63 }
 0x555   : > { %v3303_v35 = vpack.c.bf16 %v3281_v10, %v3280_v15  ;;  %v3278_v33 = vsel %vm3253_vm8, %v3245_v24, %v7373_v3  ;;  %v3279_v31 = vsel %vm3253_vm8, %v3246_v25, %v7374_v52  ;;  %v7377_v30 = vpop.permute.xlu1 %7376 }
 0x556   : > { %v3302_v47 = vpack.c.bf16 %v3279_v31, %v3278_v33  ;;  %v7382_v61 = vpop.permute.xlu0 %7381  ;;  %v7379_v1 = vunpack.i.h.bf16 %v7377_v30  ;;  %v7378_v51 = vunpack.i.l.bf16 %v7377_v30  ;;  %v9812_v37 = vld [vmem:[#allocation3 + $0x60] sm:$0xff]  ;;  %6591 = vmatpush3.bf16.msra.mxu0 %v7423_v5 }
 0x557   : > { %3320 = vst.msk [vmem:[#allocation3 + $0x70] sm:$0xff] %vm3286_vm1, %v3303_v35  ;;  %v9807_v2 = vld [vmem:[#allocation3 + $0x58] sm:$0xff]  ;;  %v7384_v36 = vunpack.i.h.bf16 %v7382_v61  ;;  %v7383_v46 = vunpack.i.l.bf16 %v7382_v61 }
 0x558   : > { %3319 = vst.msk [vmem:[#allocation3 + $0x68] sm:$0xff] %vm3286_vm1, %v3302_v47  ;;  %6488 = vmatprep.mubr.msk.bf16.mxu1 %vm3286_vm1, %v9807_v2  ;;  %v3251_v40 = vsel %vm1850_vm7, %v2867_v13, %v7378_v51  ;;  %v3252_v6 = vsel %vm1850_vm7, %v9613_v55, %v7379_v1 }
 0x559   : > { %6489 = vmatmul.mubr.msk.bf16.gmra.mrb[20].mxu1 %vm3286_vm1, %v9812_v37  ;;  %v7392_v50 = vpop.permute.xlu1 %7391  ;;  %v3249_v34 = vsel %vm1850_vm7, %v2865_v59, %v7383_v46  ;;  %v3250_v11 = vsel %vm1850_vm7, %v9630_v16, %v7384_v36 }
 0x55a   : > { %v7394_v29 = vunpack.i.h.bf16 %v7392_v50  ;;  %v7393_v41 = vunpack.i.l.bf16 %v7392_v50  ;;  %v7387_v42 = vpop.permute.xlu0 %7386 }
 0x55b   : > { %v7389_v39 = vunpack.i.h.bf16 %v7387_v42  ;;  %v7388_v14 = vunpack.i.l.bf16 %v7387_v42 }
 0x55c   : > { %v3284_v38 = vsel %vm3253_vm8, %v3251_v40, %v7393_v41  ;;  %v3285_v62 = vsel %vm3253_vm8, %v3252_v6, %v7394_v29 }
 0x55d   : > { %v3305_v44 = vpack.c.bf16 %v3285_v62, %v3284_v38  ;;  %v3282_v45 = vsel %vm3253_vm8, %v3249_v34, %v7388_v14  ;;  %v3283_v54 = vsel %vm3253_vm8, %v3250_v11, %v7389_v39 }
 0x55e   : > { %v3304_v53 = vpack.c.bf16 %v3283_v54, %v3282_v45  ;;  %v3364_v12 = vld [vmem:[#allocation3 + $0x70] sm:$0xff] }
 0x55f   : > { %3322 = vst.msk [vmem:[#allocation3 + $0x80] sm:$0xff] %vm3286_vm1, %v3305_v44  ;;  %v3363_v55 = vld [vmem:[#allocation3 + $0x68] sm:$0xff] }
 0x560   : > { %3321 = vst.msk [vmem:[#allocation3 + $0x78] sm:$0xff] %vm3286_vm1, %v3304_v53  ;;  %6492 = vmatprep.mubr.msk.bf16.mxu1 %vm3286_vm1, %v3363_v55 }
 0x561   : > { %6493 = vmatmul.mubr.msk.bf16.gmra.mrb[24].mxu1 %vm3286_vm1, %v3364_v12 }
 0x566   : > { %v3366_v56 = vld [vmem:[#allocation3 + $0x80] sm:$0xff] }
 0x567   : > { %v3365_v16 = vld [vmem:[#allocation3 + $0x78] sm:$0xff] }
 0x568   : > { %6496 = vmatprep.mubr.msk.bf16.mxu1 %vm3286_vm1, %v3365_v16 }
 0x569   : > { %6497 = vmatmul.mubr.msk.bf16.gmra.mrb[28].mxu1 %vm3286_vm1, %v3366_v56 }
 0x56a   : > { %6512 = vmatprep.mubr.msk.bf16.mxu1 %vm3286_vm1, %v3323_v60 }
 0x571   : > { %6513 = vmatmul.mubr.msk.bf16.vlgmr.msra.gmra.mrb[0].mxu1 %vm3286_vm1, %v9673_v58  ;;  %v7421_v58 = vld [vmem:[#allocation15 + $0x88] sm:$0xff]  }
 0x572   : > { %6545 = vmatpush3.bf16.msra.mxu1 %v9744_v21  ;;  %6516 = vmatprep.mubr.msk.bf16.mxu1 %vm3286_vm1, %v9678_v7  ;;  %v9894_v21 = vld [vmem:[#allocation16] ss:$0 sm:$0xff] }
 0x573   : > { %6546 = vmatprep.subr.bf16.mxu1 %v7417_v57 }
 0x576   : > { %6547 = vmatpush3.bf16.msra.mxu1 %v7417_v57 }
 0x577   : > { %6548 = vmatprep.subr.bf16.mxu1 %v7418_v23 }
 0x579   : > { %6517 = vmatmul.mubr.msk.bf16.gmra.mrb[4].mxu1 %vm3286_vm1, %v9700_v26 }
 0x57a   : > { %6520 = vmatprep.mubr.msk.bf16.mxu1 %vm3286_vm1, %v9705_v18  ;;  %6549 = vmatpush3.bf16.msra.mxu1 %v7418_v23 }
 0x57b   : > { %6550 = vmatprep.subr.bf16.mxu1 %v7419_v49 }
 0x57e   : > { %6551 = vmatpush3.bf16.msra.mxu1 %v7419_v49 }
 0x57f   : > { %6552 = vmatprep.subr.bf16.mxu1 %v7420_v8 }
 0x581   : > { %6521 = vmatmul.mubr.msk.bf16.gmra.mrb[8].mxu1 %vm3286_vm1, %v9726_v27 }
 0x582   : > { %6524 = vmatprep.mubr.msk.bf16.mxu1 %vm3286_vm1, %v9731_v17  ;;  %6553 = vmatpush3.bf16.msra.mxu1 %v7420_v8 }
 0x583   : > { %6554 = vmatprep.subr.bf16.mxu1 %v7421_v58 }
 0x586   : > { %6555 = vmatpush3.bf16.msra.mxu1 %v7421_v58 }
 0x589   : > { %6525 = vmatmul.mubr.msk.bf16.gmra.mrb[12].mxu1 %vm3286_vm1, %v9754_v32 }
 0x58a   : > { %6528 = vmatprep.mubr.msk.bf16.mxu1 %vm3286_vm1, %v9760_v20 }
 0x591   : > { %6529 = vmatmul.mubr.msk.bf16.gmra.mrb[16].mxu1 %vm3286_vm1, %v9781_v9 }
 0x592   : > { %6532 = vmatprep.mubr.msk.bf16.mxu1 %vm3286_vm1, %v9786_v19 }
 0x599   : > { %6533 = vmatmul.mubr.msk.bf16.gmra.mrb[20].mxu1 %vm3286_vm1, %v9807_v2 }
 0x59a   : > { %6536 = vmatprep.mubr.msk.bf16.mxu1 %vm3286_vm1, %v9812_v37 }
 0x5a1   : > { %6537 = vmatmul.mubr.msk.bf16.gmra.mrb[24].mxu1 %vm3286_vm1, %v3363_v55 }
 0x5a2   : > { %6540 = vmatprep.mubr.msk.bf16.mxu1 %vm3286_vm1, %v3364_v12 }
 0x5a9   : > { %6541 = vmatmul.mubr.msk.bf16.gmra.mrb[28].mxu1 %vm3286_vm1, %v3365_v16 }
 0x5aa   : > { %6556 = vmatprep.mubr.msk.bf16.mxu1 %vm3286_vm1, %v9678_v7  ;;  %v3886_v7 = vld [vmem:[#allocation3 + $0x88] sm:$0xff] }
 0x5b1   : > { %6557 = vmatmul.mubr.msk.bf16.vlgmr.msra.gmra.mrb[0].mxu1 %vm3286_vm1, %v9700_v26  ;;  %v7424_v26 = vld [vmem:[#allocation21] sm:$0xff]  }
 0x5b2   : > { %6560 = vmatprep.mubr.msk.bf16.mxu1 %vm3286_vm1, %v9705_v18  ;;  %v7425_v18 = vld [vmem:[#allocation21 + $0x8] sm:$0xff]   ;;  %6624 = vmatprep.subr.bf16.mxu1 %v7424_v26 }
 0x5b3   : > { %6625 = vmatpush3.bf16.msra.mxu1 %v7424_v26 }
 0x5b4   : > { %6626 = vmatprep.subr.bf16.mxu1 %v7425_v18 }
 0x5b7   : > { %6627 = vmatpush3.bf16.msra.mxu1 %v7425_v18 }
 0x5b9   : > { %6561 = vmatmul.mubr.msk.bf16.gmra.mrb[4].mxu1 %vm3286_vm1, %v9726_v27  ;;  %v7426_v27 = vld [vmem:[#allocation21 + $0x10] sm:$0xff]  }
 0x5ba   : > { %6564 = vmatprep.mubr.msk.bf16.mxu1 %vm3286_vm1, %v9731_v17  ;;  %6628 = vmatprep.subr.bf16.mxu1 %v7426_v27  ;;  %v7427_v17 = vld [vmem:[#allocation21 + $0x18] sm:$0xff]  }
 0x5bb   : > { %6629 = vmatpush3.bf16.msra.mxu1 %v7426_v27 }
 0x5bc   : > { %6630 = vmatprep.subr.bf16.mxu1 %v7427_v17 }
 0x5bf   : > { %6631 = vmatpush3.bf16.msra.mxu1 %v7427_v17 }
 0x5c1   : > { %6565 = vmatmul.mubr.msk.bf16.gmra.mrb[8].mxu1 %vm3286_vm1, %v9754_v32 }
 0x5c2   : > { %6568 = vmatprep.mubr.msk.bf16.mxu1 %vm3286_vm1, %v9760_v20 }
 0x5c9   : > { %6569 = vmatmul.mubr.msk.bf16.gmra.mrb[12].mxu1 %vm3286_vm1, %v9781_v9 }
 0x5ca   : > { %6572 = vmatprep.mubr.msk.bf16.mxu1 %vm3286_vm1, %v9786_v19 }
 0x5d1   : > { %6573 = vmatmul.mubr.msk.bf16.gmra.mrb[16].mxu1 %vm3286_vm1, %v9807_v2 }
 0x5d2   : > { %6576 = vmatprep.mubr.msk.bf16.mxu1 %vm3286_vm1, %v9812_v37 }
 0x5d9   : > { %6577 = vmatmul.mubr.msk.bf16.gmra.mrb[20].mxu1 %vm3286_vm1, %v3363_v55 }
 0x5da   : > { %6580 = vmatprep.mubr.msk.bf16.mxu1 %vm3286_vm1, %v3364_v12 }
 0x5e1   : > { %6581 = vmatmul.mubr.msk.bf16.gmra.mrb[24].mxu1 %vm3286_vm1, %v3365_v16 }
 0x5e2   : > { %6584 = vmatprep.mubr.msk.bf16.mxu1 %vm3286_vm1, %v3366_v56 }
 0x5e9   : > { %6585 = vmatmul.mubr.msk.bf16.gmra.mrb[28].mxu1 %vm3286_vm1, %v3886_v7 }
 0x684   : > { %v6558_v32 = vpop.f32.mrb[0].mxu1 }
 0x685   : > { %v4186_v20 = vadd.f32 %v6558_v32, %v9894_v21  ;;  %v4018_v9 = vpop.f32.mrb[1].mxu1 }
 0x686   : > { %v4184_v19 = vadd.f32 %v9894_v21, %v4018_v9  ;;  %v6559_v0 = vpop.f32.mrb[2].mxu1 }
 0x687   : > { %v4187_v63 = vadd.f32 %v6559_v0, %v9894_v21  ;;  %v4021_v48 = vpop.f32.mrb[3].mxu1  ;;  %v4218_v43 = vmax.f32 %v4186_v20, 0.0 }
 0x688   : > { %v4185_v28 = vadd.f32 %v9894_v21, %v4021_v48  ;;  %v4216_v52 = vmax.f32 %v4184_v19, 0.0 }
 0x689   : > { %v4219_v22 = vmax.f32 %v4187_v63, 0.0 }
 0x68a   : > { %v4217_v3 = vmax.f32 %v4185_v28, 0.0 }
 0x68b   : > { %v4249_v24 = vpack.c.bf16 %v4219_v22, %v4218_v43 }
 0x68c   : > { %v4248_v25 = vpack.c.bf16 %v4217_v3, %v4216_v52  ;;  %v6562_v15 = vpop.f32.mrb[4].mxu1 }
 0x68d   : > { %v4190_v10 = vadd.f32 %v6562_v15, %v9894_v21  ;;  %v4034_v35 = vpop.f32.mrb[5].mxu1 }
 0x68e   : > { %v4188_v33 = vadd.f32 %v9894_v21, %v4034_v35  ;;  %v6563_v31 = vpop.f32.mrb[6].mxu1  ;;  %6592 = vmatprep.mubr.msk.bf16.mxu0 %vm1850_vm7, %v4248_v25 }
 0x68f   : > { %v4191_v30 = vadd.f32 %v6563_v31, %v9894_v21  ;;  %v4037_v47 = vpop.f32.mrb[7].mxu1  ;;  %6593 = vmatmul.mubr.msk.bf16.vlgmr.msra.gmra.mrb[32].mxu0 %vm1850_vm7, %v4249_v24  ;;  %v4222_v1 = vmax.f32 %v4190_v10, 0.0 }
 0x690   : > { %v4189_v61 = vadd.f32 %v9894_v21, %v4037_v47  ;;  %v4220_v2 = vmax.f32 %v4188_v33, 0.0 }
 0x691   : > { %v4223_v51 = vmax.f32 %v4191_v30, 0.0 }
 0x692   : > { %v4221_v36 = vmax.f32 %v4189_v61, 0.0 }
 0x693   : > { %v4251_v46 = vpack.c.bf16 %v4223_v51, %v4222_v1 }
 0x694   : > { %v4250_v37 = vpack.c.bf16 %v4221_v36, %v4220_v2  ;;  %v6566_v50 = vpop.f32.mrb[8].mxu1 }
 0x695   : > { %v4194_v13 = vadd.f32 %v6566_v50, %v9894_v21  ;;  %v4050_v59 = vpop.f32.mrb[9].mxu1 }
 0x696   : > { %v4192_v29 = vadd.f32 %v9894_v21, %v4050_v59  ;;  %v6567_v41 = vpop.f32.mrb[10].mxu1  ;;  %6596 = vmatprep.mubr.msk.bf16.mxu0 %vm1850_vm7, %v4250_v37 }
 0x697   : > { %v4195_v42 = vadd.f32 %v6567_v41, %v9894_v21  ;;  %v4053_v40 = vpop.f32.mrb[11].mxu1  ;;  %6597 = vmatmul.mubr.msk.bf16.gmra.mrb[36].mxu0 %vm1850_vm7, %v4251_v46  ;;  %v4226_v39 = vmax.f32 %v4194_v13, 0.0 }
 0x698   : > { %v4193_v6 = vadd.f32 %v9894_v21, %v4053_v40  ;;  %v4224_v34 = vmax.f32 %v4192_v29, 0.0 }
 0x699   : > { %v4227_v14 = vmax.f32 %v4195_v42, 0.0 }
 0x69a   : > { %v4225_v11 = vmax.f32 %v4193_v6, 0.0 }
 0x69b   : > { %v4253_v38 = vpack.c.bf16 %v4227_v14, %v4226_v39 }
 0x69c   : > { %v4252_v62 = vpack.c.bf16 %v4225_v11, %v4224_v34  ;;  %v6570_v44 = vpop.f32.mrb[12].mxu1 }
 0x69d   : > { %v4198_v45 = vadd.f32 %v6570_v44, %v9894_v21  ;;  %v4066_v54 = vpop.f32.mrb[13].mxu1 }
 0x69e   : > { %v4196_v53 = vadd.f32 %v9894_v21, %v4066_v54  ;;  %v6571_v55 = vpop.f32.mrb[14].mxu1  ;;  %6600 = vmatprep.mubr.msk.bf16.mxu0 %vm1850_vm7, %v4252_v62 }
 0x69f   : > { %v4199_v12 = vadd.f32 %v6571_v55, %v9894_v21  ;;  %v4069_v16 = vpop.f32.mrb[15].mxu1  ;;  %6601 = vmatmul.mubr.msk.bf16.gmra.mrb[40].mxu0 %vm1850_vm7, %v4253_v38  ;;  %v4230_v56 = vmax.f32 %v4198_v45, 0.0 }
 0x6a0   : > { %v4197_v60 = vadd.f32 %v9894_v21, %v4069_v16  ;;  %v4228_v5 = vmax.f32 %v4196_v53, 0.0 }
 0x6a1   : > { %v4231_v4 = vmax.f32 %v4199_v12, 0.0 }
 0x6a2   : > { %v4229_v57 = vmax.f32 %v4197_v60, 0.0  ;;  %v7428_v60 = vld [vmem:[#allocation24] sm:$0xff]  }
 0x6a3   : > { %v4255_v23 = vpack.c.bf16 %v4231_v4, %v4230_v56  ;;  %v7429_v56 = vld [vmem:[#allocation24 + $0x8] sm:$0xff]   ;;  %6664 = vmatprep.subr.bf16.mxu0 %v7428_v60  ;;  %v7430_v4 = vld [vmem:[#allocation24 + $0x10] sm:$0xff]  }
 0x6a4   : > { %v4254_v49 = vpack.c.bf16 %v4229_v57, %v4228_v5  ;;  %v6574_v8 = vpop.f32.mrb[16].mxu1  ;;  %6665 = vmatpush3.bf16.msra.mxu0 %v7428_v60  ;;  %v7431_v5 = vld [vmem:[#allocation24 + $0x18] sm:$0xff]  }
 0x6a5   : > { %v4202_v58 = vadd.f32 %v6574_v8, %v9894_v21  ;;  %v4082_v7 = vpop.f32.mrb[17].mxu1  ;;  %6666 = vmatprep.subr.bf16.mxu0 %v7429_v56 }
 0x6a6   : > { %v4200_v26 = vadd.f32 %v9894_v21, %v4082_v7  ;;  %v6575_v18 = vpop.f32.mrb[18].mxu1  ;;  %6604 = vmatprep.mubr.msk.bf16.mxu0 %vm1850_vm7, %v4254_v49 }
 0x6a7   : > { %v4203_v27 = vadd.f32 %v6575_v18, %v9894_v21  ;;  %v4085_v17 = vpop.f32.mrb[19].mxu1  ;;  %6605 = vmatmul.mubr.msk.bf16.gmra.mrb[44].mxu0 %vm1850_vm7, %v4255_v23  ;;  %v4234_v20 = vmax.f32 %v4202_v58, 0.0 }
 0x6a8   : > { %v4201_v32 = vadd.f32 %v9894_v21, %v4085_v17  ;;  %v4232_v19 = vmax.f32 %v4200_v26, 0.0  ;;  %6667 = vmatpush3.bf16.msra.mxu0 %v7429_v56 }
 0x6a9   : > { %v4235_v9 = vmax.f32 %v4203_v27, 0.0  ;;  %6668 = vmatprep.subr.bf16.mxu0 %v7430_v4 }
 0x6aa   : > { %v4233_v0 = vmax.f32 %v4201_v32, 0.0 }
 0x6ab   : > { %v4257_v63 = vpack.c.bf16 %v4235_v9, %v4234_v20 }
 0x6ac   : > { %v4256_v48 = vpack.c.bf16 %v4233_v0, %v4232_v19  ;;  %v6578_v28 = vpop.f32.mrb[20].mxu1  ;;  %6669 = vmatpush3.bf16.msra.mxu0 %v7430_v4 }
 0x6ad   : > { %v4206_v43 = vadd.f32 %v6578_v28, %v9894_v21  ;;  %v4098_v22 = vpop.f32.mrb[21].mxu1  ;;  %6670 = vmatprep.subr.bf16.mxu0 %v7431_v5 }
 0x6ae   : > { %v4204_v52 = vadd.f32 %v9894_v21, %v4098_v22  ;;  %v6579_v3 = vpop.f32.mrb[22].mxu1  ;;  %6608 = vmatprep.mubr.msk.bf16.mxu0 %vm1850_vm7, %v4256_v48 }
 0x6af   : > { %v4207_v24 = vadd.f32 %v6579_v3, %v9894_v21  ;;  %v4101_v25 = vpop.f32.mrb[23].mxu1  ;;  %6609 = vmatmul.mubr.msk.bf16.gmra.mrb[48].mxu0 %vm1850_vm7, %v4257_v63  ;;  %v4238_v10 = vmax.f32 %v4206_v43, 0.0 }
 0x6b0   : > { %v4205_v15 = vadd.f32 %v9894_v21, %v4101_v25  ;;  %v4236_v33 = vmax.f32 %v4204_v52, 0.0  ;;  %6671 = vmatpush3.bf16.msra.mxu0 %v7431_v5 }
 0x6b1   : > { %v4239_v35 = vmax.f32 %v4207_v24, 0.0 }
 0x6b2   : > { %v4237_v31 = vmax.f32 %v4205_v15, 0.0 }
 0x6b3   : > { %v4259_v30 = vpack.c.bf16 %v4239_v35, %v4238_v10 }
 0x6b4   : > { %v4258_v47 = vpack.c.bf16 %v4237_v31, %v4236_v33  ;;  %v6582_v61 = vpop.f32.mrb[24].mxu1 }
 0x6b5   : > { %v4210_v1 = vadd.f32 %v6582_v61, %v9894_v21  ;;  %v4114_v51 = vpop.f32.mrb[25].mxu1 }
 0x6b6   : > { %v4208_v2 = vadd.f32 %v9894_v21, %v4114_v51  ;;  %v6583_v36 = vpop.f32.mrb[26].mxu1  ;;  %6612 = vmatprep.mubr.msk.bf16.mxu0 %vm1850_vm7, %v4258_v47 }
 0x6b7   : > { %v4211_v46 = vadd.f32 %v6583_v36, %v9894_v21  ;;  %v4117_v37 = vpop.f32.mrb[27].mxu1  ;;  %6613 = vmatmul.mubr.msk.bf16.gmra.mrb[52].mxu0 %vm1850_vm7, %v4259_v30  ;;  %v4242_v13 = vmax.f32 %v4210_v1, 0.0 }
 0x6b8   : > { %v4209_v50 = vadd.f32 %v9894_v21, %v4117_v37  ;;  %v4240_v29 = vmax.f32 %v4208_v2, 0.0 }
 0x6b9   : > { %v4243_v59 = vmax.f32 %v4211_v46, 0.0 }
 0x6ba   : > { %v4241_v41 = vmax.f32 %v4209_v50, 0.0 }
 0x6bb   : > { %v4261_v42 = vpack.c.bf16 %v4243_v59, %v4242_v13 }
 0x6bc   : > { %v4260_v40 = vpack.c.bf16 %v4241_v41, %v4240_v29  ;;  %v6586_v6 = vpop.f32.mrb[28].mxu1 }
 0x6bd   : > { %v4214_v39 = vadd.f32 %v6586_v6, %v9894_v21  ;;  %v4130_v14 = vpop.f32.mrb[29].mxu1 }
 0x6be   : > { %v4212_v34 = vadd.f32 %v9894_v21, %v4130_v14  ;;  %v6587_v11 = vpop.f32.mrb[30].mxu1  ;;  %6616 = vmatprep.mubr.msk.bf16.mxu0 %vm1850_vm7, %v4260_v40 }
 0x6bf   : > { %v4215_v38 = vadd.f32 %v6587_v11, %v9894_v21  ;;  %v4133_v62 = vpop.f32.mrb[31].mxu1  ;;  %6617 = vmatmul.mubr.msk.bf16.gmra.mrb[56].mxu0 %vm1850_vm7, %v4261_v42  ;;  %v4246_v45 = vmax.f32 %v4214_v39, 0.0 }
 0x6c0   : > { %v4213_v44 = vadd.f32 %v9894_v21, %v4133_v62  ;;  %v4244_v53 = vmax.f32 %v4212_v34, 0.0  ;;  %v9944_v21 = vld [vmem:[#allocation19] ss:$0 sm:$0xff] }
 0x6c1   : > { %v4247_v54 = vmax.f32 %v4215_v38, 0.0 }
 0x6c2   : > { %v4245_v55 = vmax.f32 %v4213_v44, 0.0 }
 0x6c3   : > { %v4263_v12 = vpack.c.bf16 %v4247_v54, %v4246_v45 }
 0x6c4   : > { %v4262_v16 = vpack.c.bf16 %v4245_v55, %v4244_v53 }
 0x6c6   : > { %6620 = vmatprep.mubr.msk.bf16.mxu0 %vm1850_vm7, %v4262_v16 }
 0x6c7   : > { %6621 = vmatmul.mubr.msk.bf16.gmra.mrb[60].mxu0 %vm1850_vm7, %v4263_v12 }
 0x762   : > { %v6594_v57 = vpop.f32.mrb[32].mxu0 }
 0x763   : > { %v4378_v23 = vadd.f32 %v6594_v57, %v9944_v21  ;;  %v4369_v49 = vpop.f32.mrb[33].mxu0 }
 0x764   : > { %v4370_v8 = vadd.f32 %v9944_v21, %v4369_v49  ;;  %v6595_v58 = vpop.f32.mrb[34].mxu0 }
 0x765   : > { %v4381_v7 = vadd.f32 %v6595_v58, %v9944_v21  ;;  %v4372_v26 = vpop.f32.mrb[35].mxu0  ;;  %v4498_v27 = vmax.f32 %v4378_v23, 0.0 }
 0x766   : > { %v4373_v18 = vadd.f32 %v9944_v21, %v4372_v26  ;;  %v4496_v32 = vmax.f32 %v4370_v8, 0.0 }
 0x767   : > { %v4499_v17 = vmax.f32 %v4381_v7, 0.0 }
 0x768   : > { %v4497_v20 = vmax.f32 %v4373_v18, 0.0 }
 0x769   : > { %v4529_v9 = vpack.c.bf16 %v4499_v17, %v4498_v27 }
 0x76a   : > { %v4528_v19 = vpack.c.bf16 %v4497_v20, %v4496_v32  ;;  %v6598_v0 = vpop.f32.mrb[36].mxu0 }
 0x76b   : > { %v4394_v63 = vadd.f32 %v6598_v0, %v9944_v21  ;;  %v4385_v48 = vpop.f32.mrb[37].mxu0 }
 0x76c   : > { %v4386_v28 = vadd.f32 %v9944_v21, %v4385_v48  ;;  %v6599_v43 = vpop.f32.mrb[38].mxu0  ;;  %6632 = vmatprep.mubr.msk.bf16.mxu1 %vm3253_vm8, %v4528_v19 }
 0x76d   : > { %v4397_v22 = vadd.f32 %v6599_v43, %v9944_v21  ;;  %v4388_v52 = vpop.f32.mrb[39].mxu0  ;;  %6633 = vmatmul.mubr.msk.bf16.vlgmr.msra.gmra.mrb[32].mxu1 %vm3253_vm8, %v4529_v9  ;;  %v4502_v24 = vmax.f32 %v4394_v63, 0.0 }
 0x76e   : > { %v4389_v3 = vadd.f32 %v9944_v21, %v4388_v52  ;;  %v4500_v15 = vmax.f32 %v4386_v28, 0.0 }
 0x76f   : > { %v4503_v25 = vmax.f32 %v4397_v22, 0.0 }
 0x770   : > { %v4501_v10 = vmax.f32 %v4389_v3, 0.0 }
 0x771   : > { %v4531_v35 = vpack.c.bf16 %v4503_v25, %v4502_v24 }
 0x772   : > { %v4530_v33 = vpack.c.bf16 %v4501_v10, %v4500_v15  ;;  %v6602_v31 = vpop.f32.mrb[40].mxu0 }
 0x773   : > { %v4410_v30 = vadd.f32 %v6602_v31, %v9944_v21  ;;  %v4401_v47 = vpop.f32.mrb[41].mxu0 }
 0x774   : > { %v4402_v61 = vadd.f32 %v9944_v21, %v4401_v47  ;;  %v6603_v1 = vpop.f32.mrb[42].mxu0  ;;  %6636 = vmatprep.mubr.msk.bf16.mxu1 %vm3253_vm8, %v4530_v33 }
 0x775   : > { %v4413_v51 = vadd.f32 %v6603_v1, %v9944_v21  ;;  %v4404_v2 = vpop.f32.mrb[43].mxu0  ;;  %6637 = vmatmul.mubr.msk.bf16.gmra.mrb[36].mxu1 %vm3253_vm8, %v4531_v35  ;;  %v4506_v46 = vmax.f32 %v4410_v30, 0.0 }
 0x776   : > { %v4405_v36 = vadd.f32 %v9944_v21, %v4404_v2  ;;  %v4504_v50 = vmax.f32 %v4402_v61, 0.0 }
 0x777   : > { %v4507_v37 = vmax.f32 %v4413_v51, 0.0 }
 0x778   : > { %v4505_v13 = vmax.f32 %v4405_v36, 0.0 }
 0x779   : > { %v4533_v59 = vpack.c.bf16 %v4507_v37, %v4506_v46 }
 0x77a   : > { %v4532_v29 = vpack.c.bf16 %v4505_v13, %v4504_v50  ;;  %v6606_v41 = vpop.f32.mrb[44].mxu0 }
 0x77b   : > { %v4426_v42 = vadd.f32 %v6606_v41, %v9944_v21  ;;  %v4417_v40 = vpop.f32.mrb[45].mxu0 }
 0x77c   : > { %v4418_v6 = vadd.f32 %v9944_v21, %v4417_v40  ;;  %v6607_v39 = vpop.f32.mrb[46].mxu0  ;;  %6640 = vmatprep.mubr.msk.bf16.mxu1 %vm3253_vm8, %v4532_v29 }
 0x77d   : > { %v4429_v14 = vadd.f32 %v6607_v39, %v9944_v21  ;;  %v4420_v34 = vpop.f32.mrb[47].mxu0  ;;  %6641 = vmatmul.mubr.msk.bf16.gmra.mrb[40].mxu1 %vm3253_vm8, %v4533_v59  ;;  %v4510_v38 = vmax.f32 %v4426_v42, 0.0 }
 0x77e   : > { %v4421_v11 = vadd.f32 %v9944_v21, %v4420_v34  ;;  %v4508_v44 = vmax.f32 %v4418_v6, 0.0 }
 0x77f   : > { %v4511_v62 = vmax.f32 %v4429_v14, 0.0 }
 0x780   : > { %v4509_v45 = vmax.f32 %v4421_v11, 0.0  ;;  %v7432_v11 = vld [vmem:[#allocation27] sm:$0xff]  }
 0x781   : > { %v4535_v54 = vpack.c.bf16 %v4511_v62, %v4510_v38  ;;  %v7433_v38 = vld [vmem:[#allocation27 + $0x8] sm:$0xff]   ;;  %6704 = vmatprep.subr.bf16.mxu1 %v7432_v11  ;;  %v7434_v62 = vld [vmem:[#allocation27 + $0x10] sm:$0xff]  }
 0x782   : > { %v4534_v53 = vpack.c.bf16 %v4509_v45, %v4508_v44  ;;  %v6610_v55 = vpop.f32.mrb[48].mxu0  ;;  %6705 = vmatpush3.bf16.msra.mxu1 %v7432_v11  ;;  %v7435_v44 = vld [vmem:[#allocation27 + $0x18] sm:$0xff]  }
 0x783   : > { %v4442_v12 = vadd.f32 %v6610_v55, %v9944_v21  ;;  %v4433_v16 = vpop.f32.mrb[49].mxu0  ;;  %6706 = vmatprep.subr.bf16.mxu1 %v7433_v38 }
 0x784   : > { %v4434_v60 = vadd.f32 %v9944_v21, %v4433_v16  ;;  %v6611_v56 = vpop.f32.mrb[50].mxu0  ;;  %6644 = vmatprep.mubr.msk.bf16.mxu1 %vm3253_vm8, %v4534_v53 }
 0x785   : > { %v4445_v4 = vadd.f32 %v6611_v56, %v9944_v21  ;;  %v4436_v5 = vpop.f32.mrb[51].mxu0  ;;  %6645 = vmatmul.mubr.msk.bf16.gmra.mrb[44].mxu1 %vm3253_vm8, %v4535_v54  ;;  %v4514_v23 = vmax.f32 %v4442_v12, 0.0 }
 0x786   : > { %v4437_v57 = vadd.f32 %v9944_v21, %v4436_v5  ;;  %v4512_v8 = vmax.f32 %v4434_v60, 0.0  ;;  %6707 = vmatpush3.bf16.msra.mxu1 %v7433_v38 }
 0x787   : > { %v4515_v49 = vmax.f32 %v4445_v4, 0.0  ;;  %6708 = vmatprep.subr.bf16.mxu1 %v7434_v62 }
 0x788   : > { %v4513_v58 = vmax.f32 %v4437_v57, 0.0 }
 0x789   : > { %v4537_v7 = vpack.c.bf16 %v4515_v49, %v4514_v23 }
 0x78a   : > { %v4536_v26 = vpack.c.bf16 %v4513_v58, %v4512_v8  ;;  %v6614_v18 = vpop.f32.mrb[52].mxu0  ;;  %6709 = vmatpush3.bf16.msra.mxu1 %v7434_v62 }
 0x78b   : > { %v4458_v27 = vadd.f32 %v6614_v18, %v9944_v21  ;;  %v4449_v17 = vpop.f32.mrb[53].mxu0  ;;  %6710 = vmatprep.subr.bf16.mxu1 %v7435_v44 }
 0x78c   : > { %v4450_v32 = vadd.f32 %v9944_v21, %v4449_v17  ;;  %v6615_v20 = vpop.f32.mrb[54].mxu0  ;;  %6648 = vmatprep.mubr.msk.bf16.mxu1 %vm3253_vm8, %v4536_v26 }
 0x78d   : > { %v4461_v9 = vadd.f32 %v6615_v20, %v9944_v21  ;;  %v4452_v19 = vpop.f32.mrb[55].mxu0  ;;  %6649 = vmatmul.mubr.msk.bf16.gmra.mrb[48].mxu1 %vm3253_vm8, %v4537_v7  ;;  %v4518_v63 = vmax.f32 %v4458_v27, 0.0 }
 0x78e   : > { %v4453_v0 = vadd.f32 %v9944_v21, %v4452_v19  ;;  %v4516_v28 = vmax.f32 %v4450_v32, 0.0  ;;  %6711 = vmatpush3.bf16.msra.mxu1 %v7435_v44 }
 0x78f   : > { %v4519_v48 = vmax.f32 %v4461_v9, 0.0 }
 0x790   : > { %v4517_v43 = vmax.f32 %v4453_v0, 0.0 }
 0x791   : > { %v4539_v22 = vpack.c.bf16 %v4519_v48, %v4518_v63 }
 0x792   : > { %v4538_v52 = vpack.c.bf16 %v4517_v43, %v4516_v28  ;;  %v6618_v3 = vpop.f32.mrb[56].mxu0 }
 0x793   : > { %v4474_v24 = vadd.f32 %v6618_v3, %v9944_v21  ;;  %v4465_v25 = vpop.f32.mrb[57].mxu0 }
 0x794   : > { %v4466_v15 = vadd.f32 %v9944_v21, %v4465_v25  ;;  %v6619_v10 = vpop.f32.mrb[58].mxu0  ;;  %6652 = vmatprep.mubr.msk.bf16.mxu1 %vm3253_vm8, %v4538_v52 }
 0x795   : > { %v4477_v35 = vadd.f32 %v6619_v10, %v9944_v21  ;;  %v4468_v33 = vpop.f32.mrb[59].mxu0  ;;  %6653 = vmatmul.mubr.msk.bf16.gmra.mrb[52].mxu1 %vm3253_vm8, %v4539_v22  ;;  %v4522_v30 = vmax.f32 %v4474_v24, 0.0 }
 0x796   : > { %v4469_v31 = vadd.f32 %v9944_v21, %v4468_v33  ;;  %v4520_v61 = vmax.f32 %v4466_v15, 0.0 }
 0x797   : > { %v4523_v47 = vmax.f32 %v4477_v35, 0.0 }
 0x798   : > { %v4521_v1 = vmax.f32 %v4469_v31, 0.0 }
 0x799   : > { %v4541_v51 = vpack.c.bf16 %v4523_v47, %v4522_v30 }
 0x79a   : > { %v4540_v2 = vpack.c.bf16 %v4521_v1, %v4520_v61  ;;  %v6622_v36 = vpop.f32.mrb[60].mxu0 }
 0x79b   : > { %v4490_v46 = vadd.f32 %v6622_v36, %v9944_v21  ;;  %v4481_v37 = vpop.f32.mrb[61].mxu0 }
 0x79c   : > { %v4482_v50 = vadd.f32 %v9944_v21, %v4481_v37  ;;  %v6623_v13 = vpop.f32.mrb[62].mxu0  ;;  %6656 = vmatprep.mubr.msk.bf16.mxu1 %vm3253_vm8, %v4540_v2 }
 0x79d   : > { %v4493_v59 = vadd.f32 %v6623_v13, %v9944_v21  ;;  %v4484_v29 = vpop.f32.mrb[63].mxu0  ;;  %6657 = vmatmul.mubr.msk.bf16.gmra.mrb[56].mxu1 %vm3253_vm8, %v4541_v51  ;;  %v4526_v42 = vmax.f32 %v4490_v46, 0.0 }
 0x79e   : > { %v4485_v41 = vadd.f32 %v9944_v21, %v4484_v29  ;;  %v4524_v6 = vmax.f32 %v4482_v50, 0.0  ;;  %v9994_v21 = vld [vmem:[#allocation22] ss:$0 sm:$0xff] }
 0x79f   : > { %v4527_v40 = vmax.f32 %v4493_v59, 0.0 }
 0x7a0   : > { %v4525_v39 = vmax.f32 %v4485_v41, 0.0 }
 0x7a1   : > { %v4543_v14 = vpack.c.bf16 %v4527_v40, %v4526_v42 }
 0x7a2   : > { %v4542_v34 = vpack.c.bf16 %v4525_v39, %v4524_v6 }
 0x7a4   : > { %6660 = vmatprep.mubr.msk.bf16.mxu1 %vm3253_vm8, %v4542_v34 }
 0x7a5   : > { %6661 = vmatmul.mubr.msk.bf16.gmra.mrb[60].mxu1 %vm3253_vm8, %v4543_v14 }
 0x840   : > { %v6634_v45 = vpop.f32.mrb[32].mxu1 }
 0x841   : > { %v4674_v54 = vadd.f32 %v6634_v45, %v9994_v21  ;;  %v4665_v53 = vpop.f32.mrb[33].mxu1 }
 0x842   : > { %v4666_v55 = vadd.f32 %v9994_v21, %v4665_v53  ;;  %v6635_v12 = vpop.f32.mrb[34].mxu1 }
 0x843   : > { %v4677_v16 = vadd.f32 %v6635_v12, %v9994_v21  ;;  %v4668_v60 = vpop.f32.mrb[35].mxu1  ;;  %v4794_v4 = vmax.f32 %v4674_v54, 0.0 }
 0x844   : > { %v4669_v56 = vadd.f32 %v9994_v21, %v4668_v60  ;;  %v4792_v57 = vmax.f32 %v4666_v55, 0.0 }
 0x845   : > { %v4795_v5 = vmax.f32 %v4677_v16, 0.0 }
 0x846   : > { %v4793_v23 = vmax.f32 %v4669_v56, 0.0 }
 0x847   : > { %v4825_v49 = vpack.c.bf16 %v4795_v5, %v4794_v4 }
 0x848   : > { %v4824_v8 = vpack.c.bf16 %v4793_v23, %v4792_v57  ;;  %v6638_v58 = vpop.f32.mrb[36].mxu1 }
 0x849   : > { %v4690_v7 = vadd.f32 %v6638_v58, %v9994_v21  ;;  %v4681_v26 = vpop.f32.mrb[37].mxu1 }
 0x84a   : > { %v4682_v18 = vadd.f32 %v9994_v21, %v4681_v26  ;;  %v6639_v27 = vpop.f32.mrb[38].mxu1  ;;  %6672 = vmatprep.mubr.msk.bf16.mxu0 %vm3253_vm8, %v4824_v8 }
 0x84b   : > { %v4693_v17 = vadd.f32 %v6639_v27, %v9994_v21  ;;  %v4684_v32 = vpop.f32.mrb[39].mxu1  ;;  %6673 = vmatmul.mubr.msk.bf16.vlgmr.msra.gmra.mrb[64].mxu0 %vm3253_vm8, %v4825_v49  ;;  %v4798_v9 = vmax.f32 %v4690_v7, 0.0 }
 0x84c   : > { %v4685_v20 = vadd.f32 %v9994_v21, %v4684_v32  ;;  %v4796_v0 = vmax.f32 %v4682_v18, 0.0 }
 0x84d   : > { %v4799_v19 = vmax.f32 %v4693_v17, 0.0 }
 0x84e   : > { %v4797_v63 = vmax.f32 %v4685_v20, 0.0 }
 0x84f   : > { %v4827_v48 = vpack.c.bf16 %v4799_v19, %v4798_v9 }
 0x850   : > { %v4826_v28 = vpack.c.bf16 %v4797_v63, %v4796_v0  ;;  %v6642_v43 = vpop.f32.mrb[40].mxu1 }
 0x851   : > { %v4706_v22 = vadd.f32 %v6642_v43, %v9994_v21  ;;  %v4697_v52 = vpop.f32.mrb[41].mxu1 }
 0x852   : > { %v4698_v3 = vadd.f32 %v9994_v21, %v4697_v52  ;;  %v6643_v24 = vpop.f32.mrb[42].mxu1  ;;  %6676 = vmatprep.mubr.msk.bf16.mxu0 %vm3253_vm8, %v4826_v28 }
 0x853   : > { %v4709_v25 = vadd.f32 %v6643_v24, %v9994_v21  ;;  %v4700_v15 = vpop.f32.mrb[43].mxu1  ;;  %6677 = vmatmul.mubr.msk.bf16.gmra.mrb[68].mxu0 %vm3253_vm8, %v4827_v48  ;;  %v4802_v35 = vmax.f32 %v4706_v22, 0.0 }
 0x854   : > { %v4701_v10 = vadd.f32 %v9994_v21, %v4700_v15  ;;  %v4800_v31 = vmax.f32 %v4698_v3, 0.0 }
 0x855   : > { %v4803_v33 = vmax.f32 %v4709_v25, 0.0 }
 0x856   : > { %v4801_v30 = vmax.f32 %v4701_v10, 0.0 }
 0x857   : > { %v4829_v47 = vpack.c.bf16 %v4803_v33, %v4802_v35 }
 0x858   : > { %v4828_v61 = vpack.c.bf16 %v4801_v30, %v4800_v31  ;;  %v6646_v1 = vpop.f32.mrb[44].mxu1 }
 0x859   : > { %v4722_v51 = vadd.f32 %v6646_v1, %v9994_v21  ;;  %v4713_v2 = vpop.f32.mrb[45].mxu1 }
 0x85a   : > { %v4714_v36 = vadd.f32 %v9994_v21, %v4713_v2  ;;  %v6647_v46 = vpop.f32.mrb[46].mxu1  ;;  %6680 = vmatprep.mubr.msk.bf16.mxu0 %vm3253_vm8, %v4828_v61 }
 0x85b   : > { %v4725_v37 = vadd.f32 %v6647_v46, %v9994_v21  ;;  %v4716_v50 = vpop.f32.mrb[47].mxu1  ;;  %6681 = vmatmul.mubr.msk.bf16.gmra.mrb[72].mxu0 %vm3253_vm8, %v4829_v47  ;;  %v4806_v59 = vmax.f32 %v4722_v51, 0.0 }
 0x85c   : > { %v4717_v13 = vadd.f32 %v9994_v21, %v4716_v50  ;;  %v4804_v41 = vmax.f32 %v4714_v36, 0.0 }
 0x85d   : > { %v4807_v29 = vmax.f32 %v4725_v37, 0.0 }
 0x85e   : > { %v4805_v42 = vmax.f32 %v4717_v13, 0.0  ;;  %v10044_v13 = vld [vmem:[#allocation25] ss:$0 sm:$0xff] }
 0x85f   : > { %v4831_v40 = vpack.c.bf16 %v4807_v29, %v4806_v59 }
 0x860   : > { %v4830_v6 = vpack.c.bf16 %v4805_v42, %v4804_v41  ;;  %v6650_v39 = vpop.f32.mrb[48].mxu1 }
 0x861   : > { %v4738_v14 = vadd.f32 %v6650_v39, %v9994_v21  ;;  %v4729_v34 = vpop.f32.mrb[49].mxu1 }
 0x862   : > { %v4730_v11 = vadd.f32 %v9994_v21, %v4729_v34  ;;  %v6651_v38 = vpop.f32.mrb[50].mxu1  ;;  %6684 = vmatprep.mubr.msk.bf16.mxu0 %vm3253_vm8, %v4830_v6 }
 0x863   : > { %v4741_v62 = vadd.f32 %v6651_v38, %v9994_v21  ;;  %v4732_v44 = vpop.f32.mrb[51].mxu1  ;;  %6685 = vmatmul.mubr.msk.bf16.gmra.mrb[76].mxu0 %vm3253_vm8, %v4831_v40  ;;  %v4810_v54 = vmax.f32 %v4738_v14, 0.0 }
 0x864   : > { %v4733_v45 = vadd.f32 %v9994_v21, %v4732_v44  ;;  %v4808_v55 = vmax.f32 %v4730_v11, 0.0 }
 0x865   : > { %v4811_v53 = vmax.f32 %v4741_v62, 0.0 }
 0x866   : > { %v4809_v12 = vmax.f32 %v4733_v45, 0.0 }
 0x867   : > { %v4833_v16 = vpack.c.bf16 %v4811_v53, %v4810_v54 }
 0x868   : > { %v4832_v60 = vpack.c.bf16 %v4809_v12, %v4808_v55  ;;  %v6654_v56 = vpop.f32.mrb[52].mxu1 }
 0x869   : > { %v4754_v4 = vadd.f32 %v6654_v56, %v9994_v21  ;;  %v4745_v5 = vpop.f32.mrb[53].mxu1 }
 0x86a   : > { %v4746_v57 = vadd.f32 %v9994_v21, %v4745_v5  ;;  %v6655_v23 = vpop.f32.mrb[54].mxu1  ;;  %6688 = vmatprep.mubr.msk.bf16.mxu0 %vm3253_vm8, %v4832_v60 }
 0x86b   : > { %v4757_v49 = vadd.f32 %v6655_v23, %v9994_v21  ;;  %v4748_v8 = vpop.f32.mrb[55].mxu1  ;;  %6689 = vmatmul.mubr.msk.bf16.gmra.mrb[80].mxu0 %vm3253_vm8, %v4833_v16  ;;  %v4814_v7 = vmax.f32 %v4754_v4, 0.0 }
 0x86c   : > { %v4749_v58 = vadd.f32 %v9994_v21, %v4748_v8  ;;  %v4812_v18 = vmax.f32 %v4746_v57, 0.0 }
 0x86d   : > { %v4815_v26 = vmax.f32 %v4757_v49, 0.0 }
 0x86e   : > { %v4813_v27 = vmax.f32 %v4749_v58, 0.0 }
 0x86f   : > { %v4835_v17 = vpack.c.bf16 %v4815_v26, %v4814_v7 }
 0x870   : > { %v4834_v32 = vpack.c.bf16 %v4813_v27, %v4812_v18  ;;  %v6658_v20 = vpop.f32.mrb[56].mxu1 }
 0x871   : > { %v4770_v9 = vadd.f32 %v6658_v20, %v9994_v21  ;;  %v4761_v19 = vpop.f32.mrb[57].mxu1 }
 0x872   : > { %v4762_v0 = vadd.f32 %v9994_v21, %v4761_v19  ;;  %v6659_v63 = vpop.f32.mrb[58].mxu1  ;;  %6692 = vmatprep.mubr.msk.bf16.mxu0 %vm3253_vm8, %v4834_v32 }
 0x873   : > { %v4773_v48 = vadd.f32 %v6659_v63, %v9994_v21  ;;  %v4764_v28 = vpop.f32.mrb[59].mxu1  ;;  %6693 = vmatmul.mubr.msk.bf16.gmra.mrb[84].mxu0 %vm3253_vm8, %v4835_v17  ;;  %v4818_v22 = vmax.f32 %v4770_v9, 0.0 }
 0x874   : > { %v4765_v43 = vadd.f32 %v9994_v21, %v4764_v28  ;;  %v4816_v3 = vmax.f32 %v4762_v0, 0.0 }
 0x875   : > { %v4819_v52 = vmax.f32 %v4773_v48, 0.0 }
 0x876   : > { %v4817_v24 = vmax.f32 %v4765_v43, 0.0 }
 0x877   : > { %v4837_v25 = vpack.c.bf16 %v4819_v52, %v4818_v22 }
 0x878   : > { %v4836_v15 = vpack.c.bf16 %v4817_v24, %v4816_v3  ;;  %v6662_v10 = vpop.f32.mrb[60].mxu1 }
 0x879   : > { %v4786_v35 = vadd.f32 %v6662_v10, %v9994_v21  ;;  %v4777_v33 = vpop.f32.mrb[61].mxu1 }
 0x87a   : > { %v4778_v31 = vadd.f32 %v9994_v21, %v4777_v33  ;;  %v6663_v30 = vpop.f32.mrb[62].mxu1  ;;  %6696 = vmatprep.mubr.msk.bf16.mxu0 %vm3253_vm8, %v4836_v15 }
 0x87b   : > { %v4789_v47 = vadd.f32 %v6663_v30, %v9994_v21  ;;  %v4780_v61 = vpop.f32.mrb[63].mxu1  ;;  %6697 = vmatmul.mubr.msk.bf16.gmra.mrb[88].mxu0 %vm3253_vm8, %v4837_v25  ;;  %v4822_v51 = vmax.f32 %v4786_v35, 0.0 }
 0x87c   : > { %v4781_v1 = vadd.f32 %v9994_v21, %v4780_v61  ;;  %v4820_v36 = vmax.f32 %v4778_v31, 0.0 }
 0x87d   : > { %v4823_v2 = vmax.f32 %v4789_v47, 0.0 }
 0x87e   : > { %v4821_v46 = vmax.f32 %v4781_v1, 0.0 }
 0x87f   : > { %v4839_v37 = vpack.c.bf16 %v4823_v2, %v4822_v51 }
 0x880   : > { %v4838_v50 = vpack.c.bf16 %v4821_v46, %v4820_v36 }
 0x882   : > { %6700 = vmatprep.mubr.msk.bf16.mxu0 %vm3253_vm8, %v4838_v50 }
 0x883   : > { %6701 = vmatmul.mubr.msk.bf16.gmra.mrb[92].mxu0 %vm3253_vm8, %v4839_v37 }
 0x91e   : > { %v6674_v59 = vpop.f32.mrb[64].mxu0 }
 0x91f   : > { %v4970_v29 = vadd.f32 %v6674_v59, %v10044_v13  ;;  %v4961_v41 = vpop.f32.mrb[65].mxu0 }
 0x920   : > { %v4962_v42 = vadd.f32 %v10044_v13, %v4961_v41  ;;  %v6675_v40 = vpop.f32.mrb[66].mxu0 }
 0x921   : > { %v4973_v21 = vadd.f32 %v6675_v40, %v10044_v13  ;;  %v4964_v6 = vpop.f32.mrb[67].mxu0  ;;  %v5090_v14 = vmax.f32 %v4970_v29, 0.0 }
 0x922   : > { %v4965_v39 = vadd.f32 %v10044_v13, %v4964_v6  ;;  %v5088_v11 = vmax.f32 %v4962_v42, 0.0 }
 0x923   : > { %v5091_v34 = vmax.f32 %v4973_v21, 0.0 }
 0x924   : > { %v5089_v38 = vmax.f32 %v4965_v39, 0.0 }
 0x925   : > { %v5121_v62 = vpack.c.bf16 %v5091_v34, %v5090_v14 }
 0x926   : > { %v5120_v44 = vpack.c.bf16 %v5089_v38, %v5088_v11  ;;  %v6678_v45 = vpop.f32.mrb[68].mxu0 }
 0x927   : > { %v4986_v54 = vadd.f32 %v6678_v45, %v10044_v13  ;;  %v4977_v53 = vpop.f32.mrb[69].mxu0 }
 0x928   : > { %v4978_v55 = vadd.f32 %v10044_v13, %v4977_v53  ;;  %v6679_v12 = vpop.f32.mrb[70].mxu0  ;;  %6712 = vmatprep.mubr.msk.bf16.mxu1 %vm3253_vm8, %v5120_v44 }
 0x929   : > { %v4989_v16 = vadd.f32 %v6679_v12, %v10044_v13  ;;  %v4980_v60 = vpop.f32.mrb[71].mxu0  ;;  %6713 = vmatmul.mubr.msk.bf16.vlgmr.msra.gmra.mrb[64].mxu1 %vm3253_vm8, %v5121_v62  ;;  %v5094_v4 = vmax.f32 %v4986_v54, 0.0 }
 0x92a   : > { %v4981_v56 = vadd.f32 %v10044_v13, %v4980_v60  ;;  %v5092_v57 = vmax.f32 %v4978_v55, 0.0 }
 0x92b   : > { %v5095_v5 = vmax.f32 %v4989_v16, 0.0 }
 0x92c   : > { %v5093_v23 = vmax.f32 %v4981_v56, 0.0 }
 0x92d   : > { %v5123_v49 = vpack.c.bf16 %v5095_v5, %v5094_v4 }
 0x92e   : > { %v5122_v8 = vpack.c.bf16 %v5093_v23, %v5092_v57  ;;  %v6682_v58 = vpop.f32.mrb[72].mxu0 }
 0x92f   : > { %v5002_v7 = vadd.f32 %v6682_v58, %v10044_v13  ;;  %v4993_v26 = vpop.f32.mrb[73].mxu0 }
 0x930   : > { %v4994_v18 = vadd.f32 %v10044_v13, %v4993_v26  ;;  %v6683_v27 = vpop.f32.mrb[74].mxu0  ;;  %6716 = vmatprep.mubr.msk.bf16.mxu1 %vm3253_vm8, %v5122_v8 }
 0x931   : > { %v5005_v17 = vadd.f32 %v6683_v27, %v10044_v13  ;;  %v4996_v32 = vpop.f32.mrb[75].mxu0  ;;  %6717 = vmatmul.mubr.msk.bf16.gmra.mrb[68].mxu1 %vm3253_vm8, %v5123_v49  ;;  %v5098_v9 = vmax.f32 %v5002_v7, 0.0 }
 0x932   : > { %v4997_v20 = vadd.f32 %v10044_v13, %v4996_v32  ;;  %v5096_v0 = vmax.f32 %v4994_v18, 0.0 }
 0x933   : > { %v5099_v19 = vmax.f32 %v5005_v17, 0.0 }
 0x934   : > { %v5097_v63 = vmax.f32 %v4997_v20, 0.0 }
 0x935   : > { %v5125_v48 = vpack.c.bf16 %v5099_v19, %v5098_v9 }
 0x936   : > { %v5124_v28 = vpack.c.bf16 %v5097_v63, %v5096_v0  ;;  %v6686_v43 = vpop.f32.mrb[76].mxu0 }
 0x937   : > { %v5018_v22 = vadd.f32 %v6686_v43, %v10044_v13  ;;  %v5009_v52 = vpop.f32.mrb[77].mxu0 }
 0x938   : > { %v5010_v3 = vadd.f32 %v10044_v13, %v5009_v52  ;;  %v6687_v24 = vpop.f32.mrb[78].mxu0  ;;  %6720 = vmatprep.mubr.msk.bf16.mxu1 %vm3253_vm8, %v5124_v28 }
 0x939   : > { %v5021_v25 = vadd.f32 %v6687_v24, %v10044_v13  ;;  %v5012_v15 = vpop.f32.mrb[79].mxu0  ;;  %6721 = vmatmul.mubr.msk.bf16.gmra.mrb[72].mxu1 %vm3253_vm8, %v5125_v48  ;;  %v5102_v35 = vmax.f32 %v5018_v22, 0.0 }
 0x93a   : > { %v5013_v10 = vadd.f32 %v10044_v13, %v5012_v15  ;;  %v5100_v31 = vmax.f32 %v5010_v3, 0.0 }
 0x93b   : > { %v5103_v33 = vmax.f32 %v5021_v25, 0.0 }
 0x93c   : > { %v5101_v30 = vmax.f32 %v5013_v10, 0.0  ;;  %v10094_v10 = vld [vmem:[#allocation28] ss:$0 sm:$0xff] }
 0x93d   : > { %v5127_v47 = vpack.c.bf16 %v5103_v33, %v5102_v35 }
 0x93e   : > { %v5126_v61 = vpack.c.bf16 %v5101_v30, %v5100_v31  ;;  %v6690_v1 = vpop.f32.mrb[80].mxu0 }
 0x93f   : > { %v5034_v51 = vadd.f32 %v6690_v1, %v10044_v13  ;;  %v5025_v2 = vpop.f32.mrb[81].mxu0 }
 0x940   : > { %v5026_v36 = vadd.f32 %v10044_v13, %v5025_v2  ;;  %v6691_v46 = vpop.f32.mrb[82].mxu0  ;;  %6724 = vmatprep.mubr.msk.bf16.mxu1 %vm3253_vm8, %v5126_v61 }
 0x941   : > { %v5037_v37 = vadd.f32 %v6691_v46, %v10044_v13  ;;  %v5028_v50 = vpop.f32.mrb[83].mxu0  ;;  %6725 = vmatmul.mubr.msk.bf16.gmra.mrb[76].mxu1 %vm3253_vm8, %v5127_v47  ;;  %v5106_v29 = vmax.f32 %v5034_v51, 0.0 }
 0x942   : > { %v5029_v59 = vadd.f32 %v10044_v13, %v5028_v50  ;;  %v5104_v42 = vmax.f32 %v5026_v36, 0.0 }
 0x943   : > { %v5107_v41 = vmax.f32 %v5037_v37, 0.0 }
 0x944   : > { %v5105_v40 = vmax.f32 %v5029_v59, 0.0 }
 0x945   : > { %v5129_v21 = vpack.c.bf16 %v5107_v41, %v5106_v29 }
 0x946   : > { %v5128_v6 = vpack.c.bf16 %v5105_v40, %v5104_v42  ;;  %v6694_v39 = vpop.f32.mrb[84].mxu0 }
 0x947   : > { %v5050_v14 = vadd.f32 %v6694_v39, %v10044_v13  ;;  %v5041_v34 = vpop.f32.mrb[85].mxu0 }
 0x948   : > { %v5042_v11 = vadd.f32 %v10044_v13, %v5041_v34  ;;  %v6695_v38 = vpop.f32.mrb[86].mxu0  ;;  %6728 = vmatprep.mubr.msk.bf16.mxu1 %vm3253_vm8, %v5128_v6 }
 0x949   : > { %v5053_v62 = vadd.f32 %v6695_v38, %v10044_v13  ;;  %v5044_v44 = vpop.f32.mrb[87].mxu0  ;;  %6729 = vmatmul.mubr.msk.bf16.gmra.mrb[80].mxu1 %vm3253_vm8, %v5129_v21  ;;  %v5110_v54 = vmax.f32 %v5050_v14, 0.0 }
 0x94a   : > { %v5045_v45 = vadd.f32 %v10044_v13, %v5044_v44  ;;  %v5108_v55 = vmax.f32 %v5042_v11, 0.0 }
 0x94b   : > { %v5111_v53 = vmax.f32 %v5053_v62, 0.0 }
 0x94c   : > { %v5109_v12 = vmax.f32 %v5045_v45, 0.0 }
 0x94d   : > { %v5131_v16 = vpack.c.bf16 %v5111_v53, %v5110_v54 }
 0x94e   : > { %v5130_v60 = vpack.c.bf16 %v5109_v12, %v5108_v55  ;;  %v6698_v56 = vpop.f32.mrb[88].mxu0 }
 0x94f   : > { %v5066_v4 = vadd.f32 %v6698_v56, %v10044_v13  ;;  %v5057_v5 = vpop.f32.mrb[89].mxu0 }
 0x950   : > { %v5058_v57 = vadd.f32 %v10044_v13, %v5057_v5  ;;  %v6699_v23 = vpop.f32.mrb[90].mxu0  ;;  %6732 = vmatprep.mubr.msk.bf16.mxu1 %vm3253_vm8, %v5130_v60 }
 0x951   : > { %v5069_v49 = vadd.f32 %v6699_v23, %v10044_v13  ;;  %v5060_v8 = vpop.f32.mrb[91].mxu0  ;;  %6733 = vmatmul.mubr.msk.bf16.gmra.mrb[84].mxu1 %vm3253_vm8, %v5131_v16  ;;  %v5114_v7 = vmax.f32 %v5066_v4, 0.0 }
 0x952   : > { %v5061_v58 = vadd.f32 %v10044_v13, %v5060_v8  ;;  %v5112_v18 = vmax.f32 %v5058_v57, 0.0 }
 0x953   : > { %v5115_v26 = vmax.f32 %v5069_v49, 0.0 }
 0x954   : > { %v5113_v27 = vmax.f32 %v5061_v58, 0.0 }
 0x955   : > { %v5133_v17 = vpack.c.bf16 %v5115_v26, %v5114_v7 }
 0x956   : > { %v5132_v32 = vpack.c.bf16 %v5113_v27, %v5112_v18  ;;  %v6702_v20 = vpop.f32.mrb[92].mxu0 }
 0x957   : > { %v5082_v9 = vadd.f32 %v6702_v20, %v10044_v13  ;;  %v5073_v19 = vpop.f32.mrb[93].mxu0 }
 0x958   : > { %v5074_v0 = vadd.f32 %v10044_v13, %v5073_v19  ;;  %v6703_v63 = vpop.f32.mrb[94].mxu0  ;;  %6736 = vmatprep.mubr.msk.bf16.mxu1 %vm3253_vm8, %v5132_v32 }
 0x959   : > { %v5085_v48 = vadd.f32 %v6703_v63, %v10044_v13  ;;  %v5076_v28 = vpop.f32.mrb[95].mxu0  ;;  %6737 = vmatmul.mubr.msk.bf16.gmra.mrb[88].mxu1 %vm3253_vm8, %v5133_v17  ;;  %v5118_v22 = vmax.f32 %v5082_v9, 0.0 }
 0x95a   : > { %v5077_v43 = vadd.f32 %v10044_v13, %v5076_v28  ;;  %v5116_v3 = vmax.f32 %v5074_v0, 0.0 }
 0x95b   : > { %v5119_v52 = vmax.f32 %v5085_v48, 0.0 }
 0x95c   : > { %v5117_v24 = vmax.f32 %v5077_v43, 0.0 }
 0x95d   : > { %v5135_v25 = vpack.c.bf16 %v5119_v52, %v5118_v22 }
 0x95e   : > { %v5134_v15 = vpack.c.bf16 %v5117_v24, %v5116_v3 }
 0x960   : > { %6740 = vmatprep.mubr.msk.bf16.mxu1 %vm3253_vm8, %v5134_v15 }
 0x961   : > { %6741 = vmatmul.mubr.msk.bf16.gmra.mrb[92].mxu1 %vm3253_vm8, %v5135_v25 }
 0x9fc   : > { %v6714_v35 = vpop.f32.mrb[64].mxu1 }
 0x9fd   : > { %v5266_v33 = vadd.f32 %v6714_v35, %v10094_v10  ;;  %v5257_v31 = vpop.f32.mrb[65].mxu1 }
 0x9fe   : > { %v5258_v30 = vadd.f32 %v10094_v10, %v5257_v31  ;;  %v6715_v13 = vpop.f32.mrb[66].mxu1 }
 0x9ff   : > { %v5386_v47 = vmax.f32 %v5266_v33, 0.0  ;;  %v5269_v61 = vadd.f32 %v6715_v13, %v10094_v10  ;;  %v5260_v1 = vpop.f32.mrb[67].mxu1 }
 0xa00   : > { %v5384_v51 = vmax.f32 %v5258_v30, 0.0  ;;  %v5261_v2 = vadd.f32 %v10094_v10, %v5260_v1 }
 0xa01   : > { %v6110_v36 = vpack.c.bf16 %v5386_v47, %v5386_v47  ;;  %v5387_v46 = vmax.f32 %v5269_v61, 0.0 }
 0xa02   : > { %v6108_v37 = vpack.c.bf16 %v5384_v51, %v5384_v51  ;;  %v5385_v50 = vmax.f32 %v5261_v2, 0.0 }
 0xa03   : > { %5547 = vst.msk [vmem:[%s10101_s7 + $0x8] sm:$0xf] %vm5544_vm9, %v6110_v36  ;;  %v6111_v59 = vpack.c.bf16 %v5387_v46, %v5387_v46 }
 0xa04   : > { %5545 = vst.msk [vmem:[%s10101_s7] sm:$0xf] %vm5544_vm9, %v6108_v37  ;;  %v6109_v29 = vpack.c.bf16 %v5385_v50, %v5385_v50  ;;  %v6718_v41 = vpop.f32.mrb[68].mxu1 }
 0xa05   : > { %5548 = vst.msk [vmem:[%s10101_s7 + $0xc] sm:$0xf] %vm5544_vm9, %v6111_v59  ;;  %v5282_v42 = vadd.f32 %v6718_v41, %v10094_v10  ;;  %v5273_v40 = vpop.f32.mrb[69].mxu1 }
 0xa06   : > { %5546 = vst.msk [vmem:[%s10101_s7 + $0x4] sm:$0xf] %vm5544_vm9, %v6109_v29  ;;  %v5274_v21 = vadd.f32 %v10094_v10, %v5273_v40  ;;  %v6719_v6 = vpop.f32.mrb[70].mxu1 }
 0xa07   : > { %v5390_v39 = vmax.f32 %v5282_v42, 0.0  ;;  %v5285_v14 = vadd.f32 %v6719_v6, %v10094_v10  ;;  %v5276_v34 = vpop.f32.mrb[71].mxu1 }
 0xa08   : > { %v5388_v11 = vmax.f32 %v5274_v21, 0.0  ;;  %v5277_v38 = vadd.f32 %v10094_v10, %v5276_v34 }
 0xa09   : > { %v6114_v62 = vpack.c.bf16 %v5390_v39, %v5390_v39  ;;  %v5391_v44 = vmax.f32 %v5285_v14, 0.0 }
 0xa0a   : > { %v6112_v45 = vpack.c.bf16 %v5388_v11, %v5388_v11  ;;  %v5389_v54 = vmax.f32 %v5277_v38, 0.0 }
 0xa0b   : > { %5551 = vst.msk [vmem:[%s10101_s7 + $0x18] sm:$0xf] %vm5544_vm9, %v6114_v62  ;;  %v6115_v53 = vpack.c.bf16 %v5391_v44, %v5391_v44 }
 0xa0c   : > { %5549 = vst.msk [vmem:[%s10101_s7 + $0x10] sm:$0xf] %vm5544_vm9, %v6112_v45  ;;  %v6113_v55 = vpack.c.bf16 %v5389_v54, %v5389_v54  ;;  %v6722_v12 = vpop.f32.mrb[72].mxu1 }
 0xa0d   : > { %5552 = vst.msk [vmem:[%s10101_s7 + $0x1c] sm:$0xf] %vm5544_vm9, %v6115_v53  ;;  %v5298_v16 = vadd.f32 %v6722_v12, %v10094_v10  ;;  %v5289_v60 = vpop.f32.mrb[73].mxu1 }
 0xa0e   : > { %5550 = vst.msk [vmem:[%s10101_s7 + $0x14] sm:$0xf] %vm5544_vm9, %v6113_v55  ;;  %v5290_v56 = vadd.f32 %v10094_v10, %v5289_v60  ;;  %v6723_v4 = vpop.f32.mrb[74].mxu1 }
 0xa0f   : > { %v5394_v5 = vmax.f32 %v5298_v16, 0.0  ;;  %v5301_v57 = vadd.f32 %v6723_v4, %v10094_v10  ;;  %v5292_v23 = vpop.f32.mrb[75].mxu1 }
 0xa10   : > { %v5392_v49 = vmax.f32 %v5290_v56, 0.0  ;;  %v5293_v8 = vadd.f32 %v10094_v10, %v5292_v23 }
 0xa11   : > { %v6118_v58 = vpack.c.bf16 %v5394_v5, %v5394_v5  ;;  %v5395_v7 = vmax.f32 %v5301_v57, 0.0 }
 0xa12   : > { %v6116_v26 = vpack.c.bf16 %v5392_v49, %v5392_v49  ;;  %v5393_v18 = vmax.f32 %v5293_v8, 0.0 }
 0xa13   : > { %5555 = vst.msk [vmem:[%s10101_s7 + $0x28] sm:$0xf] %vm5544_vm9, %v6118_v58  ;;  %v6119_v27 = vpack.c.bf16 %v5395_v7, %v5395_v7 }
 0xa14   : > { %5553 = vst.msk [vmem:[%s10101_s7 + $0x20] sm:$0xf] %vm5544_vm9, %v6116_v26  ;;  %v6117_v17 = vpack.c.bf16 %v5393_v18, %v5393_v18  ;;  %v6726_v32 = vpop.f32.mrb[76].mxu1 }
 0xa15   : > { %5556 = vst.msk [vmem:[%s10101_s7 + $0x2c] sm:$0xf] %vm5544_vm9, %v6119_v27  ;;  %v5314_v20 = vadd.f32 %v6726_v32, %v10094_v10  ;;  %v5305_v9 = vpop.f32.mrb[77].mxu1 }
 0xa16   : > { %5554 = vst.msk [vmem:[%s10101_s7 + $0x24] sm:$0xf] %vm5544_vm9, %v6117_v17  ;;  %v5306_v19 = vadd.f32 %v10094_v10, %v5305_v9  ;;  %v6727_v0 = vpop.f32.mrb[78].mxu1 }
 0xa17   : > { %v5398_v63 = vmax.f32 %v5314_v20, 0.0  ;;  %v5317_v48 = vadd.f32 %v6727_v0, %v10094_v10  ;;  %v5308_v28 = vpop.f32.mrb[79].mxu1 }
 0xa18   : > { %v5396_v43 = vmax.f32 %v5306_v19, 0.0  ;;  %v5309_v22 = vadd.f32 %v10094_v10, %v5308_v28 }
 0xa19   : > { %v6122_v52 = vpack.c.bf16 %v5398_v63, %v5398_v63  ;;  %v5399_v3 = vmax.f32 %v5317_v48, 0.0 }
 0xa1a   : > { %v6120_v24 = vpack.c.bf16 %v5396_v43, %v5396_v43  ;;  %v5397_v25 = vmax.f32 %v5309_v22, 0.0 }
 0xa1b   : > { %5559 = vst.msk [vmem:[%s10101_s7 + $0x38] sm:$0xf] %vm5544_vm9, %v6122_v52  ;;  %v6123_v15 = vpack.c.bf16 %v5399_v3, %v5399_v3 }
 0xa1c   : > { %5557 = vst.msk [vmem:[%s10101_s7 + $0x30] sm:$0xf] %vm5544_vm9, %v6120_v24  ;;  %v6121_v35 = vpack.c.bf16 %v5397_v25, %v5397_v25  ;;  %v6730_v33 = vpop.f32.mrb[80].mxu1 }
 0xa1d   : > { %5560 = vst.msk [vmem:[%s10101_s7 + $0x3c] sm:$0xf] %vm5544_vm9, %v6123_v15  ;;  %v5330_v31 = vadd.f32 %v6730_v33, %v10094_v10  ;;  %v5321_v30 = vpop.f32.mrb[81].mxu1 }
 0xa1e   : > { %5558 = vst.msk [vmem:[%s10101_s7 + $0x34] sm:$0xf] %vm5544_vm9, %v6121_v35  ;;  %v5322_v13 = vadd.f32 %v10094_v10, %v5321_v30  ;;  %v6731_v47 = vpop.f32.mrb[82].mxu1 }
 0xa1f   : > { %v5402_v61 = vmax.f32 %v5330_v31, 0.0  ;;  %v5333_v1 = vadd.f32 %v6731_v47, %v10094_v10  ;;  %v5324_v51 = vpop.f32.mrb[83].mxu1 }
 0xa20   : > { %v5400_v2 = vmax.f32 %v5322_v13, 0.0  ;;  %v5325_v36 = vadd.f32 %v10094_v10, %v5324_v51 }
 0xa21   : > { %v6126_v46 = vpack.c.bf16 %v5402_v61, %v5402_v61  ;;  %v5403_v37 = vmax.f32 %v5333_v1, 0.0 }
 0xa22   : > { %v6124_v50 = vpack.c.bf16 %v5400_v2, %v5400_v2  ;;  %v5401_v59 = vmax.f32 %v5325_v36, 0.0 }
 0xa23   : > { %5563 = vst.msk [vmem:[%s10101_s7 + $0x48] sm:$0xf] %vm5544_vm9, %v6126_v46  ;;  %v6127_v29 = vpack.c.bf16 %v5403_v37, %v5403_v37 }
 0xa24   : > { %5561 = vst.msk [vmem:[%s10101_s7 + $0x40] sm:$0xf] %vm5544_vm9, %v6124_v50  ;;  %v6125_v41 = vpack.c.bf16 %v5401_v59, %v5401_v59  ;;  %v6734_v42 = vpop.f32.mrb[84].mxu1 }
 0xa25   : > { %5564 = vst.msk [vmem:[%s10101_s7 + $0x4c] sm:$0xf] %vm5544_vm9, %v6127_v29  ;;  %v5346_v40 = vadd.f32 %v6734_v42, %v10094_v10  ;;  %v5337_v21 = vpop.f32.mrb[85].mxu1 }
 0xa26   : > { %5562 = vst.msk [vmem:[%s10101_s7 + $0x44] sm:$0xf] %vm5544_vm9, %v6125_v41  ;;  %v5338_v6 = vadd.f32 %v10094_v10, %v5337_v21  ;;  %v6735_v39 = vpop.f32.mrb[86].mxu1 }
 0xa27   : > { %v5406_v14 = vmax.f32 %v5346_v40, 0.0  ;;  %v5349_v34 = vadd.f32 %v6735_v39, %v10094_v10  ;;  %v5340_v11 = vpop.f32.mrb[87].mxu1 }
 0xa28   : > { %v5404_v38 = vmax.f32 %v5338_v6, 0.0  ;;  %v5341_v62 = vadd.f32 %v10094_v10, %v5340_v11 }
 0xa29   : > { %v6130_v44 = vpack.c.bf16 %v5406_v14, %v5406_v14  ;;  %v5407_v45 = vmax.f32 %v5349_v34, 0.0 }
 0xa2a   : > { %v6128_v54 = vpack.c.bf16 %v5404_v38, %v5404_v38  ;;  %v5405_v53 = vmax.f32 %v5341_v62, 0.0 }
 0xa2b   : > { %5567 = vst.msk [vmem:[%s10101_s7 + $0x58] sm:$0xf] %vm5544_vm9, %v6130_v44  ;;  %v6131_v55 = vpack.c.bf16 %v5407_v45, %v5407_v45 }
 0xa2c   : > { %5565 = vst.msk [vmem:[%s10101_s7 + $0x50] sm:$0xf] %vm5544_vm9, %v6128_v54  ;;  %v6129_v12 = vpack.c.bf16 %v5405_v53, %v5405_v53  ;;  %v6738_v16 = vpop.f32.mrb[88].mxu1 }
 0xa2d   : > { %5568 = vst.msk [vmem:[%s10101_s7 + $0x5c] sm:$0xf] %vm5544_vm9, %v6131_v55  ;;  %v5362_v60 = vadd.f32 %v6738_v16, %v10094_v10  ;;  %v5353_v56 = vpop.f32.mrb[89].mxu1 }
 0xa2e   : > { %5566 = vst.msk [vmem:[%s10101_s7 + $0x54] sm:$0xf] %vm5544_vm9, %v6129_v12  ;;  %v5354_v4 = vadd.f32 %v10094_v10, %v5353_v56  ;;  %v6739_v5 = vpop.f32.mrb[90].mxu1 }
 0xa2f   : > { %v5410_v57 = vmax.f32 %v5362_v60, 0.0  ;;  %v5365_v23 = vadd.f32 %v6739_v5, %v10094_v10  ;;  %v5356_v49 = vpop.f32.mrb[91].mxu1 }
 0xa30   : > { %v5408_v8 = vmax.f32 %v5354_v4, 0.0  ;;  %v5357_v58 = vadd.f32 %v10094_v10, %v5356_v49 }
 0xa31   : > { %v6134_v7 = vpack.c.bf16 %v5410_v57, %v5410_v57  ;;  %v5411_v26 = vmax.f32 %v5365_v23, 0.0 }
 0xa32   : > { %v6132_v18 = vpack.c.bf16 %v5408_v8, %v5408_v8  ;;  %v5409_v27 = vmax.f32 %v5357_v58, 0.0 }
 0xa33   : > { %5571 = vst.msk [vmem:[%s10101_s7 + $0x68] sm:$0xf] %vm5544_vm9, %v6134_v7  ;;  %v6135_v17 = vpack.c.bf16 %v5411_v26, %v5411_v26 }
 0xa34   : > { %5569 = vst.msk [vmem:[%s10101_s7 + $0x60] sm:$0xf] %vm5544_vm9, %v6132_v18  ;;  %v6133_v32 = vpack.c.bf16 %v5409_v27, %v5409_v27  ;;  %v6742_v20 = vpop.f32.mrb[92].mxu1 }
 0xa35   : > { %5572 = vst.msk [vmem:[%s10101_s7 + $0x6c] sm:$0xf] %vm5544_vm9, %v6135_v17  ;;  %v5378_v9 = vadd.f32 %v6742_v20, %v10094_v10  ;;  %v5369_v19 = vpop.f32.mrb[93].mxu1 }
 0xa36   : > { %5570 = vst.msk [vmem:[%s10101_s7 + $0x64] sm:$0xf] %vm5544_vm9, %v6133_v32  ;;  %v5370_v0 = vadd.f32 %v10094_v10, %v5369_v19  ;;  %v6743_v63 = vpop.f32.mrb[94].mxu1 }
 0xa37   : > { %v5414_v48 = vmax.f32 %v5378_v9, 0.0  ;;  %v5381_v28 = vadd.f32 %v6743_v63, %v10094_v10  ;;  %v5372_v43 = vpop.f32.mrb[95].mxu1 }
 0xa38   : > { %v5412_v22 = vmax.f32 %v5370_v0, 0.0  ;;  %v5373_v52 = vadd.f32 %v10094_v10, %v5372_v43 }
 0xa39   : > { %v6138_v3 = vpack.c.bf16 %v5414_v48, %v5414_v48  ;;  %v5415_v24 = vmax.f32 %v5381_v28, 0.0 }
 0xa3a   : > { %v6136_v25 = vpack.c.bf16 %v5412_v22, %v5412_v22  ;;  %v5413_v15 = vmax.f32 %v5373_v52, 0.0 }
 0xa3b   : > { %5575 = vst.msk [vmem:[%s10101_s7 + $0x78] sm:$0xf] %vm5544_vm9, %v6138_v3  ;;  %v6139_v35 = vpack.c.bf16 %v5415_v24, %v5415_v24 }
 0xa3c   : > { %5573 = vst.msk [vmem:[%s10101_s7 + $0x70] sm:$0xf] %vm5544_vm9, %v6136_v25  ;;  %v6137_v33 = vpack.c.bf16 %v5413_v15, %v5413_v15 }
 0xa3d   : > { %5576 = vst.msk [vmem:[%s10101_s7 + $0x7c] sm:$0xf] %vm5544_vm9, %v6139_v35 }
 0xa3e   : > { %5574 = vst.msk [vmem:[%s10101_s7 + $0x74] sm:$0xf] %vm5544_vm9, %v6137_v33 }
 0xa3f   : > { %7901 = shalt.err (!%p7898_p4)
}
 0xa40   : > { %s7902_s27 = scalar_lea.hbm %s10194_s21, 2048  ;;  %s7906_s7 = scalar_lea.hbm %s10334_s30, 4096 }
 0xa41   : > { %p7903_p5 = scmp.ne.s32.totalorder %s10194_s21, %s7902_s27  ;;  %p7907_p8 = scmp.lt.u32.totalorder %s10194_s21, %s10334_s30 }
 0xa42   : > { %p7908_p11 = scmp.lt.u32.totalorder %s7906_s7, %s7902_s27  ;;  %p7910_p12 = scmp.lt.u32.totalorder %s7902_s27, %s10194_s21 }
 0xa43   : > { %p7904_p7 = pnand %p7903_p5, %p10335_p13 }
 0xa44   : > { %p7909_p0 = por %p7908_p11, %p7907_p8 }
 0xa45   : > { %p7905_p9 = pneg %p7904_p7 }
 0xa46   : > { %p7911_p1 = por %p7910_p12, %p7909_p0 }
 0xa48   : > { %p7912_p3 = pnand %p7911_p1, %p7905_p9 }
 0xa4a   : > { %7915 = shalt.err (!%p7912_p3)
}
 0xa4b   : > { %s8017_s3 = smov 4  }
 0xa4c   : > { %6932 = dma.vmem_to_hbm [thread:$0]  (%p10335_p13), %s10198_s0, 2048, %s10194_s21, %s5578_s2, %s8015_s4, %s8015_s4, %s8017_s3  }
 0xa4d PF: > { %s10336_s29 = sld [smem:[#allocation42_spill]]  ;;  %p10337_p6 = scmp.ne.s32.totalorder %s10310_s25, 0 }
 0xa4e   : > { %p10338_p2 = scmp.ge.s32.totalorder %s7990_s24, 2 }
 0xa50   : > { %p6985_p10 = pnand %p10338_p2, %p10337_p6 }
 0xa53   : > { %s5606_s6 = sand.u32 1, %s10336_s29  }
 0xa54   : > { %s5607_s8 = scalar_lea.sflag [#allocation6], %s5606_s6 }
 0xa55   : > { %7973 = dma.done.wait (!%p6985_p10), %s5607_s8, 2048  }
 0xa56   : > { %7975 = vsyncadd (!%p6985_p10), %s5607_s8, 4294965248  ;;  %s10339_s21 = sld [smem:[#allocation43_spill]]  ;;  %p39_p4 = scmp.ge.s32.totalorder %s8468_s1, 4  }
 0xa57   : > { %s10340_s22 = smov %s7986_s23  ;;  %s10341_s23 = smov %s8479_s17 }
 0xa58   : > { %s10342_s24 = smov %s8468_s1  ;;  %41 = sbr.rel (!%p39_p4) target bundleno = 26 (0x1a), region = 208 }
 0xa5f   :  { %5612 = vsyncpa [#allocation5], 1 }
 0xa60   :  { %5614 = vsyncpa [#allocation5 + $0x1], 1 }
 0xa61   :  { %5615 = vsyncpa [#allocation8], 1 }
 0xa62   :  { %5617 = vsyncpa [#allocation8 + $0x1], 1 }
 0xa63   :  { %5618 = vsyncpa [#allocation11], 1 }
 0xa64   :  { %5619 = vsyncpa [#allocation14], 1 }
 0xa65   :  { %5620 = vsyncpa [#allocation17], 1 }
 0xa66   :  { %5621 = vsyncpa [#allocation20], 1 }
 0xa67   :  { %5622 = vsyncpa [#allocation23], 1 }
 0xa68   :  { %5623 = vsyncpa [#allocation26], 1 }
 0xa69   :  { %5624 = vsyncpa [#allocation29], 1 }
 0xa6a   :  { %5625 = vsyncpa [#allocation6], 1 }
 0xa6b   :  { %5627 = vsyncpa [#allocation6 + $0x1], 1 }

</bundles_post_ra>
